<compile_context>
chip_gen: v7x
topology: tpu7x:2x2x1
jax: 0.10.0
libtpu: 0.0.40
codegen_flags: <defaults>
</compile_context>

<pallas_src>
import jax
import jax.numpy as jnp
from jax.experimental import pallas as pl
from jax.experimental.pallas import tpu as pltpu


# ---------------------------------------------------------------------------
# Fused forward kernel (one grid step = one block of Nb sequences)
# ---------------------------------------------------------------------------
def _fused_forward_kernel(
    emb_ref, pos_ref, msk_ref,
    w_emb_ref, b_emb_ref, w_pos_ref, b_pos_ref,
    wih_w_ref, whh_w_ref, b_w_ref, fm_w_ref, h0_w_ref, c0_w_ref,
    wih_p_ref, whh_p_ref, b_p_ref, fm_p_ref, h0_p_ref, c0_p_ref,
    w_att_ref, b_att_ref, fm_a_ref, whh_a_ref, h0_a_ref, c0_a_ref,
    w_score_ref,
    out_ref,
    feats_ref,
):
    f32 = jnp.float32
    bf16 = jnp.bfloat16
    Nb, Fp = out_ref.shape           # sublane-padded batch block, lane-padded width
    LN = emb_ref.shape[0]            # L * Nb  (time-major flat: row = t*Nb + n)
    L = LN // Nb
    HW2 = whh_w_ref.shape[0] // 2    # per-direction hidden sizes
    HP2 = whh_p_ref.shape[0] // 2
    HA2 = whh_a_ref.shape[0] // 2
    F = 2 * (HW2 + HP2)

    def dot(a, b):
        return jnp.dot(a, b, preferred_element_type=f32)

    def lstm_step(h, c, x_all, whh, fmask, t, r, H):
        """One fused fwd+bwd BiLSTM step, lane-stacked layout.

        h, c  : (Nb, 2H)  = [h_fwd | h_bwd]
        whh   : (2H, 8H)  block-diag per direction, gate/direction-interleaved
                           columns [i_f|i_b|f_f|f_b|g_f|g_b|o_f|o_b]
        x_all : (LN, 8H)  hoisted input projection (+bias), same column layout
        fmask : (1, 8H)   True on forward-direction gate columns
        One MXU matmul serves both directions; forward consumes x at time t,
        backward consumes x at time r = L-1-t (selected with one vselect).
        """
        H2 = 2 * H
        hh = dot(h, whh)                                           # (Nb, 8H)
        x_t = x_all[t * Nb:(t + 1) * Nb, :]
        x_r = x_all[r * Nb:(r + 1) * Nb, :]
        gates = hh + jnp.where(fmask, x_t, x_r)
        sg = jax.nn.sigmoid(gates)       # single EUP pass over the full gate tile
        tg = jnp.tanh(gates)
        i = sg[:, 0:H2]
        f = sg[:, H2:2 * H2]
        g = tg[:, 2 * H2:3 * H2]
        o = sg[:, 3 * H2:4 * H2]
        c = f * c + i * g
        h = o * jnp.tanh(c)
        return h, c

    # Zero the feats slab once: lanes F:Fp stay zero so the lane-padded attention
    # matmul and the lane-dense output store are exact.
    feats_ref[...] = jnp.zeros_like(feats_ref)

    # ---- hoisted, gate+direction-fused input projections (bf16 MXU, f32 acc;
    #      biases folded in once for all timesteps) ----
    e = jnp.tanh(dot(emb_ref[...], w_emb_ref[...]) + b_emb_ref[...])    # (LN, 2*HW)
    pe = jnp.tanh(dot(pos_ref[...], w_pos_ref[...]) + b_pos_ref[...])   # (LN, 2*HP)
    xw = dot(e.astype(bf16), wih_w_ref[...]) + b_w_ref[...]             # (LN, 8*HW2)
    xp = dot(pe.astype(bf16), wih_p_ref[...]) + b_p_ref[...]            # (LN, 8*HP2)

    fm_w = fm_w_ref[...] > 0.5
    fm_p = fm_p_ref[...] > 0.5
    whh_w = whh_w_ref[...]
    whh_p = whh_p_ref[...]

    # ---- word + pos BiLSTMs: interleaved in ONE unrolled loop so the two
    #      independent latency-bound chains overlap; masked outputs land
    #      directly in the resident VMEM feats slab at their final columns ----
    hw = h0_w_ref[...]; cw = c0_w_ref[...]
    hp = h0_p_ref[...]; cp = c0_p_ref[...]
    o2 = 2 * HW2
    for t in range(L):                       # L is small & static -> unrolled
        r = L - 1 - t
        hw, cw = lstm_step(hw, cw, xw, whh_w, fm_w, t, r, HW2)
        hp, cp = lstm_step(hp, cp, xp, whh_p, fm_p, t, r, HP2)
        m_t = msk_ref[t * Nb:(t + 1) * Nb, :]
        m_r = msk_ref[r * Nb:(r + 1) * Nb, :]
        feats_ref[t * Nb:(t + 1) * Nb, 0:HW2] = hw[:, 0:HW2] * m_t
        feats_ref[r * Nb:(r + 1) * Nb, HW2:o2] = hw[:, HW2:2 * HW2] * m_r
        feats_ref[t * Nb:(t + 1) * Nb, o2:o2 + HP2] = hp[:, 0:HP2] * m_t
        feats_ref[r * Nb:(r + 1) * Nb, o2 + HP2:F] = hp[:, HP2:2 * HP2] * m_r

    # ---- attention BiLSTM (input_layer_att composed into w_att/b_att);
    #      per-step hidden2att score dots replace an oa slab + tail matmul ----
    xa = dot(feats_ref[...].astype(bf16), w_att_ref[...]) + b_att_ref[...]
    fm_a = fm_a_ref[...] > 0.5
    whh_a = whh_a_ref[...]
    wsc = w_score_ref[...]                   # (2*HA2, 2) block-diag [w_fwd | w_bwd]
    ha = h0_a_ref[...]; ca = c0_a_ref[...]
    s_f = [None] * L
    s_b = [None] * L
    for t in range(L):
        r = L - 1 - t
        ha, ca = lstm_step(ha, ca, xa, whh_a, fm_a, t, r, HA2)
        sc = dot(ha, wsc)                    # (Nb, 2): col0 fwd@t, col1 bwd@r
        s_f[t] = sc[:, 0:1]
        s_b[r] = sc[:, 1:2]

    # ---- softmax over time (hidden2att bias cancels exactly in softmax) and
    #      weighted sum of feats; unmasked softmax matches the reference ----
    s_t = [s_f[t] + s_b[t] for t in range(L)]
    m = s_t[0]
    for t in range(1, L):
        m = jnp.maximum(m, s_t[t])
    e_t = [jnp.exp(v - m) for v in s_t]
    den = e_t[0]
    for t in range(1, L):
        den = den + e_t[t]
    inv = pl.reciprocal(den, approx=True)                          # (Nb, 1)
    acc = (e_t[0] * inv) * feats_ref[0:Nb, :]
    for t in range(1, L):
        acc = acc + (e_t[t] * inv) * feats_ref[t * Nb:(t + 1) * Nb, :]
    out_ref[...] = acc                                             # lane-dense store


# ---------------------------------------------------------------------------
# Host-side layout helpers (wrapper-side data plumbing, done once per call)
# ---------------------------------------------------------------------------
def _blockify_seq(x, G, Nb, Nbp):
    """(BC, L, D) -> (G, L*Nbp, D); within a block row = t*Nbp + n (time-major).
    Pads the batch block to Nbp (multiple of 8) with zero sequences."""
    BC, L, D = x.shape
    x = x.reshape(G, Nb, L, D)
    if Nbp != Nb:
        x = jnp.pad(x, ((0, 0), (0, Nbp - Nb), (0, 0), (0, 0)))
    return x.transpose(0, 2, 1, 3).reshape(G, L * Nbp, D)


def _blockify_state_wide(s, G, Nb, Nbp):
    """(2, BC, H) -> (G, Nbp, 2H) with per-row lane layout [fwd | bwd]."""
    _, BC, H = s.shape
    s = jnp.transpose(s, (1, 0, 2)).reshape(BC, 2 * H).reshape(G, Nb, 2 * H)
    if Nbp != Nb:
        s = jnp.pad(s, ((0, 0), (0, Nbp - Nb), (0, 0)))
    return s


def _fwd_col_mask(H):
    """(1, 8H) float mask: 1.0 on forward-direction gate columns."""
    cols = jnp.arange(8 * H) // H
    return ((cols % 2) == 0).astype(jnp.float32)[None, :]


def _default_num_blocks(BC):
    """Generation-aware batch blocking: 2 grid blocks only on 2-TensorCore chips
    (v7x / megacore); a serial grid on single-TC v5e/v6e only adds overhead."""
    try:
        kind = jax.devices()[0].device_kind.lower()
        two_tc = any(tag in kind for tag in ("v7", "v4", "v5p"))
    except Exception:
        two_tc = False
    return 2 if (two_tc and BC >= 2 and BC % 2 == 0) else 1


def bilstm_enc_ram_forward(params, states, embeds, pos, masks, *, num_blocks=None):
    f32 = jnp.float32
    bf16 = jnp.bfloat16

    b, c, l, ed = embeds.shape
    pd = pos.shape[-1]
    BC = b * c

    HW2 = params["lstm_word"]["whh"].shape[0] // 2
    HP2 = params["lstm_pos"]["whh"].shape[0] // 2
    HA2 = params["lstm_att"]["whh"].shape[0] // 2
    F = 2 * (HW2 + HP2)                         # hidden_dim_word + hidden_dim_pos
    Fp = ((F + 127) // 128) * 128               # lane-dense output / feats width

    if num_blocks is None:
        num_blocks = _default_num_blocks(BC)
    G = num_blocks
    assert BC % G == 0
    Nb = BC // G
    Nbp = ((Nb + 7) // 8) * 8                   # sublane-aligned batch block
    LNp = l * Nbp

    emb_b = _blockify_seq(embeds.reshape(BC, l, ed).astype(bf16), G, Nb, Nbp)
    pos_b = _blockify_seq(pos.reshape(BC, l, pd).astype(bf16), G, Nb, Nbp)
    msk_b = _blockify_seq(masks.reshape(BC, l, 1).astype(f32), G, Nb, Nbp)

    # Exact affine composition of input_layer_att with the att-LSTM input
    # projection (there is NO nonlinearity between them in the reference and
    # dropout p=0 is identity).  Rows padded to Fp (the padded feats lanes are 0).
    wih_a = params["lstm_att"]["wih"].astype(f32)
    w_att_comb = params["w_att_in"].astype(f32) @ wih_a
    b_att_comb = params["b_att_in"].astype(f32) @ wih_a + params["lstm_att"]["b"].astype(f32)
    w_att_comb = jnp.pad(w_att_comb, ((0, Fp - F), (0, 0)))

    # hidden2att, block-diagonal per direction -> one (Nb,2HA2)x(2HA2,2) dot/step.
    w1 = params["w_h2a"][0:HA2, :].astype(f32)
    w2 = params["w_h2a"][HA2:2 * HA2, :].astype(f32)
    zero = jnp.zeros_like(w1)
    w_score = jnp.concatenate(
        [jnp.concatenate([w1, zero], axis=1), jnp.concatenate([zero, w2], axis=1)],
        axis=0)                                                    # (2*HA2, 2)

    # bf16 only for the big hoisted projections; recurrent weights / biases /
    # states / elementwise math stay f32.
    w_emb = params["w_emb"].astype(bf16)
    w_pos = params["w_pos"].astype(bf16)
    wih_w = params["lstm_word"]["wih"].astype(bf16)
    wih_p = params["lstm_pos"]["wih"].astype(bf16)
    w_att = w_att_comb.astype(bf16)
    b_emb = params["b_emb"].astype(f32)
    b_pos = params["b_pos"].astype(f32)
    b_w = params["lstm_word"]["b"].astype(f32)
    b_p = params["lstm_pos"]["b"].astype(f32)
    b_att = b_att_comb.astype(f32)
    whh_w = params["lstm_word"]["whh"].astype(f32)
    whh_p = params["lstm_pos"]["whh"].astype(f32)
    whh_a = params["lstm_att"]["whh"].astype(f32)

    fm_w = _fwd_col_mask(HW2)
    fm_p = _fwd_col_mask(HP2)
    fm_a = _fwd_col_mask(HA2)

    h0_w = _blockify_state_wide(states["word"][0].astype(f32), G, Nb, Nbp)
    c0_w = _blockify_state_wide(states["word"][1].astype(f32), G, Nb, Nbp)
    h0_p = _blockify_state_wide(states["pos"][0].astype(f32), G, Nb, Nbp)
    c0_p = _blockify_state_wide(states["pos"][1].astype(f32), G, Nb, Nbp)
    h0_a = _blockify_state_wide(states["att"][0].astype(f32), G, Nb, Nbp)
    c0_a = _blockify_state_wide(states["att"][1].astype(f32), G, Nb, Nbp)

    def seq_spec(d):
        return pl.BlockSpec((None, LNp, d), lambda g: (g, 0, 0))

    def st_spec(h):
        return pl.BlockSpec((None, Nbp, h), lambda g: (g, 0, 0))

    def w_spec(a):
        zeros = (0,) * a.ndim

        def index_map(g):
            return zeros

        return pl.BlockSpec(a.shape, index_map)

    args = (
        emb_b, pos_b, msk_b,
        w_emb, b_emb, w_pos, b_pos,
        wih_w, whh_w, b_w, fm_w, h0_w, c0_w,
        wih_p, whh_p, b_p, fm_p, h0_p, c0_p,
        w_att, b_att, fm_a, whh_a, h0_a, c0_a,
        w_score,
    )
    in_specs = [
        seq_spec(ed), seq_spec(pd), seq_spec(1),
        w_spec(w_emb), w_spec(b_emb), w_spec(w_pos), w_spec(b_pos),
        w_spec(wih_w), w_spec(whh_w), w_spec(b_w), w_spec(fm_w),
        st_spec(2 * HW2), st_spec(2 * HW2),
        w_spec(wih_p), w_spec(whh_p), w_spec(b_p), w_spec(fm_p),
        st_spec(2 * HP2), st_spec(2 * HP2),
        w_spec(w_att), w_spec(b_att), w_spec(fm_a), w_spec(whh_a),
        st_spec(2 * HA2), st_spec(2 * HA2),
        w_spec(w_score),
    ]

    out = pl.pallas_call(
        _fused_forward_kernel,
        out_shape=jax.ShapeDtypeStruct((G, Nbp, Fp), f32),
        grid=(G,),
        in_specs=in_specs,
        out_specs=pl.BlockSpec((None, Nbp, Fp), lambda g: (g, 0, 0)),
        scratch_shapes=[
            pltpu.VMEM((LNp, Fp), f32),      # masked lstm_feats, resident in VMEM
        ],
        compiler_params=pltpu.CompilerParams(
            dimension_semantics=("parallel",),
            vmem_limit_bytes=32 * 1024 * 1024,
        ),
    )(*args)

    # Strip batch-block padding and lane padding, restore (b, c, F).
    return out[:, :Nb, :F].reshape(b, c, F)


# ---------------------------------------------------------------------------
# PyTorch-layout -> fused-kernel-layout weight packing + deterministic init
# ---------------------------------------------------------------------------
def _pack_bilstm(w_ih_f, w_hh_f, b_ih_f, b_hh_f, w_ih_r, w_hh_r, b_ih_r, b_hh_r):
    """Pack PyTorch bidirectional-LSTM weights into the fused kernel layout.

    PyTorch: weight_ih_l0[_reverse] (4H, D), weight_hh_l0[_reverse] (4H, H),
             bias_ih/bias_hh (4H,), gate row order [i | f | g | o].
    Kernel : wih (D, 8H)  columns [i_f|i_b|f_f|f_b|g_f|g_b|o_f|o_b]
             whh (2H, 8H) rows [h_fwd ; h_bwd], block-diagonal per direction
             b   (1, 8H)  bias_ih + bias_hh, same columns
    """
    H = w_hh_f.shape[1]
    D = w_ih_f.shape[1]
    wih = jnp.zeros((D, 8 * H), jnp.float32)
    whh = jnp.zeros((2 * H, 8 * H), jnp.float32)
    bias = jnp.zeros((1, 8 * H), jnp.float32)
    per_dir = ((w_ih_f, w_hh_f, b_ih_f, b_hh_f), (w_ih_r, w_hh_r, b_ih_r, b_hh_r))
    for gate in range(4):                       # i, f, g, o
        for d, (wi, wh, bi, bh) in enumerate(per_dir):
            col = (2 * gate + d) * H
            rows = slice(gate * H, (gate + 1) * H)
            wih = wih.at[:, col:col + H].set(wi[rows, :].T)
            whh = whh.at[d * H:(d + 1) * H, col:col + H].set(wh[rows, :].T)
            bias = bias.at[:, col:col + H].set((bi[rows] + bh[rows])[None, :])
    return {"wih": wih, "whh": whh, "b": bias}


def _init_bilstm_params(key, in_dim, hidden):
    ks = jax.random.split(key, 8)
    s = 1.0 / (hidden ** 0.5)
    u = lambda k, shape: jax.random.uniform(k, shape, jnp.float32, -s, s)
    return _pack_bilstm(
        u(ks[0], (4 * hidden, in_dim)), u(ks[1], (4 * hidden, hidden)),
        u(ks[2], (4 * hidden,)), u(ks[3], (4 * hidden,)),
        u(ks[4], (4 * hidden, in_dim)), u(ks[5], (4 * hidden, hidden)),
        u(ks[6], (4 * hidden,)), u(ks[7], (4 * hidden,)),
    )


if __name__ == "__main__":
    # Small, module-consistent shapes.
    b, c, l = 2, 2, 8
    ed, pd = 16, 8
    HW, HP, HA = 32, 16, 32          # hidden_dim_word, hidden_dim_pos, hidden_dim_att
    BC = b * c

    key = jax.random.PRNGKey(0)
    keys = jax.random.split(key, 20)
    nrm = lambda k, shape: jax.random.normal(k, shape, jnp.float32)

    params = {
        "w_emb": nrm(keys[0], (ed, 2 * HW)) * 0.1,      # input_layer_embeds (W^T)
        "b_emb": nrm(keys[1], (1, 2 * HW)) * 0.1,
        "w_pos": nrm(keys[2], (pd, 2 * HP)) * 0.1,      # input_layer_pos (W^T)
        "b_pos": nrm(keys[3], (1, 2 * HP)) * 0.1,
        "w_att_in": nrm(keys[4], (HW + HP, HA)) * 0.1,  # input_layer_att (W^T)
        "b_att_in": nrm(keys[5], (1, HA)) * 0.1,
        "w_h2a": nrm(keys[6], (HA, 1)) * 0.1,           # hidden2att (W^T); its bias
        # is omitted because softmax over the time axis is exactly invariant to it.
        "lstm_word": _init_bilstm_params(keys[8], 2 * HW, HW // 2),
        "lstm_pos": _init_bilstm_params(keys[9], 2 * HP, HP // 2),
        "lstm_att": _init_bilstm_params(keys[10], HA, HA // 2),
    }
    # TODO(synk): hidden2tag / att(Conv1d) / fc exist in __init__ but are never used
    # in forward(); they are intentionally not instantiated here.
    states = {
        "word": (nrm(keys[11], (2, BC, HW // 2)), nrm(keys[12], (2, BC, HW // 2))),
        "pos": (nrm(keys[13], (2, BC, HP // 2)), nrm(keys[14], (2, BC, HP // 2))),
        "att": (nrm(keys[15], (2, BC, HA // 2)), nrm(keys[16], (2, BC, HA // 2))),
    }

    embeds = nrm(keys[17], (b, c, l, ed))
    pos = nrm(keys[18], (b, c, l, pd))
    masks = (jax.random.uniform(keys[19], (b, c, l)) > 0.2).astype(jnp.float32)

    forward = jax.jit(bilstm_enc_ram_forward)
    out = forward(params, states, embeds, pos, masks)
    out = jax.block_until_ready(out)

    assert out.shape == (b, c, HW + HP), out.shape
    assert bool(jnp.isfinite(out).all())
    print("KERNEL_OK")
</pallas_src>

<mosaic_0001>
module attributes {stable_mosaic.version = 11 : i64} {
  func.func @_fused_forward_kernel(%arg0: i32, %arg1: memref<1x64x16xbf16, #tpu.memory_space<vmem>>, %arg2: memref<1x64x8xbf16, #tpu.memory_space<vmem>>, %arg3: memref<1x64x1xf32, #tpu.memory_space<vmem>>, %arg4: memref<16x64xbf16, #tpu.memory_space<vmem>>, %arg5: memref<1x64xf32, #tpu.memory_space<vmem>>, %arg6: memref<8x32xbf16, #tpu.memory_space<vmem>>, %arg7: memref<1x32xf32, #tpu.memory_space<vmem>>, %arg8: memref<64x128xbf16, #tpu.memory_space<vmem>>, %arg9: memref<32x128xf32, #tpu.memory_space<vmem>>, %arg10: memref<1x128xf32, #tpu.memory_space<vmem>>, %arg11: memref<1x128xf32, #tpu.memory_space<vmem>>, %arg12: memref<1x8x32xf32, #tpu.memory_space<vmem>>, %arg13: memref<1x8x32xf32, #tpu.memory_space<vmem>>, %arg14: memref<32x64xbf16, #tpu.memory_space<vmem>>, %arg15: memref<16x64xf32, #tpu.memory_space<vmem>>, %arg16: memref<1x64xf32, #tpu.memory_space<vmem>>, %arg17: memref<1x64xf32, #tpu.memory_space<vmem>>, %arg18: memref<1x8x16xf32, #tpu.memory_space<vmem>>, %arg19: memref<1x8x16xf32, #tpu.memory_space<vmem>>, %arg20: memref<128x128xbf16, #tpu.memory_space<vmem>>, %arg21: memref<1x128xf32, #tpu.memory_space<vmem>>, %arg22: memref<1x128xf32, #tpu.memory_space<vmem>>, %arg23: memref<32x128xf32, #tpu.memory_space<vmem>>, %arg24: memref<1x8x32xf32, #tpu.memory_space<vmem>>, %arg25: memref<1x8x32xf32, #tpu.memory_space<vmem>>, %arg26: memref<32x2xf32, #tpu.memory_space<vmem>>, %arg27: memref<1x8x128xf32, #tpu.memory_space<vmem>>, %arg28: memref<64x128xf32, #tpu.memory_space<vmem>>) attributes {dimension_semantics = [#tpu.dimension_semantics<parallel>], iteration_bounds = array<i64: 1>, scalar_prefetch = 0 : i64, scratch_operands = 1 : i64, tpu.core_type = #tpu.core_type<tc>, window_params = [{transform_indices = @transform_0, window_bounds = array<i64: 1, 64, 16>}, {transform_indices = @transform_1, window_bounds = array<i64: 1, 64, 8>}, {transform_indices = @transform_2, window_bounds = array<i64: 1, 64, 1>}, {pipeline_mode = #tpu.pipeline_mode<synchronous>, transform_indices = @transform_3, window_bounds = array<i64: 16, 64>}, {pipeline_mode = #tpu.pipeline_mode<synchronous>, transform_indices = @transform_4, window_bounds = array<i64: 1, 64>}, {pipeline_mode = #tpu.pipeline_mode<synchronous>, transform_indices = @transform_5, window_bounds = array<i64: 8, 32>}, {pipeline_mode = #tpu.pipeline_mode<synchronous>, transform_indices = @transform_6, window_bounds = array<i64: 1, 32>}, {pipeline_mode = #tpu.pipeline_mode<synchronous>, transform_indices = @transform_7, window_bounds = array<i64: 64, 128>}, {pipeline_mode = #tpu.pipeline_mode<synchronous>, transform_indices = @transform_8, window_bounds = array<i64: 32, 128>}, {pipeline_mode = #tpu.pipeline_mode<synchronous>, transform_indices = @transform_9, window_bounds = array<i64: 1, 128>}, {pipeline_mode = #tpu.pipeline_mode<synchronous>, transform_indices = @transform_10, window_bounds = array<i64: 1, 128>}, {transform_indices = @transform_11, window_bounds = array<i64: 1, 8, 32>}, {transform_indices = @transform_12, window_bounds = array<i64: 1, 8, 32>}, {pipeline_mode = #tpu.pipeline_mode<synchronous>, transform_indices = @transform_13, window_bounds = array<i64: 32, 64>}, {pipeline_mode = #tpu.pipeline_mode<synchronous>, transform_indices = @transform_14, window_bounds = array<i64: 16, 64>}, {pipeline_mode = #tpu.pipeline_mode<synchronous>, transform_indices = @transform_15, window_bounds = array<i64: 1, 64>}, {pipeline_mode = #tpu.pipeline_mode<synchronous>, transform_indices = @transform_16, window_bounds = array<i64: 1, 64>}, {transform_indices = @transform_17, window_bounds = array<i64: 1, 8, 16>}, {transform_indices = @transform_18, window_bounds = array<i64: 1, 8, 16>}, {pipeline_mode = #tpu.pipeline_mode<synchronous>, transform_indices = @transform_19, window_bounds = array<i64: 128, 128>}, {pipeline_mode = #tpu.pipeline_mode<synchronous>, transform_indices = @transform_20, window_bounds = array<i64: 1, 128>}, {pipeline_mode = #tpu.pipeline_mode<synchronous>, transform_indices = @transform_21, window_bounds = array<i64: 1, 128>}, {pipeline_mode = #tpu.pipeline_mode<synchronous>, transform_indices = @transform_22, window_bounds = array<i64: 32, 128>}, {transform_indices = @transform_23, window_bounds = array<i64: 1, 8, 32>}, {transform_indices = @transform_24, window_bounds = array<i64: 1, 8, 32>}, {pipeline_mode = #tpu.pipeline_mode<synchronous>, transform_indices = @transform_25, window_bounds = array<i64: 32, 2>}, {transform_indices = @transform_26, window_bounds = array<i64: 1, 8, 128>}]} {
    %cst = arith.constant 0.000000e+00 : f32
    %0 = vector.broadcast %cst : f32 to vector<64x128xf32>
    %c0 = arith.constant 0 : index
    %c0_0 = arith.constant 0 : index
    %1 = vector.load %arg28[%c0, %c0_0] : memref<64x128xf32, #tpu.memory_space<vmem>>, vector<64x128xf32>
    tpu.vector_store %arg28[%c0, %c0_0], %0 {strides = array<i32>} : memref<64x128xf32, #tpu.memory_space<vmem>>, vector<64x128xf32>,
    %c0_1 = arith.constant 0 : index
    %c0_2 = arith.constant 0 : index
    %c0_3 = arith.constant 0 : index
    %2 = vector.load %arg1[%c0_1, %c0_2, %c0_3] : memref<1x64x16xbf16, #tpu.memory_space<vmem>>, vector<1x64x16xbf16>
    %3 = vector.shape_cast %2 : vector<1x64x16xbf16> to vector<64x16xbf16>
    %c0_4 = arith.constant 0 : index
    %c0_5 = arith.constant 0 : index
    %4 = vector.load %arg4[%c0_4, %c0_5] : memref<16x64xbf16, #tpu.memory_space<vmem>>, vector<16x64xbf16>
    %cst_6 = arith.constant dense<0.000000e+00> : vector<64x64xf32>
    %5 = tpu.matmul %3, %4, %cst_6 {dimension_numbers = #tpu.dot_dimension_numbers<[1], [0], [0], [1], [0, 0, 1, 1], [], []>} : vector<64x16xbf16>, vector<16x64xbf16>, vector<64x64xf32> -> vector<64x64xf32>
    %c0_7 = arith.constant 0 : index
    %c0_8 = arith.constant 0 : index
    %6 = vector.load %arg5[%c0_7, %c0_8] : memref<1x64xf32, #tpu.memory_space<vmem>>, vector<1x64xf32>
    %7 = vector.broadcast %6 : vector<1x64xf32> to vector<64x64xf32>
    %8 = arith.addf %5, %7 : vector<64x64xf32>
    %9 = math.tanh %8 : vector<64x64xf32>
    %c0_9 = arith.constant 0 : index
    %c0_10 = arith.constant 0 : index
    %c0_11 = arith.constant 0 : index
    %10 = vector.load %arg2[%c0_9, %c0_10, %c0_11] : memref<1x64x8xbf16, #tpu.memory_space<vmem>>, vector<1x64x8xbf16>
    %11 = vector.shape_cast %10 : vector<1x64x8xbf16> to vector<64x8xbf16>
    %c0_12 = arith.constant 0 : index
    %c0_13 = arith.constant 0 : index
    %12 = vector.load %arg6[%c0_12, %c0_13] : memref<8x32xbf16, #tpu.memory_space<vmem>>, vector<8x32xbf16>
    %cst_14 = arith.constant dense<0.000000e+00> : vector<64x32xf32>
    %13 = tpu.matmul %11, %12, %cst_14 {dimension_numbers = #tpu.dot_dimension_numbers<[1], [0], [0], [1], [0, 0, 1, 1], [], []>} : vector<64x8xbf16>, vector<8x32xbf16>, vector<64x32xf32> -> vector<64x32xf32>
    %c0_15 = arith.constant 0 : index
    %c0_16 = arith.constant 0 : index
    %14 = vector.load %arg7[%c0_15, %c0_16] : memref<1x32xf32, #tpu.memory_space<vmem>>, vector<1x32xf32>
    %15 = vector.broadcast %14 : vector<1x32xf32> to vector<64x32xf32>
    %16 = arith.addf %13, %15 : vector<64x32xf32>
    %17 = math.tanh %16 : vector<64x32xf32>
    %18 = arith.truncf %9 : vector<64x64xf32> to vector<64x64xbf16>
    %c0_17 = arith.constant 0 : index
    %c0_18 = arith.constant 0 : index
    %19 = vector.load %arg8[%c0_17, %c0_18] : memref<64x128xbf16, #tpu.memory_space<vmem>>, vector<64x128xbf16>
    %cst_19 = arith.constant dense<0.000000e+00> : vector<64x128xf32>
    %20 = tpu.matmul %18, %19, %cst_19 {dimension_numbers = #tpu.dot_dimension_numbers<[1], [0], [0], [1], [0, 0, 1, 1], [], []>} : vector<64x64xbf16>, vector<64x128xbf16>, vector<64x128xf32> -> vector<64x128xf32>
    %c0_20 = arith.constant 0 : index
    %c0_21 = arith.constant 0 : index
    %21 = vector.load %arg10[%c0_20, %c0_21] : memref<1x128xf32, #tpu.memory_space<vmem>>, vector<1x128xf32>
    %22 = vector.broadcast %21 : vector<1x128xf32> to vector<64x128xf32>
    %23 = arith.addf %20, %22 : vector<64x128xf32>
    %24 = arith.truncf %17 : vector<64x32xf32> to vector<64x32xbf16>
    %c0_22 = arith.constant 0 : index
    %c0_23 = arith.constant 0 : index
    %25 = vector.load %arg14[%c0_22, %c0_23] : memref<32x64xbf16, #tpu.memory_space<vmem>>, vector<32x64xbf16>
    %cst_24 = arith.constant dense<0.000000e+00> : vector<64x64xf32>
    %26 = tpu.matmul %24, %25, %cst_24 {dimension_numbers = #tpu.dot_dimension_numbers<[1], [0], [0], [1], [0, 0, 1, 1], [], []>} : vector<64x32xbf16>, vector<32x64xbf16>, vector<64x64xf32> -> vector<64x64xf32>
    %c0_25 = arith.constant 0 : index
    %c0_26 = arith.constant 0 : index
    %27 = vector.load %arg16[%c0_25, %c0_26] : memref<1x64xf32, #tpu.memory_space<vmem>>, vector<1x64xf32>
    %28 = vector.broadcast %27 : vector<1x64xf32> to vector<64x64xf32>
    %29 = arith.addf %26, %28 : vector<64x64xf32>
    %c0_27 = arith.constant 0 : index
    %c0_28 = arith.constant 0 : index
    %30 = vector.load %arg11[%c0_27, %c0_28] : memref<1x128xf32, #tpu.memory_space<vmem>>, vector<1x128xf32>
    %cst_29 = arith.constant 5.000000e-01 : f32
    %31 = vector.broadcast %cst_29 : f32 to vector<1x128xf32>
    %32 = arith.cmpf ogt, %30, %31 : vector<1x128xf32>
    %c0_30 = arith.constant 0 : index
    %c0_31 = arith.constant 0 : index
    %33 = vector.load %arg17[%c0_30, %c0_31] : memref<1x64xf32, #tpu.memory_space<vmem>>, vector<1x64xf32>
    %cst_32 = arith.constant 5.000000e-01 : f32
    %34 = vector.broadcast %cst_32 : f32 to vector<1x64xf32>
    %35 = arith.cmpf ogt, %33, %34 : vector<1x64xf32>
    %c0_33 = arith.constant 0 : index
    %c0_34 = arith.constant 0 : index
    %36 = vector.load %arg9[%c0_33, %c0_34] : memref<32x128xf32, #tpu.memory_space<vmem>>, vector<32x128xf32>
    %c0_35 = arith.constant 0 : index
    %c0_36 = arith.constant 0 : index
    %37 = vector.load %arg15[%c0_35, %c0_36] : memref<16x64xf32, #tpu.memory_space<vmem>>, vector<16x64xf32>
    %c0_37 = arith.constant 0 : index
    %c0_38 = arith.constant 0 : index
    %c0_39 = arith.constant 0 : index
    %38 = vector.load %arg12[%c0_37, %c0_38, %c0_39] : memref<1x8x32xf32, #tpu.memory_space<vmem>>, vector<1x8x32xf32>
    %39 = vector.shape_cast %38 : vector<1x8x32xf32> to vector<8x32xf32>
    %c0_40 = arith.constant 0 : index
    %c0_41 = arith.constant 0 : index
    %c0_42 = arith.constant 0 : index
    %40 = vector.load %arg13[%c0_40, %c0_41, %c0_42] : memref<1x8x32xf32, #tpu.memory_space<vmem>>, vector<1x8x32xf32>
    %41 = vector.shape_cast %40 : vector<1x8x32xf32> to vector<8x32xf32>
    %c0_43 = arith.constant 0 : index
    %c0_44 = arith.constant 0 : index
    %c0_45 = arith.constant 0 : index
    %42 = vector.load %arg18[%c0_43, %c0_44, %c0_45] : memref<1x8x16xf32, #tpu.memory_space<vmem>>, vector<1x8x16xf32>
    %43 = vector.shape_cast %42 : vector<1x8x16xf32> to vector<8x16xf32>
    %c0_46 = arith.constant 0 : index
    %c0_47 = arith.constant 0 : index
    %c0_48 = arith.constant 0 : index
    %44 = vector.load %arg19[%c0_46, %c0_47, %c0_48] : memref<1x8x16xf32, #tpu.memory_space<vmem>>, vector<1x8x16xf32>
    %45 = vector.shape_cast %44 : vector<1x8x16xf32> to vector<8x16xf32>
    %cst_49 = arith.constant dense<0.000000e+00> : vector<8x128xf32>
    %46 = tpu.matmul %39, %36, %cst_49 {dimension_numbers = #tpu.dot_dimension_numbers<[1], [0], [0], [1], [0, 0, 1, 1], [], []>} : vector<8x32xf32>, vector<32x128xf32>, vector<8x128xf32> -> vector<8x128xf32>
    %47 = vector.extract_strided_slice %23 {offsets = [0, 0], sizes = [8, 128], strides = [1, 1]} : vector<64x128xf32> to vector<8x128xf32>
    %48 = vector.extract_strided_slice %23 {offsets = [56, 0], sizes = [8, 128], strides = [1, 1]} : vector<64x128xf32> to vector<8x128xf32>
    %49 = vector.shape_cast %32 : vector<1x128xi1> to vector<1x128xi1>
    %50 = vector.broadcast %49 : vector<1x128xi1> to vector<8x128xi1>
    %51 = arith.select %50, %47, %48 : vector<8x128xi1>, vector<8x128xf32>
    %52 = arith.addf %46, %51 : vector<8x128xf32>
    %53 = arith.negf %52 : vector<8x128xf32>
    %54 = math.exp %53 : vector<8x128xf32>
    %cst_50 = arith.constant 1.000000e+00 : f32
    %55 = vector.broadcast %cst_50 : f32 to vector<8x128xf32>
    %56 = arith.addf %55, %54 : vector<8x128xf32>
    %57 = arith.divf %55, %56 : vector<8x128xf32>
    %58 = math.tanh %52 : vector<8x128xf32>
    %59 = vector.extract_strided_slice %57 {offsets = [0, 0], sizes = [8, 32], strides = [1, 1]} : vector<8x128xf32> to vector<8x32xf32>
    %60 = vector.extract_strided_slice %57 {offsets = [0, 32], sizes = [8, 32], strides = [1, 1]} : vector<8x128xf32> to vector<8x32xf32>
    %61 = vector.extract_strided_slice %58 {offsets = [0, 64], sizes = [8, 32], strides = [1, 1]} : vector<8x128xf32> to vector<8x32xf32>
    %62 = vector.extract_strided_slice %57 {offsets = [0, 96], sizes = [8, 32], strides = [1, 1]} : vector<8x128xf32> to vector<8x32xf32>
    %63 = arith.mulf %60, %41 : vector<8x32xf32>
    %64 = arith.mulf %59, %61 : vector<8x32xf32>
    %65 = arith.addf %63, %64 : vector<8x32xf32>
    %66 = math.tanh %65 : vector<8x32xf32>
    %67 = arith.mulf %62, %66 : vector<8x32xf32>
    %cst_51 = arith.constant dense<0.000000e+00> : vector<8x64xf32>
    %68 = tpu.matmul %43, %37, %cst_51 {dimension_numbers = #tpu.dot_dimension_numbers<[1], [0], [0], [1], [0, 0, 1, 1], [], []>} : vector<8x16xf32>, vector<16x64xf32>, vector<8x64xf32> -> vector<8x64xf32>
    %69 = vector.extract_strided_slice %29 {offsets = [0, 0], sizes = [8, 64], strides = [1, 1]} : vector<64x64xf32> to vector<8x64xf32>
    %70 = vector.extract_strided_slice %29 {offsets = [56, 0], sizes = [8, 64], strides = [1, 1]} : vector<64x64xf32> to vector<8x64xf32>
    %71 = vector.shape_cast %35 : vector<1x64xi1> to vector<1x64xi1>
    %72 = vector.broadcast %71 : vector<1x64xi1> to vector<8x64xi1>
    %73 = arith.select %72, %69, %70 : vector<8x64xi1>, vector<8x64xf32>
    %74 = arith.addf %68, %73 : vector<8x64xf32>
    %75 = arith.negf %74 : vector<8x64xf32>
    %76 = math.exp %75 : vector<8x64xf32>
    %cst_52 = arith.constant 1.000000e+00 : f32
    %77 = vector.broadcast %cst_52 : f32 to vector<8x64xf32>
    %78 = arith.addf %77, %76 : vector<8x64xf32>
    %79 = arith.divf %77, %78 : vector<8x64xf32>
    %80 = math.tanh %74 : vector<8x64xf32>
    %81 = vector.extract_strided_slice %79 {offsets = [0, 0], sizes = [8, 16], strides = [1, 1]} : vector<8x64xf32> to vector<8x16xf32>
    %82 = vector.extract_strided_slice %79 {offsets = [0, 16], sizes = [8, 16], strides = [1, 1]} : vector<8x64xf32> to vector<8x16xf32>
    %83 = vector.extract_strided_slice %80 {offsets = [0, 32], sizes = [8, 16], strides = [1, 1]} : vector<8x64xf32> to vector<8x16xf32>
    %84 = vector.extract_strided_slice %79 {offsets = [0, 48], sizes = [8, 16], strides = [1, 1]} : vector<8x64xf32> to vector<8x16xf32>
    %85 = arith.mulf %82, %45 : vector<8x16xf32>
    %86 = arith.mulf %81, %83 : vector<8x16xf32>
    %87 = arith.addf %85, %86 : vector<8x16xf32>
    %88 = math.tanh %87 : vector<8x16xf32>
    %89 = arith.mulf %84, %88 : vector<8x16xf32>
    %c0_53 = arith.constant 0 : index
    %c0_54 = arith.constant 0 : index
    %c0_55 = arith.constant 0 : index
    %90 = vector.load %arg3[%c0_53, %c0_54, %c0_55] : memref<1x64x1xf32, #tpu.memory_space<vmem>>, vector<1x8x1xf32>
    %91 = vector.shape_cast %90 : vector<1x8x1xf32> to vector<8x1xf32>
    %c0_56 = arith.constant 0 : index
    %c56 = arith.constant 56 : index
    %c0_57 = arith.constant 0 : index
    %92 = vector.load %arg3[%c0_56, %c56, %c0_57] : memref<1x64x1xf32, #tpu.memory_space<vmem>>, vector<1x8x1xf32>
    %93 = vector.shape_cast %92 : vector<1x8x1xf32> to vector<8x1xf32>
    %94 = vector.extract_strided_slice %67 {offsets = [0, 0], sizes = [8, 16], strides = [1, 1]} : vector<8x32xf32> to vector<8x16xf32>
    %95 = vector.broadcast %91 : vector<8x1xf32> to vector<8x16xf32>
    %96 = arith.mulf %94, %95 : vector<8x16xf32>
    %c0_58 = arith.constant 0 : index
    %c0_59 = arith.constant 0 : index
    %97 = vector.load %arg28[%c0_58, %c0_59] : memref<64x128xf32, #tpu.memory_space<vmem>>, vector<8x16xf32>
    tpu.vector_store %arg28[%c0_58, %c0_59], %96 {strides = array<i32>} : memref<64x128xf32, #tpu.memory_space<vmem>>, vector<8x16xf32>,
    %98 = vector.extract_strided_slice %67 {offsets = [0, 16], sizes = [8, 16], strides = [1, 1]} : vector<8x32xf32> to vector<8x16xf32>
    %99 = vector.broadcast %93 : vector<8x1xf32> to vector<8x16xf32>
    %100 = arith.mulf %98, %99 : vector<8x16xf32>
    %c56_60 = arith.constant 56 : index
    %c16 = arith.constant 16 : index
    %101 = vector.load %arg28[%c56_60, %c16] : memref<64x128xf32, #tpu.memory_space<vmem>>, vector<8x16xf32>
    tpu.vector_store %arg28[%c56_60, %c16], %100 {strides = array<i32>} : memref<64x128xf32, #tpu.memory_space<vmem>>, vector<8x16xf32>,
    %102 = vector.extract_strided_slice %89 {offsets = [0, 0], sizes = [8, 8], strides = [1, 1]} : vector<8x16xf32> to vector<8x8xf32>
    %103 = vector.broadcast %91 : vector<8x1xf32> to vector<8x8xf32>
    %104 = arith.mulf %102, %103 : vector<8x8xf32>
    %c0_61 = arith.constant 0 : index
    %c32 = arith.constant 32 : index
    %105 = vector.load %arg28[%c0_61, %c32] : memref<64x128xf32, #tpu.memory_space<vmem>>, vector<8x8xf32>
    tpu.vector_store %arg28[%c0_61, %c32], %104 {strides = array<i32>} : memref<64x128xf32, #tpu.memory_space<vmem>>, vector<8x8xf32>,
    %106 = vector.extract_strided_slice %89 {offsets = [0, 8], sizes = [8, 8], strides = [1, 1]} : vector<8x16xf32> to vector<8x8xf32>
    %107 = vector.broadcast %93 : vector<8x1xf32> to vector<8x8xf32>
    %108 = arith.mulf %106, %107 : vector<8x8xf32>
    %c56_62 = arith.constant 56 : index
    %c40 = arith.constant 40 : index
    %109 = vector.load %arg28[%c56_62, %c40] : memref<64x128xf32, #tpu.memory_space<vmem>>, vector<8x8xf32>
    tpu.vector_store %arg28[%c56_62, %c40], %108 {strides = array<i32>} : memref<64x128xf32, #tpu.memory_space<vmem>>, vector<8x8xf32>,
    %cst_63 = arith.constant dense<0.000000e+00> : vector<8x128xf32>
    %110 = tpu.matmul %67, %36, %cst_63 {dimension_numbers = #tpu.dot_dimension_numbers<[1], [0], [0], [1], [0, 0, 1, 1], [], []>} : vector<8x32xf32>, vector<32x128xf32>, vector<8x128xf32> -> vector<8x128xf32>
    %111 = vector.extract_strided_slice %23 {offsets = [8, 0], sizes = [8, 128], strides = [1, 1]} : vector<64x128xf32> to vector<8x128xf32>
    %112 = vector.extract_strided_slice %23 {offsets = [48, 0], sizes = [8, 128], strides = [1, 1]} : vector<64x128xf32> to vector<8x128xf32>
    %113 = vector.shape_cast %32 : vector<1x128xi1> to vector<1x128xi1>
    %114 = vector.broadcast %113 : vector<1x128xi1> to vector<8x128xi1>
    %115 = arith.select %114, %111, %112 : vector<8x128xi1>, vector<8x128xf32>
    %116 = arith.addf %110, %115 : vector<8x128xf32>
    %117 = arith.negf %116 : vector<8x128xf32>
    %118 = math.exp %117 : vector<8x128xf32>
    %cst_64 = arith.constant 1.000000e+00 : f32
    %119 = vector.broadcast %cst_64 : f32 to vector<8x128xf32>
    %120 = arith.addf %119, %118 : vector<8x128xf32>
    %121 = arith.divf %119, %120 : vector<8x128xf32>
    %122 = math.tanh %116 : vector<8x128xf32>
    %123 = vector.extract_strided_slice %121 {offsets = [0, 0], sizes = [8, 32], strides = [1, 1]} : vector<8x128xf32> to vector<8x32xf32>
    %124 = vector.extract_strided_slice %121 {offsets = [0, 32], sizes = [8, 32], strides = [1, 1]} : vector<8x128xf32> to vector<8x32xf32>
    %125 = vector.extract_strided_slice %122 {offsets = [0, 64], sizes = [8, 32], strides = [1, 1]} : vector<8x128xf32> to vector<8x32xf32>
    %126 = vector.extract_strided_slice %121 {offsets = [0, 96], sizes = [8, 32], strides = [1, 1]} : vector<8x128xf32> to vector<8x32xf32>
    %127 = arith.mulf %124, %65 : vector<8x32xf32>
    %128 = arith.mulf %123, %125 : vector<8x32xf32>
    %129 = arith.addf %127, %128 : vector<8x32xf32>
    %130 = math.tanh %129 : vector<8x32xf32>
    %131 = arith.mulf %126, %130 : vector<8x32xf32>
    %cst_65 = arith.constant dense<0.000000e+00> : vector<8x64xf32>
    %132 = tpu.matmul %89, %37, %cst_65 {dimension_numbers = #tpu.dot_dimension_numbers<[1], [0], [0], [1], [0, 0, 1, 1], [], []>} : vector<8x16xf32>, vector<16x64xf32>, vector<8x64xf32> -> vector<8x64xf32>
    %133 = vector.extract_strided_slice %29 {offsets = [8, 0], sizes = [8, 64], strides = [1, 1]} : vector<64x64xf32> to vector<8x64xf32>
    %134 = vector.extract_strided_slice %29 {offsets = [48, 0], sizes = [8, 64], strides = [1, 1]} : vector<64x64xf32> to vector<8x64xf32>
    %135 = vector.shape_cast %35 : vector<1x64xi1> to vector<1x64xi1>
    %136 = vector.broadcast %135 : vector<1x64xi1> to vector<8x64xi1>
    %137 = arith.select %136, %133, %134 : vector<8x64xi1>, vector<8x64xf32>
    %138 = arith.addf %132, %137 : vector<8x64xf32>
    %139 = arith.negf %138 : vector<8x64xf32>
    %140 = math.exp %139 : vector<8x64xf32>
    %cst_66 = arith.constant 1.000000e+00 : f32
    %141 = vector.broadcast %cst_66 : f32 to vector<8x64xf32>
    %142 = arith.addf %141, %140 : vector<8x64xf32>
    %143 = arith.divf %141, %142 : vector<8x64xf32>
    %144 = math.tanh %138 : vector<8x64xf32>
    %145 = vector.extract_strided_slice %143 {offsets = [0, 0], sizes = [8, 16], strides = [1, 1]} : vector<8x64xf32> to vector<8x16xf32>
    %146 = vector.extract_strided_slice %143 {offsets = [0, 16], sizes = [8, 16], strides = [1, 1]} : vector<8x64xf32> to vector<8x16xf32>
    %147 = vector.extract_strided_slice %144 {offsets = [0, 32], sizes = [8, 16], strides = [1, 1]} : vector<8x64xf32> to vector<8x16xf32>
    %148 = vector.extract_strided_slice %143 {offsets = [0, 48], sizes = [8, 16], strides = [1, 1]} : vector<8x64xf32> to vector<8x16xf32>
    %149 = arith.mulf %146, %87 : vector<8x16xf32>
    %150 = arith.mulf %145, %147 : vector<8x16xf32>
    %151 = arith.addf %149, %150 : vector<8x16xf32>
    %152 = math.tanh %151 : vector<8x16xf32>
    %153 = arith.mulf %148, %152 : vector<8x16xf32>
    %c0_67 = arith.constant 0 : index
    %c8 = arith.constant 8 : index
    %c0_68 = arith.constant 0 : index
    %154 = vector.load %arg3[%c0_67, %c8, %c0_68] : memref<1x64x1xf32, #tpu.memory_space<vmem>>, vector<1x8x1xf32>
    %155 = vector.shape_cast %154 : vector<1x8x1xf32> to vector<8x1xf32>
    %c0_69 = arith.constant 0 : index
    %c48 = arith.constant 48 : index
    %c0_70 = arith.constant 0 : index
    %156 = vector.load %arg3[%c0_69, %c48, %c0_70] : memref<1x64x1xf32, #tpu.memory_space<vmem>>, vector<1x8x1xf32>
    %157 = vector.shape_cast %156 : vector<1x8x1xf32> to vector<8x1xf32>
    %158 = vector.extract_strided_slice %131 {offsets = [0, 0], sizes = [8, 16], strides = [1, 1]} : vector<8x32xf32> to vector<8x16xf32>
    %159 = vector.broadcast %155 : vector<8x1xf32> to vector<8x16xf32>
    %160 = arith.mulf %158, %159 : vector<8x16xf32>
    %c8_71 = arith.constant 8 : index
    %c0_72 = arith.constant 0 : index
    %161 = vector.load %arg28[%c8_71, %c0_72] : memref<64x128xf32, #tpu.memory_space<vmem>>, vector<8x16xf32>
    tpu.vector_store %arg28[%c8_71, %c0_72], %160 {strides = array<i32>} : memref<64x128xf32, #tpu.memory_space<vmem>>, vector<8x16xf32>,
    %162 = vector.extract_strided_slice %131 {offsets = [0, 16], sizes = [8, 16], strides = [1, 1]} : vector<8x32xf32> to vector<8x16xf32>
    %163 = vector.broadcast %157 : vector<8x1xf32> to vector<8x16xf32>
    %164 = arith.mulf %162, %163 : vector<8x16xf32>
    %c48_73 = arith.constant 48 : index
    %c16_74 = arith.constant 16 : index
    %165 = vector.load %arg28[%c48_73, %c16_74] : memref<64x128xf32, #tpu.memory_space<vmem>>, vector<8x16xf32>
    tpu.vector_store %arg28[%c48_73, %c16_74], %164 {strides = array<i32>} : memref<64x128xf32, #tpu.memory_space<vmem>>, vector<8x16xf32>,
    %166 = vector.extract_strided_slice %153 {offsets = [0, 0], sizes = [8, 8], strides = [1, 1]} : vector<8x16xf32> to vector<8x8xf32>
    %167 = vector.broadcast %155 : vector<8x1xf32> to vector<8x8xf32>
    %168 = arith.mulf %166, %167 : vector<8x8xf32>
    %c8_75 = arith.constant 8 : index
    %c32_76 = arith.constant 32 : index
    %169 = vector.load %arg28[%c8_75, %c32_76] : memref<64x128xf32, #tpu.memory_space<vmem>>, vector<8x8xf32>
    tpu.vector_store %arg28[%c8_75, %c32_76], %168 {strides = array<i32>} : memref<64x128xf32, #tpu.memory_space<vmem>>, vector<8x8xf32>,
    %170 = vector.extract_strided_slice %153 {offsets = [0, 8], sizes = [8, 8], strides = [1, 1]} : vector<8x16xf32> to vector<8x8xf32>
    %171 = vector.broadcast %157 : vector<8x1xf32> to vector<8x8xf32>
    %172 = arith.mulf %170, %171 : vector<8x8xf32>
    %c48_77 = arith.constant 48 : index
    %c40_78 = arith.constant 40 : index
    %173 = vector.load %arg28[%c48_77, %c40_78] : memref<64x128xf32, #tpu.memory_space<vmem>>, vector<8x8xf32>
    tpu.vector_store %arg28[%c48_77, %c40_78], %172 {strides = array<i32>} : memref<64x128xf32, #tpu.memory_space<vmem>>, vector<8x8xf32>,
    %cst_79 = arith.constant dense<0.000000e+00> : vector<8x128xf32>
    %174 = tpu.matmul %131, %36, %cst_79 {dimension_numbers = #tpu.dot_dimension_numbers<[1], [0], [0], [1], [0, 0, 1, 1], [], []>} : vector<8x32xf32>, vector<32x128xf32>, vector<8x128xf32> -> vector<8x128xf32>
    %175 = vector.extract_strided_slice %23 {offsets = [16, 0], sizes = [8, 128], strides = [1, 1]} : vector<64x128xf32> to vector<8x128xf32>
    %176 = vector.extract_strided_slice %23 {offsets = [40, 0], sizes = [8, 128], strides = [1, 1]} : vector<64x128xf32> to vector<8x128xf32>
    %177 = vector.shape_cast %32 : vector<1x128xi1> to vector<1x128xi1>
    %178 = vector.broadcast %177 : vector<1x128xi1> to vector<8x128xi1>
    %179 = arith.select %178, %175, %176 : vector<8x128xi1>, vector<8x128xf32>
    %180 = arith.addf %174, %179 : vector<8x128xf32>
    %181 = arith.negf %180 : vector<8x128xf32>
    %182 = math.exp %181 : vector<8x128xf32>
    %cst_80 = arith.constant 1.000000e+00 : f32
    %183 = vector.broadcast %cst_80 : f32 to vector<8x128xf32>
    %184 = arith.addf %183, %182 : vector<8x128xf32>
    %185 = arith.divf %183, %184 : vector<8x128xf32>
    %186 = math.tanh %180 : vector<8x128xf32>
    %187 = vector.extract_strided_slice %185 {offsets = [0, 0], sizes = [8, 32], strides = [1, 1]} : vector<8x128xf32> to vector<8x32xf32>
    %188 = vector.extract_strided_slice %185 {offsets = [0, 32], sizes = [8, 32], strides = [1, 1]} : vector<8x128xf32> to vector<8x32xf32>
    %189 = vector.extract_strided_slice %186 {offsets = [0, 64], sizes = [8, 32], strides = [1, 1]} : vector<8x128xf32> to vector<8x32xf32>
    %190 = vector.extract_strided_slice %185 {offsets = [0, 96], sizes = [8, 32], strides = [1, 1]} : vector<8x128xf32> to vector<8x32xf32>
    %191 = arith.mulf %188, %129 : vector<8x32xf32>
    %192 = arith.mulf %187, %189 : vector<8x32xf32>
    %193 = arith.addf %191, %192 : vector<8x32xf32>
    %194 = math.tanh %193 : vector<8x32xf32>
    %195 = arith.mulf %190, %194 : vector<8x32xf32>
    %cst_81 = arith.constant dense<0.000000e+00> : vector<8x64xf32>
    %196 = tpu.matmul %153, %37, %cst_81 {dimension_numbers = #tpu.dot_dimension_numbers<[1], [0], [0], [1], [0, 0, 1, 1], [], []>} : vector<8x16xf32>, vector<16x64xf32>, vector<8x64xf32> -> vector<8x64xf32>
    %197 = vector.extract_strided_slice %29 {offsets = [16, 0], sizes = [8, 64], strides = [1, 1]} : vector<64x64xf32> to vector<8x64xf32>
    %198 = vector.extract_strided_slice %29 {offsets = [40, 0], sizes = [8, 64], strides = [1, 1]} : vector<64x64xf32> to vector<8x64xf32>
    %199 = vector.shape_cast %35 : vector<1x64xi1> to vector<1x64xi1>
    %200 = vector.broadcast %199 : vector<1x64xi1> to vector<8x64xi1>
    %201 = arith.select %200, %197, %198 : vector<8x64xi1>, vector<8x64xf32>
    %202 = arith.addf %196, %201 : vector<8x64xf32>
    %203 = arith.negf %202 : vector<8x64xf32>
    %204 = math.exp %203 : vector<8x64xf32>
    %cst_82 = arith.constant 1.000000e+00 : f32
    %205 = vector.broadcast %cst_82 : f32 to vector<8x64xf32>
    %206 = arith.addf %205, %204 : vector<8x64xf32>
    %207 = arith.divf %205, %206 : vector<8x64xf32>
    %208 = math.tanh %202 : vector<8x64xf32>
    %209 = vector.extract_strided_slice %207 {offsets = [0, 0], sizes = [8, 16], strides = [1, 1]} : vector<8x64xf32> to vector<8x16xf32>
    %210 = vector.extract_strided_slice %207 {offsets = [0, 16], sizes = [8, 16], strides = [1, 1]} : vector<8x64xf32> to vector<8x16xf32>
    %211 = vector.extract_strided_slice %208 {offsets = [0, 32], sizes = [8, 16], strides = [1, 1]} : vector<8x64xf32> to vector<8x16xf32>
    %212 = vector.extract_strided_slice %207 {offsets = [0, 48], sizes = [8, 16], strides = [1, 1]} : vector<8x64xf32> to vector<8x16xf32>
    %213 = arith.mulf %210, %151 : vector<8x16xf32>
    %214 = arith.mulf %209, %211 : vector<8x16xf32>
    %215 = arith.addf %213, %214 : vector<8x16xf32>
    %216 = math.tanh %215 : vector<8x16xf32>
    %217 = arith.mulf %212, %216 : vector<8x16xf32>
    %c0_83 = arith.constant 0 : index
    %c16_84 = arith.constant 16 : index
    %c0_85 = arith.constant 0 : index
    %218 = vector.load %arg3[%c0_83, %c16_84, %c0_85] : memref<1x64x1xf32, #tpu.memory_space<vmem>>, vector<1x8x1xf32>
    %219 = vector.shape_cast %218 : vector<1x8x1xf32> to vector<8x1xf32>
    %c0_86 = arith.constant 0 : index
    %c40_87 = arith.constant 40 : index
    %c0_88 = arith.constant 0 : index
    %220 = vector.load %arg3[%c0_86, %c40_87, %c0_88] : memref<1x64x1xf32, #tpu.memory_space<vmem>>, vector<1x8x1xf32>
    %221 = vector.shape_cast %220 : vector<1x8x1xf32> to vector<8x1xf32>
    %222 = vector.extract_strided_slice %195 {offsets = [0, 0], sizes = [8, 16], strides = [1, 1]} : vector<8x32xf32> to vector<8x16xf32>
    %223 = vector.broadcast %219 : vector<8x1xf32> to vector<8x16xf32>
    %224 = arith.mulf %222, %223 : vector<8x16xf32>
    %c16_89 = arith.constant 16 : index
    %c0_90 = arith.constant 0 : index
    %225 = vector.load %arg28[%c16_89, %c0_90] : memref<64x128xf32, #tpu.memory_space<vmem>>, vector<8x16xf32>
    tpu.vector_store %arg28[%c16_89, %c0_90], %224 {strides = array<i32>} : memref<64x128xf32, #tpu.memory_space<vmem>>, vector<8x16xf32>,
    %226 = vector.extract_strided_slice %195 {offsets = [0, 16], sizes = [8, 16], strides = [1, 1]} : vector<8x32xf32> to vector<8x16xf32>
    %227 = vector.broadcast %221 : vector<8x1xf32> to vector<8x16xf32>
    %228 = arith.mulf %226, %227 : vector<8x16xf32>
    %c40_91 = arith.constant 40 : index
    %c16_92 = arith.constant 16 : index
    %229 = vector.load %arg28[%c40_91, %c16_92] : memref<64x128xf32, #tpu.memory_space<vmem>>, vector<8x16xf32>
    tpu.vector_store %arg28[%c40_91, %c16_92], %228 {strides = array<i32>} : memref<64x128xf32, #tpu.memory_space<vmem>>, vector<8x16xf32>,
    %230 = vector.extract_strided_slice %217 {offsets = [0, 0], sizes = [8, 8], strides = [1, 1]} : vector<8x16xf32> to vector<8x8xf32>
    %231 = vector.broadcast %219 : vector<8x1xf32> to vector<8x8xf32>
    %232 = arith.mulf %230, %231 : vector<8x8xf32>
    %c16_93 = arith.constant 16 : index
    %c32_94 = arith.constant 32 : index
    %233 = vector.load %arg28[%c16_93, %c32_94] : memref<64x128xf32, #tpu.memory_space<vmem>>, vector<8x8xf32>
    tpu.vector_store %arg28[%c16_93, %c32_94], %232 {strides = array<i32>} : memref<64x128xf32, #tpu.memory_space<vmem>>, vector<8x8xf32>,
    %234 = vector.extract_strided_slice %217 {offsets = [0, 8], sizes = [8, 8], strides = [1, 1]} : vector<8x16xf32> to vector<8x8xf32>
    %235 = vector.broadcast %221 : vector<8x1xf32> to vector<8x8xf32>
    %236 = arith.mulf %234, %235 : vector<8x8xf32>
    %c40_95 = arith.constant 40 : index
    %c40_96 = arith.constant 40 : index
    %237 = vector.load %arg28[%c40_95, %c40_96] : memref<64x128xf32, #tpu.memory_space<vmem>>, vector<8x8xf32>
    tpu.vector_store %arg28[%c40_95, %c40_96], %236 {strides = array<i32>} : memref<64x128xf32, #tpu.memory_space<vmem>>, vector<8x8xf32>,
    %cst_97 = arith.constant dense<0.000000e+00> : vector<8x128xf32>
    %238 = tpu.matmul %195, %36, %cst_97 {dimension_numbers = #tpu.dot_dimension_numbers<[1], [0], [0], [1], [0, 0, 1, 1], [], []>} : vector<8x32xf32>, vector<32x128xf32>, vector<8x128xf32> -> vector<8x128xf32>
    %239 = vector.extract_strided_slice %23 {offsets = [24, 0], sizes = [8, 128], strides = [1, 1]} : vector<64x128xf32> to vector<8x128xf32>
    %240 = vector.extract_strided_slice %23 {offsets = [32, 0], sizes = [8, 128], strides = [1, 1]} : vector<64x128xf32> to vector<8x128xf32>
    %241 = vector.shape_cast %32 : vector<1x128xi1> to vector<1x128xi1>
    %242 = vector.broadcast %241 : vector<1x128xi1> to vector<8x128xi1>
    %243 = arith.select %242, %239, %240 : vector<8x128xi1>, vector<8x128xf32>
    %244 = arith.addf %238, %243 : vector<8x128xf32>
    %245 = arith.negf %244 : vector<8x128xf32>
    %246 = math.exp %245 : vector<8x128xf32>
    %cst_98 = arith.constant 1.000000e+00 : f32
    %247 = vector.broadcast %cst_98 : f32 to vector<8x128xf32>
    %248 = arith.addf %247, %246 : vector<8x128xf32>
    %249 = arith.divf %247, %248 : vector<8x128xf32>
    %250 = math.tanh %244 : vector<8x128xf32>
    %251 = vector.extract_strided_slice %249 {offsets = [0, 0], sizes = [8, 32], strides = [1, 1]} : vector<8x128xf32> to vector<8x32xf32>
    %252 = vector.extract_strided_slice %249 {offsets = [0, 32], sizes = [8, 32], strides = [1, 1]} : vector<8x128xf32> to vector<8x32xf32>
    %253 = vector.extract_strided_slice %250 {offsets = [0, 64], sizes = [8, 32], strides = [1, 1]} : vector<8x128xf32> to vector<8x32xf32>
    %254 = vector.extract_strided_slice %249 {offsets = [0, 96], sizes = [8, 32], strides = [1, 1]} : vector<8x128xf32> to vector<8x32xf32>
    %255 = arith.mulf %252, %193 : vector<8x32xf32>
    %256 = arith.mulf %251, %253 : vector<8x32xf32>
    %257 = arith.addf %255, %256 : vector<8x32xf32>
    %258 = math.tanh %257 : vector<8x32xf32>
    %259 = arith.mulf %254, %258 : vector<8x32xf32>
    %cst_99 = arith.constant dense<0.000000e+00> : vector<8x64xf32>
    %260 = tpu.matmul %217, %37, %cst_99 {dimension_numbers = #tpu.dot_dimension_numbers<[1], [0], [0], [1], [0, 0, 1, 1], [], []>} : vector<8x16xf32>, vector<16x64xf32>, vector<8x64xf32> -> vector<8x64xf32>
    %261 = vector.extract_strided_slice %29 {offsets = [24, 0], sizes = [8, 64], strides = [1, 1]} : vector<64x64xf32> to vector<8x64xf32>
    %262 = vector.extract_strided_slice %29 {offsets = [32, 0], sizes = [8, 64], strides = [1, 1]} : vector<64x64xf32> to vector<8x64xf32>
    %263 = vector.shape_cast %35 : vector<1x64xi1> to vector<1x64xi1>
    %264 = vector.broadcast %263 : vector<1x64xi1> to vector<8x64xi1>
    %265 = arith.select %264, %261, %262 : vector<8x64xi1>, vector<8x64xf32>
    %266 = arith.addf %260, %265 : vector<8x64xf32>
    %267 = arith.negf %266 : vector<8x64xf32>
    %268 = math.exp %267 : vector<8x64xf32>
    %cst_100 = arith.constant 1.000000e+00 : f32
    %269 = vector.broadcast %cst_100 : f32 to vector<8x64xf32>
    %270 = arith.addf %269, %268 : vector<8x64xf32>
    %271 = arith.divf %269, %270 : vector<8x64xf32>
    %272 = math.tanh %266 : vector<8x64xf32>
    %273 = vector.extract_strided_slice %271 {offsets = [0, 0], sizes = [8, 16], strides = [1, 1]} : vector<8x64xf32> to vector<8x16xf32>
    %274 = vector.extract_strided_slice %271 {offsets = [0, 16], sizes = [8, 16], strides = [1, 1]} : vector<8x64xf32> to vector<8x16xf32>
    %275 = vector.extract_strided_slice %272 {offsets = [0, 32], sizes = [8, 16], strides = [1, 1]} : vector<8x64xf32> to vector<8x16xf32>
    %276 = vector.extract_strided_slice %271 {offsets = [0, 48], sizes = [8, 16], strides = [1, 1]} : vector<8x64xf32> to vector<8x16xf32>
    %277 = arith.mulf %274, %215 : vector<8x16xf32>
    %278 = arith.mulf %273, %275 : vector<8x16xf32>
    %279 = arith.addf %277, %278 : vector<8x16xf32>
    %280 = math.tanh %279 : vector<8x16xf32>
    %281 = arith.mulf %276, %280 : vector<8x16xf32>
    %c0_101 = arith.constant 0 : index
    %c24 = arith.constant 24 : index
    %c0_102 = arith.constant 0 : index
    %282 = vector.load %arg3[%c0_101, %c24, %c0_102] : memref<1x64x1xf32, #tpu.memory_space<vmem>>, vector<1x8x1xf32>
    %283 = vector.shape_cast %282 : vector<1x8x1xf32> to vector<8x1xf32>
    %c0_103 = arith.constant 0 : index
    %c32_104 = arith.constant 32 : index
    %c0_105 = arith.constant 0 : index
    %284 = vector.load %arg3[%c0_103, %c32_104, %c0_105] : memref<1x64x1xf32, #tpu.memory_space<vmem>>, vector<1x8x1xf32>
    %285 = vector.shape_cast %284 : vector<1x8x1xf32> to vector<8x1xf32>
    %286 = vector.extract_strided_slice %259 {offsets = [0, 0], sizes = [8, 16], strides = [1, 1]} : vector<8x32xf32> to vector<8x16xf32>
    %287 = vector.broadcast %283 : vector<8x1xf32> to vector<8x16xf32>
    %288 = arith.mulf %286, %287 : vector<8x16xf32>
    %c24_106 = arith.constant 24 : index
    %c0_107 = arith.constant 0 : index
    %289 = vector.load %arg28[%c24_106, %c0_107] : memref<64x128xf32, #tpu.memory_space<vmem>>, vector<8x16xf32>
    tpu.vector_store %arg28[%c24_106, %c0_107], %288 {strides = array<i32>} : memref<64x128xf32, #tpu.memory_space<vmem>>, vector<8x16xf32>,
    %290 = vector.extract_strided_slice %259 {offsets = [0, 16], sizes = [8, 16], strides = [1, 1]} : vector<8x32xf32> to vector<8x16xf32>
    %291 = vector.broadcast %285 : vector<8x1xf32> to vector<8x16xf32>
    %292 = arith.mulf %290, %291 : vector<8x16xf32>
    %c32_108 = arith.constant 32 : index
    %c16_109 = arith.constant 16 : index
    %293 = vector.load %arg28[%c32_108, %c16_109] : memref<64x128xf32, #tpu.memory_space<vmem>>, vector<8x16xf32>
    tpu.vector_store %arg28[%c32_108, %c16_109], %292 {strides = array<i32>} : memref<64x128xf32, #tpu.memory_space<vmem>>, vector<8x16xf32>,
    %294 = vector.extract_strided_slice %281 {offsets = [0, 0], sizes = [8, 8], strides = [1, 1]} : vector<8x16xf32> to vector<8x8xf32>
    %295 = vector.broadcast %283 : vector<8x1xf32> to vector<8x8xf32>
    %296 = arith.mulf %294, %295 : vector<8x8xf32>
    %c24_110 = arith.constant 24 : index
    %c32_111 = arith.constant 32 : index
    %297 = vector.load %arg28[%c24_110, %c32_111] : memref<64x128xf32, #tpu.memory_space<vmem>>, vector<8x8xf32>
    tpu.vector_store %arg28[%c24_110, %c32_111], %296 {strides = array<i32>} : memref<64x128xf32, #tpu.memory_space<vmem>>, vector<8x8xf32>,
    %298 = vector.extract_strided_slice %281 {offsets = [0, 8], sizes = [8, 8], strides = [1, 1]} : vector<8x16xf32> to vector<8x8xf32>
    %299 = vector.broadcast %285 : vector<8x1xf32> to vector<8x8xf32>
    %300 = arith.mulf %298, %299 : vector<8x8xf32>
    %c32_112 = arith.constant 32 : index
    %c40_113 = arith.constant 40 : index
    %301 = vector.load %arg28[%c32_112, %c40_113] : memref<64x128xf32, #tpu.memory_space<vmem>>, vector<8x8xf32>
    tpu.vector_store %arg28[%c32_112, %c40_113], %300 {strides = array<i32>} : memref<64x128xf32, #tpu.memory_space<vmem>>, vector<8x8xf32>,
    %cst_114 = arith.constant dense<0.000000e+00> : vector<8x128xf32>
    %302 = tpu.matmul %259, %36, %cst_114 {dimension_numbers = #tpu.dot_dimension_numbers<[1], [0], [0], [1], [0, 0, 1, 1], [], []>} : vector<8x32xf32>, vector<32x128xf32>, vector<8x128xf32> -> vector<8x128xf32>
    %303 = vector.extract_strided_slice %23 {offsets = [32, 0], sizes = [8, 128], strides = [1, 1]} : vector<64x128xf32> to vector<8x128xf32>
    %304 = vector.extract_strided_slice %23 {offsets = [24, 0], sizes = [8, 128], strides = [1, 1]} : vector<64x128xf32> to vector<8x128xf32>
    %305 = vector.shape_cast %32 : vector<1x128xi1> to vector<1x128xi1>
    %306 = vector.broadcast %305 : vector<1x128xi1> to vector<8x128xi1>
    %307 = arith.select %306, %303, %304 : vector<8x128xi1>, vector<8x128xf32>
    %308 = arith.addf %302, %307 : vector<8x128xf32>
    %309 = arith.negf %308 : vector<8x128xf32>
    %310 = math.exp %309 : vector<8x128xf32>
    %cst_115 = arith.constant 1.000000e+00 : f32
    %311 = vector.broadcast %cst_115 : f32 to vector<8x128xf32>
    %312 = arith.addf %311, %310 : vector<8x128xf32>
    %313 = arith.divf %311, %312 : vector<8x128xf32>
    %314 = math.tanh %308 : vector<8x128xf32>
    %315 = vector.extract_strided_slice %313 {offsets = [0, 0], sizes = [8, 32], strides = [1, 1]} : vector<8x128xf32> to vector<8x32xf32>
    %316 = vector.extract_strided_slice %313 {offsets = [0, 32], sizes = [8, 32], strides = [1, 1]} : vector<8x128xf32> to vector<8x32xf32>
    %317 = vector.extract_strided_slice %314 {offsets = [0, 64], sizes = [8, 32], strides = [1, 1]} : vector<8x128xf32> to vector<8x32xf32>
    %318 = vector.extract_strided_slice %313 {offsets = [0, 96], sizes = [8, 32], strides = [1, 1]} : vector<8x128xf32> to vector<8x32xf32>
    %319 = arith.mulf %316, %257 : vector<8x32xf32>
    %320 = arith.mulf %315, %317 : vector<8x32xf32>
    %321 = arith.addf %319, %320 : vector<8x32xf32>
    %322 = math.tanh %321 : vector<8x32xf32>
    %323 = arith.mulf %318, %322 : vector<8x32xf32>
    %cst_116 = arith.constant dense<0.000000e+00> : vector<8x64xf32>
    %324 = tpu.matmul %281, %37, %cst_116 {dimension_numbers = #tpu.dot_dimension_numbers<[1], [0], [0], [1], [0, 0, 1, 1], [], []>} : vector<8x16xf32>, vector<16x64xf32>, vector<8x64xf32> -> vector<8x64xf32>
    %325 = vector.extract_strided_slice %29 {offsets = [32, 0], sizes = [8, 64], strides = [1, 1]} : vector<64x64xf32> to vector<8x64xf32>
    %326 = vector.extract_strided_slice %29 {offsets = [24, 0], sizes = [8, 64], strides = [1, 1]} : vector<64x64xf32> to vector<8x64xf32>
    %327 = vector.shape_cast %35 : vector<1x64xi1> to vector<1x64xi1>
    %328 = vector.broadcast %327 : vector<1x64xi1> to vector<8x64xi1>
    %329 = arith.select %328, %325, %326 : vector<8x64xi1>, vector<8x64xf32>
    %330 = arith.addf %324, %329 : vector<8x64xf32>
    %331 = arith.negf %330 : vector<8x64xf32>
    %332 = math.exp %331 : vector<8x64xf32>
    %cst_117 = arith.constant 1.000000e+00 : f32
    %333 = vector.broadcast %cst_117 : f32 to vector<8x64xf32>
    %334 = arith.addf %333, %332 : vector<8x64xf32>
    %335 = arith.divf %333, %334 : vector<8x64xf32>
    %336 = math.tanh %330 : vector<8x64xf32>
    %337 = vector.extract_strided_slice %335 {offsets = [0, 0], sizes = [8, 16], strides = [1, 1]} : vector<8x64xf32> to vector<8x16xf32>
    %338 = vector.extract_strided_slice %335 {offsets = [0, 16], sizes = [8, 16], strides = [1, 1]} : vector<8x64xf32> to vector<8x16xf32>
    %339 = vector.extract_strided_slice %336 {offsets = [0, 32], sizes = [8, 16], strides = [1, 1]} : vector<8x64xf32> to vector<8x16xf32>
    %340 = vector.extract_strided_slice %335 {offsets = [0, 48], sizes = [8, 16], strides = [1, 1]} : vector<8x64xf32> to vector<8x16xf32>
    %341 = arith.mulf %338, %279 : vector<8x16xf32>
    %342 = arith.mulf %337, %339 : vector<8x16xf32>
    %343 = arith.addf %341, %342 : vector<8x16xf32>
    %344 = math.tanh %343 : vector<8x16xf32>
    %345 = arith.mulf %340, %344 : vector<8x16xf32>
    %c0_118 = arith.constant 0 : index
    %c32_119 = arith.constant 32 : index
    %c0_120 = arith.constant 0 : index
    %346 = vector.load %arg3[%c0_118, %c32_119, %c0_120] : memref<1x64x1xf32, #tpu.memory_space<vmem>>, vector<1x8x1xf32>
    %347 = vector.shape_cast %346 : vector<1x8x1xf32> to vector<8x1xf32>
    %c0_121 = arith.constant 0 : index
    %c24_122 = arith.constant 24 : index
    %c0_123 = arith.constant 0 : index
    %348 = vector.load %arg3[%c0_121, %c24_122, %c0_123] : memref<1x64x1xf32, #tpu.memory_space<vmem>>, vector<1x8x1xf32>
    %349 = vector.shape_cast %348 : vector<1x8x1xf32> to vector<8x1xf32>
    %350 = vector.extract_strided_slice %323 {offsets = [0, 0], sizes = [8, 16], strides = [1, 1]} : vector<8x32xf32> to vector<8x16xf32>
    %351 = vector.broadcast %347 : vector<8x1xf32> to vector<8x16xf32>
    %352 = arith.mulf %350, %351 : vector<8x16xf32>
    %c32_124 = arith.constant 32 : index
    %c0_125 = arith.constant 0 : index
    %353 = vector.load %arg28[%c32_124, %c0_125] : memref<64x128xf32, #tpu.memory_space<vmem>>, vector<8x16xf32>
    tpu.vector_store %arg28[%c32_124, %c0_125], %352 {strides = array<i32>} : memref<64x128xf32, #tpu.memory_space<vmem>>, vector<8x16xf32>,
    %354 = vector.extract_strided_slice %323 {offsets = [0, 16], sizes = [8, 16], strides = [1, 1]} : vector<8x32xf32> to vector<8x16xf32>
    %355 = vector.broadcast %349 : vector<8x1xf32> to vector<8x16xf32>
    %356 = arith.mulf %354, %355 : vector<8x16xf32>
    %c24_126 = arith.constant 24 : index
    %c16_127 = arith.constant 16 : index
    %357 = vector.load %arg28[%c24_126, %c16_127] : memref<64x128xf32, #tpu.memory_space<vmem>>, vector<8x16xf32>
    tpu.vector_store %arg28[%c24_126, %c16_127], %356 {strides = array<i32>} : memref<64x128xf32, #tpu.memory_space<vmem>>, vector<8x16xf32>,
    %358 = vector.extract_strided_slice %345 {offsets = [0, 0], sizes = [8, 8], strides = [1, 1]} : vector<8x16xf32> to vector<8x8xf32>
    %359 = vector.broadcast %347 : vector<8x1xf32> to vector<8x8xf32>
    %360 = arith.mulf %358, %359 : vector<8x8xf32>
    %c32_128 = arith.constant 32 : index
    %c32_129 = arith.constant 32 : index
    %361 = vector.load %arg28[%c32_128, %c32_129] : memref<64x128xf32, #tpu.memory_space<vmem>>, vector<8x8xf32>
    tpu.vector_store %arg28[%c32_128, %c32_129], %360 {strides = array<i32>} : memref<64x128xf32, #tpu.memory_space<vmem>>, vector<8x8xf32>,
    %362 = vector.extract_strided_slice %345 {offsets = [0, 8], sizes = [8, 8], strides = [1, 1]} : vector<8x16xf32> to vector<8x8xf32>
    %363 = vector.broadcast %349 : vector<8x1xf32> to vector<8x8xf32>
    %364 = arith.mulf %362, %363 : vector<8x8xf32>
    %c24_130 = arith.constant 24 : index
    %c40_131 = arith.constant 40 : index
    %365 = vector.load %arg28[%c24_130, %c40_131] : memref<64x128xf32, #tpu.memory_space<vmem>>, vector<8x8xf32>
    tpu.vector_store %arg28[%c24_130, %c40_131], %364 {strides = array<i32>} : memref<64x128xf32, #tpu.memory_space<vmem>>, vector<8x8xf32>,
    %cst_132 = arith.constant dense<0.000000e+00> : vector<8x128xf32>
    %366 = tpu.matmul %323, %36, %cst_132 {dimension_numbers = #tpu.dot_dimension_numbers<[1], [0], [0], [1], [0, 0, 1, 1], [], []>} : vector<8x32xf32>, vector<32x128xf32>, vector<8x128xf32> -> vector<8x128xf32>
    %367 = vector.extract_strided_slice %23 {offsets = [40, 0], sizes = [8, 128], strides = [1, 1]} : vector<64x128xf32> to vector<8x128xf32>
    %368 = vector.extract_strided_slice %23 {offsets = [16, 0], sizes = [8, 128], strides = [1, 1]} : vector<64x128xf32> to vector<8x128xf32>
    %369 = vector.shape_cast %32 : vector<1x128xi1> to vector<1x128xi1>
    %370 = vector.broadcast %369 : vector<1x128xi1> to vector<8x128xi1>
    %371 = arith.select %370, %367, %368 : vector<8x128xi1>, vector<8x128xf32>
    %372 = arith.addf %366, %371 : vector<8x128xf32>
    %373 = arith.negf %372 : vector<8x128xf32>
    %374 = math.exp %373 : vector<8x128xf32>
    %cst_133 = arith.constant 1.000000e+00 : f32
    %375 = vector.broadcast %cst_133 : f32 to vector<8x128xf32>
    %376 = arith.addf %375, %374 : vector<8x128xf32>
    %377 = arith.divf %375, %376 : vector<8x128xf32>
    %378 = math.tanh %372 : vector<8x128xf32>
    %379 = vector.extract_strided_slice %377 {offsets = [0, 0], sizes = [8, 32], strides = [1, 1]} : vector<8x128xf32> to vector<8x32xf32>
    %380 = vector.extract_strided_slice %377 {offsets = [0, 32], sizes = [8, 32], strides = [1, 1]} : vector<8x128xf32> to vector<8x32xf32>
    %381 = vector.extract_strided_slice %378 {offsets = [0, 64], sizes = [8, 32], strides = [1, 1]} : vector<8x128xf32> to vector<8x32xf32>
    %382 = vector.extract_strided_slice %377 {offsets = [0, 96], sizes = [8, 32], strides = [1, 1]} : vector<8x128xf32> to vector<8x32xf32>
    %383 = arith.mulf %380, %321 : vector<8x32xf32>
    %384 = arith.mulf %379, %381 : vector<8x32xf32>
    %385 = arith.addf %383, %384 : vector<8x32xf32>
    %386 = math.tanh %385 : vector<8x32xf32>
    %387 = arith.mulf %382, %386 : vector<8x32xf32>
    %cst_134 = arith.constant dense<0.000000e+00> : vector<8x64xf32>
    %388 = tpu.matmul %345, %37, %cst_134 {dimension_numbers = #tpu.dot_dimension_numbers<[1], [0], [0], [1], [0, 0, 1, 1], [], []>} : vector<8x16xf32>, vector<16x64xf32>, vector<8x64xf32> -> vector<8x64xf32>
    %389 = vector.extract_strided_slice %29 {offsets = [40, 0], sizes = [8, 64], strides = [1, 1]} : vector<64x64xf32> to vector<8x64xf32>
    %390 = vector.extract_strided_slice %29 {offsets = [16, 0], sizes = [8, 64], strides = [1, 1]} : vector<64x64xf32> to vector<8x64xf32>
    %391 = vector.shape_cast %35 : vector<1x64xi1> to vector<1x64xi1>
    %392 = vector.broadcast %391 : vector<1x64xi1> to vector<8x64xi1>
    %393 = arith.select %392, %389, %390 : vector<8x64xi1>, vector<8x64xf32>
    %394 = arith.addf %388, %393 : vector<8x64xf32>
    %395 = arith.negf %394 : vector<8x64xf32>
    %396 = math.exp %395 : vector<8x64xf32>
    %cst_135 = arith.constant 1.000000e+00 : f32
    %397 = vector.broadcast %cst_135 : f32 to vector<8x64xf32>
    %398 = arith.addf %397, %396 : vector<8x64xf32>
    %399 = arith.divf %397, %398 : vector<8x64xf32>
    %400 = math.tanh %394 : vector<8x64xf32>
    %401 = vector.extract_strided_slice %399 {offsets = [0, 0], sizes = [8, 16], strides = [1, 1]} : vector<8x64xf32> to vector<8x16xf32>
    %402 = vector.extract_strided_slice %399 {offsets = [0, 16], sizes = [8, 16], strides = [1, 1]} : vector<8x64xf32> to vector<8x16xf32>
    %403 = vector.extract_strided_slice %400 {offsets = [0, 32], sizes = [8, 16], strides = [1, 1]} : vector<8x64xf32> to vector<8x16xf32>
    %404 = vector.extract_strided_slice %399 {offsets = [0, 48], sizes = [8, 16], strides = [1, 1]} : vector<8x64xf32> to vector<8x16xf32>
    %405 = arith.mulf %402, %343 : vector<8x16xf32>
    %406 = arith.mulf %401, %403 : vector<8x16xf32>
    %407 = arith.addf %405, %406 : vector<8x16xf32>
    %408 = math.tanh %407 : vector<8x16xf32>
    %409 = arith.mulf %404, %408 : vector<8x16xf32>
    %c0_136 = arith.constant 0 : index
    %c40_137 = arith.constant 40 : index
    %c0_138 = arith.constant 0 : index
    %410 = vector.load %arg3[%c0_136, %c40_137, %c0_138] : memref<1x64x1xf32, #tpu.memory_space<vmem>>, vector<1x8x1xf32>
    %411 = vector.shape_cast %410 : vector<1x8x1xf32> to vector<8x1xf32>
    %c0_139 = arith.constant 0 : index
    %c16_140 = arith.constant 16 : index
    %c0_141 = arith.constant 0 : index
    %412 = vector.load %arg3[%c0_139, %c16_140, %c0_141] : memref<1x64x1xf32, #tpu.memory_space<vmem>>, vector<1x8x1xf32>
    %413 = vector.shape_cast %412 : vector<1x8x1xf32> to vector<8x1xf32>
    %414 = vector.extract_strided_slice %387 {offsets = [0, 0], sizes = [8, 16], strides = [1, 1]} : vector<8x32xf32> to vector<8x16xf32>
    %415 = vector.broadcast %411 : vector<8x1xf32> to vector<8x16xf32>
    %416 = arith.mulf %414, %415 : vector<8x16xf32>
    %c40_142 = arith.constant 40 : index
    %c0_143 = arith.constant 0 : index
    %417 = vector.load %arg28[%c40_142, %c0_143] : memref<64x128xf32, #tpu.memory_space<vmem>>, vector<8x16xf32>
    tpu.vector_store %arg28[%c40_142, %c0_143], %416 {strides = array<i32>} : memref<64x128xf32, #tpu.memory_space<vmem>>, vector<8x16xf32>,
    %418 = vector.extract_strided_slice %387 {offsets = [0, 16], sizes = [8, 16], strides = [1, 1]} : vector<8x32xf32> to vector<8x16xf32>
    %419 = vector.broadcast %413 : vector<8x1xf32> to vector<8x16xf32>
    %420 = arith.mulf %418, %419 : vector<8x16xf32>
    %c16_144 = arith.constant 16 : index
    %c16_145 = arith.constant 16 : index
    %421 = vector.load %arg28[%c16_144, %c16_145] : memref<64x128xf32, #tpu.memory_space<vmem>>, vector<8x16xf32>
    tpu.vector_store %arg28[%c16_144, %c16_145], %420 {strides = array<i32>} : memref<64x128xf32, #tpu.memory_space<vmem>>, vector<8x16xf32>,
    %422 = vector.extract_strided_slice %409 {offsets = [0, 0], sizes = [8, 8], strides = [1, 1]} : vector<8x16xf32> to vector<8x8xf32>
    %423 = vector.broadcast %411 : vector<8x1xf32> to vector<8x8xf32>
    %424 = arith.mulf %422, %423 : vector<8x8xf32>
    %c40_146 = arith.constant 40 : index
    %c32_147 = arith.constant 32 : index
    %425 = vector.load %arg28[%c40_146, %c32_147] : memref<64x128xf32, #tpu.memory_space<vmem>>, vector<8x8xf32>
    tpu.vector_store %arg28[%c40_146, %c32_147], %424 {strides = array<i32>} : memref<64x128xf32, #tpu.memory_space<vmem>>, vector<8x8xf32>,
    %426 = vector.extract_strided_slice %409 {offsets = [0, 8], sizes = [8, 8], strides = [1, 1]} : vector<8x16xf32> to vector<8x8xf32>
    %427 = vector.broadcast %413 : vector<8x1xf32> to vector<8x8xf32>
    %428 = arith.mulf %426, %427 : vector<8x8xf32>
    %c16_148 = arith.constant 16 : index
    %c40_149 = arith.constant 40 : index
    %429 = vector.load %arg28[%c16_148, %c40_149] : memref<64x128xf32, #tpu.memory_space<vmem>>, vector<8x8xf32>
    tpu.vector_store %arg28[%c16_148, %c40_149], %428 {strides = array<i32>} : memref<64x128xf32, #tpu.memory_space<vmem>>, vector<8x8xf32>,
    %cst_150 = arith.constant dense<0.000000e+00> : vector<8x128xf32>
    %430 = tpu.matmul %387, %36, %cst_150 {dimension_numbers = #tpu.dot_dimension_numbers<[1], [0], [0], [1], [0, 0, 1, 1], [], []>} : vector<8x32xf32>, vector<32x128xf32>, vector<8x128xf32> -> vector<8x128xf32>
    %431 = vector.extract_strided_slice %23 {offsets = [48, 0], sizes = [8, 128], strides = [1, 1]} : vector<64x128xf32> to vector<8x128xf32>
    %432 = vector.extract_strided_slice %23 {offsets = [8, 0], sizes = [8, 128], strides = [1, 1]} : vector<64x128xf32> to vector<8x128xf32>
    %433 = vector.shape_cast %32 : vector<1x128xi1> to vector<1x128xi1>
    %434 = vector.broadcast %433 : vector<1x128xi1> to vector<8x128xi1>
    %435 = arith.select %434, %431, %432 : vector<8x128xi1>, vector<8x128xf32>
    %436 = arith.addf %430, %435 : vector<8x128xf32>
    %437 = arith.negf %436 : vector<8x128xf32>
    %438 = math.exp %437 : vector<8x128xf32>
    %cst_151 = arith.constant 1.000000e+00 : f32
    %439 = vector.broadcast %cst_151 : f32 to vector<8x128xf32>
    %440 = arith.addf %439, %438 : vector<8x128xf32>
    %441 = arith.divf %439, %440 : vector<8x128xf32>
    %442 = math.tanh %436 : vector<8x128xf32>
    %443 = vector.extract_strided_slice %441 {offsets = [0, 0], sizes = [8, 32], strides = [1, 1]} : vector<8x128xf32> to vector<8x32xf32>
    %444 = vector.extract_strided_slice %441 {offsets = [0, 32], sizes = [8, 32], strides = [1, 1]} : vector<8x128xf32> to vector<8x32xf32>
    %445 = vector.extract_strided_slice %442 {offsets = [0, 64], sizes = [8, 32], strides = [1, 1]} : vector<8x128xf32> to vector<8x32xf32>
    %446 = vector.extract_strided_slice %441 {offsets = [0, 96], sizes = [8, 32], strides = [1, 1]} : vector<8x128xf32> to vector<8x32xf32>
    %447 = arith.mulf %444, %385 : vector<8x32xf32>
    %448 = arith.mulf %443, %445 : vector<8x32xf32>
    %449 = arith.addf %447, %448 : vector<8x32xf32>
    %450 = math.tanh %449 : vector<8x32xf32>
    %451 = arith.mulf %446, %450 : vector<8x32xf32>
    %cst_152 = arith.constant dense<0.000000e+00> : vector<8x64xf32>
    %452 = tpu.matmul %409, %37, %cst_152 {dimension_numbers = #tpu.dot_dimension_numbers<[1], [0], [0], [1], [0, 0, 1, 1], [], []>} : vector<8x16xf32>, vector<16x64xf32>, vector<8x64xf32> -> vector<8x64xf32>
    %453 = vector.extract_strided_slice %29 {offsets = [48, 0], sizes = [8, 64], strides = [1, 1]} : vector<64x64xf32> to vector<8x64xf32>
    %454 = vector.extract_strided_slice %29 {offsets = [8, 0], sizes = [8, 64], strides = [1, 1]} : vector<64x64xf32> to vector<8x64xf32>
    %455 = vector.shape_cast %35 : vector<1x64xi1> to vector<1x64xi1>
    %456 = vector.broadcast %455 : vector<1x64xi1> to vector<8x64xi1>
    %457 = arith.select %456, %453, %454 : vector<8x64xi1>, vector<8x64xf32>
    %458 = arith.addf %452, %457 : vector<8x64xf32>
    %459 = arith.negf %458 : vector<8x64xf32>
    %460 = math.exp %459 : vector<8x64xf32>
    %cst_153 = arith.constant 1.000000e+00 : f32
    %461 = vector.broadcast %cst_153 : f32 to vector<8x64xf32>
    %462 = arith.addf %461, %460 : vector<8x64xf32>
    %463 = arith.divf %461, %462 : vector<8x64xf32>
    %464 = math.tanh %458 : vector<8x64xf32>
    %465 = vector.extract_strided_slice %463 {offsets = [0, 0], sizes = [8, 16], strides = [1, 1]} : vector<8x64xf32> to vector<8x16xf32>
    %466 = vector.extract_strided_slice %463 {offsets = [0, 16], sizes = [8, 16], strides = [1, 1]} : vector<8x64xf32> to vector<8x16xf32>
    %467 = vector.extract_strided_slice %464 {offsets = [0, 32], sizes = [8, 16], strides = [1, 1]} : vector<8x64xf32> to vector<8x16xf32>
    %468 = vector.extract_strided_slice %463 {offsets = [0, 48], sizes = [8, 16], strides = [1, 1]} : vector<8x64xf32> to vector<8x16xf32>
    %469 = arith.mulf %466, %407 : vector<8x16xf32>
    %470 = arith.mulf %465, %467 : vector<8x16xf32>
    %471 = arith.addf %469, %470 : vector<8x16xf32>
    %472 = math.tanh %471 : vector<8x16xf32>
    %473 = arith.mulf %468, %472 : vector<8x16xf32>
    %c0_154 = arith.constant 0 : index
    %c48_155 = arith.constant 48 : index
    %c0_156 = arith.constant 0 : index
    %474 = vector.load %arg3[%c0_154, %c48_155, %c0_156] : memref<1x64x1xf32, #tpu.memory_space<vmem>>, vector<1x8x1xf32>
    %475 = vector.shape_cast %474 : vector<1x8x1xf32> to vector<8x1xf32>
    %c0_157 = arith.constant 0 : index
    %c8_158 = arith.constant 8 : index
    %c0_159 = arith.constant 0 : index
    %476 = vector.load %arg3[%c0_157, %c8_158, %c0_159] : memref<1x64x1xf32, #tpu.memory_space<vmem>>, vector<1x8x1xf32>
    %477 = vector.shape_cast %476 : vector<1x8x1xf32> to vector<8x1xf32>
    %478 = vector.extract_strided_slice %451 {offsets = [0, 0], sizes = [8, 16], strides = [1, 1]} : vector<8x32xf32> to vector<8x16xf32>
    %479 = vector.broadcast %475 : vector<8x1xf32> to vector<8x16xf32>
    %480 = arith.mulf %478, %479 : vector<8x16xf32>
    %c48_160 = arith.constant 48 : index
    %c0_161 = arith.constant 0 : index
    %481 = vector.load %arg28[%c48_160, %c0_161] : memref<64x128xf32, #tpu.memory_space<vmem>>, vector<8x16xf32>
    tpu.vector_store %arg28[%c48_160, %c0_161], %480 {strides = array<i32>} : memref<64x128xf32, #tpu.memory_space<vmem>>, vector<8x16xf32>,
    %482 = vector.extract_strided_slice %451 {offsets = [0, 16], sizes = [8, 16], strides = [1, 1]} : vector<8x32xf32> to vector<8x16xf32>
    %483 = vector.broadcast %477 : vector<8x1xf32> to vector<8x16xf32>
    %484 = arith.mulf %482, %483 : vector<8x16xf32>
    %c8_162 = arith.constant 8 : index
    %c16_163 = arith.constant 16 : index
    %485 = vector.load %arg28[%c8_162, %c16_163] : memref<64x128xf32, #tpu.memory_space<vmem>>, vector<8x16xf32>
    tpu.vector_store %arg28[%c8_162, %c16_163], %484 {strides = array<i32>} : memref<64x128xf32, #tpu.memory_space<vmem>>, vector<8x16xf32>,
    %486 = vector.extract_strided_slice %473 {offsets = [0, 0], sizes = [8, 8], strides = [1, 1]} : vector<8x16xf32> to vector<8x8xf32>
    %487 = vector.broadcast %475 : vector<8x1xf32> to vector<8x8xf32>
    %488 = arith.mulf %486, %487 : vector<8x8xf32>
    %c48_164 = arith.constant 48 : index
    %c32_165 = arith.constant 32 : index
    %489 = vector.load %arg28[%c48_164, %c32_165] : memref<64x128xf32, #tpu.memory_space<vmem>>, vector<8x8xf32>
    tpu.vector_store %arg28[%c48_164, %c32_165], %488 {strides = array<i32>} : memref<64x128xf32, #tpu.memory_space<vmem>>, vector<8x8xf32>,
    %490 = vector.extract_strided_slice %473 {offsets = [0, 8], sizes = [8, 8], strides = [1, 1]} : vector<8x16xf32> to vector<8x8xf32>
    %491 = vector.broadcast %477 : vector<8x1xf32> to vector<8x8xf32>
    %492 = arith.mulf %490, %491 : vector<8x8xf32>
    %c8_166 = arith.constant 8 : index
    %c40_167 = arith.constant 40 : index
    %493 = vector.load %arg28[%c8_166, %c40_167] : memref<64x128xf32, #tpu.memory_space<vmem>>, vector<8x8xf32>
    tpu.vector_store %arg28[%c8_166, %c40_167], %492 {strides = array<i32>} : memref<64x128xf32, #tpu.memory_space<vmem>>, vector<8x8xf32>,
    %cst_168 = arith.constant dense<0.000000e+00> : vector<8x128xf32>
    %494 = tpu.matmul %451, %36, %cst_168 {dimension_numbers = #tpu.dot_dimension_numbers<[1], [0], [0], [1], [0, 0, 1, 1], [], []>} : vector<8x32xf32>, vector<32x128xf32>, vector<8x128xf32> -> vector<8x128xf32>
    %495 = vector.extract_strided_slice %23 {offsets = [56, 0], sizes = [8, 128], strides = [1, 1]} : vector<64x128xf32> to vector<8x128xf32>
    %496 = vector.extract_strided_slice %23 {offsets = [0, 0], sizes = [8, 128], strides = [1, 1]} : vector<64x128xf32> to vector<8x128xf32>
    %497 = vector.shape_cast %32 : vector<1x128xi1> to vector<1x128xi1>
    %498 = vector.broadcast %497 : vector<1x128xi1> to vector<8x128xi1>
    %499 = arith.select %498, %495, %496 : vector<8x128xi1>, vector<8x128xf32>
    %500 = arith.addf %494, %499 : vector<8x128xf32>
    %501 = arith.negf %500 : vector<8x128xf32>
    %502 = math.exp %501 : vector<8x128xf32>
    %cst_169 = arith.constant 1.000000e+00 : f32
    %503 = vector.broadcast %cst_169 : f32 to vector<8x128xf32>
    %504 = arith.addf %503, %502 : vector<8x128xf32>
    %505 = arith.divf %503, %504 : vector<8x128xf32>
    %506 = math.tanh %500 : vector<8x128xf32>
    %507 = vector.extract_strided_slice %505 {offsets = [0, 0], sizes = [8, 32], strides = [1, 1]} : vector<8x128xf32> to vector<8x32xf32>
    %508 = vector.extract_strided_slice %505 {offsets = [0, 32], sizes = [8, 32], strides = [1, 1]} : vector<8x128xf32> to vector<8x32xf32>
    %509 = vector.extract_strided_slice %506 {offsets = [0, 64], sizes = [8, 32], strides = [1, 1]} : vector<8x128xf32> to vector<8x32xf32>
    %510 = vector.extract_strided_slice %505 {offsets = [0, 96], sizes = [8, 32], strides = [1, 1]} : vector<8x128xf32> to vector<8x32xf32>
    %511 = arith.mulf %508, %449 : vector<8x32xf32>
    %512 = arith.mulf %507, %509 : vector<8x32xf32>
    %513 = arith.addf %511, %512 : vector<8x32xf32>
    %514 = math.tanh %513 : vector<8x32xf32>
    %515 = arith.mulf %510, %514 : vector<8x32xf32>
    %cst_170 = arith.constant dense<0.000000e+00> : vector<8x64xf32>
    %516 = tpu.matmul %473, %37, %cst_170 {dimension_numbers = #tpu.dot_dimension_numbers<[1], [0], [0], [1], [0, 0, 1, 1], [], []>} : vector<8x16xf32>, vector<16x64xf32>, vector<8x64xf32> -> vector<8x64xf32>
    %517 = vector.extract_strided_slice %29 {offsets = [56, 0], sizes = [8, 64], strides = [1, 1]} : vector<64x64xf32> to vector<8x64xf32>
    %518 = vector.extract_strided_slice %29 {offsets = [0, 0], sizes = [8, 64], strides = [1, 1]} : vector<64x64xf32> to vector<8x64xf32>
    %519 = vector.shape_cast %35 : vector<1x64xi1> to vector<1x64xi1>
    %520 = vector.broadcast %519 : vector<1x64xi1> to vector<8x64xi1>
    %521 = arith.select %520, %517, %518 : vector<8x64xi1>, vector<8x64xf32>
    %522 = arith.addf %516, %521 : vector<8x64xf32>
    %523 = arith.negf %522 : vector<8x64xf32>
    %524 = math.exp %523 : vector<8x64xf32>
    %cst_171 = arith.constant 1.000000e+00 : f32
    %525 = vector.broadcast %cst_171 : f32 to vector<8x64xf32>
    %526 = arith.addf %525, %524 : vector<8x64xf32>
    %527 = arith.divf %525, %526 : vector<8x64xf32>
    %528 = math.tanh %522 : vector<8x64xf32>
    %529 = vector.extract_strided_slice %527 {offsets = [0, 0], sizes = [8, 16], strides = [1, 1]} : vector<8x64xf32> to vector<8x16xf32>
    %530 = vector.extract_strided_slice %527 {offsets = [0, 16], sizes = [8, 16], strides = [1, 1]} : vector<8x64xf32> to vector<8x16xf32>
    %531 = vector.extract_strided_slice %528 {offsets = [0, 32], sizes = [8, 16], strides = [1, 1]} : vector<8x64xf32> to vector<8x16xf32>
    %532 = vector.extract_strided_slice %527 {offsets = [0, 48], sizes = [8, 16], strides = [1, 1]} : vector<8x64xf32> to vector<8x16xf32>
    %533 = arith.mulf %530, %471 : vector<8x16xf32>
    %534 = arith.mulf %529, %531 : vector<8x16xf32>
    %535 = arith.addf %533, %534 : vector<8x16xf32>
    %536 = math.tanh %535 : vector<8x16xf32>
    %537 = arith.mulf %532, %536 : vector<8x16xf32>
    %c0_172 = arith.constant 0 : index
    %c56_173 = arith.constant 56 : index
    %c0_174 = arith.constant 0 : index
    %538 = vector.load %arg3[%c0_172, %c56_173, %c0_174] : memref<1x64x1xf32, #tpu.memory_space<vmem>>, vector<1x8x1xf32>
    %539 = vector.shape_cast %538 : vector<1x8x1xf32> to vector<8x1xf32>
    %c0_175 = arith.constant 0 : index
    %c0_176 = arith.constant 0 : index
    %c0_177 = arith.constant 0 : index
    %540 = vector.load %arg3[%c0_175, %c0_176, %c0_177] : memref<1x64x1xf32, #tpu.memory_space<vmem>>, vector<1x8x1xf32>
    %541 = vector.shape_cast %540 : vector<1x8x1xf32> to vector<8x1xf32>
    %542 = vector.extract_strided_slice %515 {offsets = [0, 0], sizes = [8, 16], strides = [1, 1]} : vector<8x32xf32> to vector<8x16xf32>
    %543 = vector.broadcast %539 : vector<8x1xf32> to vector<8x16xf32>
    %544 = arith.mulf %542, %543 : vector<8x16xf32>
    %c56_178 = arith.constant 56 : index
    %c0_179 = arith.constant 0 : index
    %545 = vector.load %arg28[%c56_178, %c0_179] : memref<64x128xf32, #tpu.memory_space<vmem>>, vector<8x16xf32>
    tpu.vector_store %arg28[%c56_178, %c0_179], %544 {strides = array<i32>} : memref<64x128xf32, #tpu.memory_space<vmem>>, vector<8x16xf32>,
    %546 = vector.extract_strided_slice %515 {offsets = [0, 16], sizes = [8, 16], strides = [1, 1]} : vector<8x32xf32> to vector<8x16xf32>
    %547 = vector.broadcast %541 : vector<8x1xf32> to vector<8x16xf32>
    %548 = arith.mulf %546, %547 : vector<8x16xf32>
    %c0_180 = arith.constant 0 : index
    %c16_181 = arith.constant 16 : index
    %549 = vector.load %arg28[%c0_180, %c16_181] : memref<64x128xf32, #tpu.memory_space<vmem>>, vector<8x16xf32>
    tpu.vector_store %arg28[%c0_180, %c16_181], %548 {strides = array<i32>} : memref<64x128xf32, #tpu.memory_space<vmem>>, vector<8x16xf32>,
    %550 = vector.extract_strided_slice %537 {offsets = [0, 0], sizes = [8, 8], strides = [1, 1]} : vector<8x16xf32> to vector<8x8xf32>
    %551 = vector.broadcast %539 : vector<8x1xf32> to vector<8x8xf32>
    %552 = arith.mulf %550, %551 : vector<8x8xf32>
    %c56_182 = arith.constant 56 : index
    %c32_183 = arith.constant 32 : index
    %553 = vector.load %arg28[%c56_182, %c32_183] : memref<64x128xf32, #tpu.memory_space<vmem>>, vector<8x8xf32>
    tpu.vector_store %arg28[%c56_182, %c32_183], %552 {strides = array<i32>} : memref<64x128xf32, #tpu.memory_space<vmem>>, vector<8x8xf32>,
    %554 = vector.extract_strided_slice %537 {offsets = [0, 8], sizes = [8, 8], strides = [1, 1]} : vector<8x16xf32> to vector<8x8xf32>
    %555 = vector.broadcast %541 : vector<8x1xf32> to vector<8x8xf32>
    %556 = arith.mulf %554, %555 : vector<8x8xf32>
    %c0_184 = arith.constant 0 : index
    %c40_185 = arith.constant 40 : index
    %557 = vector.load %arg28[%c0_184, %c40_185] : memref<64x128xf32, #tpu.memory_space<vmem>>, vector<8x8xf32>
    tpu.vector_store %arg28[%c0_184, %c40_185], %556 {strides = array<i32>} : memref<64x128xf32, #tpu.memory_space<vmem>>, vector<8x8xf32>,
    %c0_186 = arith.constant 0 : index
    %c0_187 = arith.constant 0 : index
    %558 = vector.load %arg28[%c0_186, %c0_187] : memref<64x128xf32, #tpu.memory_space<vmem>>, vector<64x128xf32>
    %559 = arith.truncf %558 : vector<64x128xf32> to vector<64x128xbf16>
    %c0_188 = arith.constant 0 : index
    %c0_189 = arith.constant 0 : index
    %560 = vector.load %arg20[%c0_188, %c0_189] : memref<128x128xbf16, #tpu.memory_space<vmem>>, vector<128x128xbf16>
    %cst_190 = arith.constant dense<0.000000e+00> : vector<64x128xf32>
    %561 = tpu.matmul %559, %560, %cst_190 {dimension_numbers = #tpu.dot_dimension_numbers<[1], [0], [0], [1], [0, 0, 1, 1], [], []>} : vector<64x128xbf16>, vector<128x128xbf16>, vector<64x128xf32> -> vector<64x128xf32>
    %c0_191 = arith.constant 0 : index
    %c0_192 = arith.constant 0 : index
    %562 = vector.load %arg21[%c0_191, %c0_192] : memref<1x128xf32, #tpu.memory_space<vmem>>, vector<1x128xf32>
    %563 = vector.broadcast %562 : vector<1x128xf32> to vector<64x128xf32>
    %564 = arith.addf %561, %563 : vector<64x128xf32>
    %c0_193 = arith.constant 0 : index
    %c0_194 = arith.constant 0 : index
    %565 = vector.load %arg22[%c0_193, %c0_194] : memref<1x128xf32, #tpu.memory_space<vmem>>, vector<1x128xf32>
    %cst_195 = arith.constant 5.000000e-01 : f32
    %566 = vector.broadcast %cst_195 : f32 to vector<1x128xf32>
    %567 = arith.cmpf ogt, %565, %566 : vector<1x128xf32>
    %c0_196 = arith.constant 0 : index
    %c0_197 = arith.constant 0 : index
    %568 = vector.load %arg23[%c0_196, %c0_197] : memref<32x128xf32, #tpu.memory_space<vmem>>, vector<32x128xf32>
    %c0_198 = arith.constant 0 : index
    %c0_199 = arith.constant 0 : index
    %569 = vector.load %arg26[%c0_198, %c0_199] : memref<32x2xf32, #tpu.memory_space<vmem>>, vector<32x2xf32>
    %c0_200 = arith.constant 0 : index
    %c0_201 = arith.constant 0 : index
    %c0_202 = arith.constant 0 : index
    %570 = vector.load %arg24[%c0_200, %c0_201, %c0_202] : memref<1x8x32xf32, #tpu.memory_space<vmem>>, vector<1x8x32xf32>
    %571 = vector.shape_cast %570 : vector<1x8x32xf32> to vector<8x32xf32>
    %c0_203 = arith.constant 0 : index
    %c0_204 = arith.constant 0 : index
    %c0_205 = arith.constant 0 : index
    %572 = vector.load %arg25[%c0_203, %c0_204, %c0_205] : memref<1x8x32xf32, #tpu.memory_space<vmem>>, vector<1x8x32xf32>
    %573 = vector.shape_cast %572 : vector<1x8x32xf32> to vector<8x32xf32>
    %cst_206 = arith.constant dense<0.000000e+00> : vector<8x128xf32>
    %574 = tpu.matmul %571, %568, %cst_206 {dimension_numbers = #tpu.dot_dimension_numbers<[1], [0], [0], [1], [0, 0, 1, 1], [], []>} : vector<8x32xf32>, vector<32x128xf32>, vector<8x128xf32> -> vector<8x128xf32>
    %575 = vector.extract_strided_slice %564 {offsets = [0, 0], sizes = [8, 128], strides = [1, 1]} : vector<64x128xf32> to vector<8x128xf32>
    %576 = vector.extract_strided_slice %564 {offsets = [56, 0], sizes = [8, 128], strides = [1, 1]} : vector<64x128xf32> to vector<8x128xf32>
    %577 = vector.shape_cast %567 : vector<1x128xi1> to vector<1x128xi1>
    %578 = vector.broadcast %577 : vector<1x128xi1> to vector<8x128xi1>
    %579 = arith.select %578, %575, %576 : vector<8x128xi1>, vector<8x128xf32>
    %580 = arith.addf %574, %579 : vector<8x128xf32>
    %581 = arith.negf %580 : vector<8x128xf32>
    %582 = math.exp %581 : vector<8x128xf32>
    %cst_207 = arith.constant 1.000000e+00 : f32
    %583 = vector.broadcast %cst_207 : f32 to vector<8x128xf32>
    %584 = arith.addf %583, %582 : vector<8x128xf32>
    %585 = arith.divf %583, %584 : vector<8x128xf32>
    %586 = math.tanh %580 : vector<8x128xf32>
    %587 = vector.extract_strided_slice %585 {offsets = [0, 0], sizes = [8, 32], strides = [1, 1]} : vector<8x128xf32> to vector<8x32xf32>
    %588 = vector.extract_strided_slice %585 {offsets = [0, 32], sizes = [8, 32], strides = [1, 1]} : vector<8x128xf32> to vector<8x32xf32>
    %589 = vector.extract_strided_slice %586 {offsets = [0, 64], sizes = [8, 32], strides = [1, 1]} : vector<8x128xf32> to vector<8x32xf32>
    %590 = vector.extract_strided_slice %585 {offsets = [0, 96], sizes = [8, 32], strides = [1, 1]} : vector<8x128xf32> to vector<8x32xf32>
    %591 = arith.mulf %588, %573 : vector<8x32xf32>
    %592 = arith.mulf %587, %589 : vector<8x32xf32>
    %593 = arith.addf %591, %592 : vector<8x32xf32>
    %594 = math.tanh %593 : vector<8x32xf32>
    %595 = arith.mulf %590, %594 : vector<8x32xf32>
    %cst_208 = arith.constant dense<0.000000e+00> : vector<8x2xf32>
    %596 = tpu.matmul %595, %569, %cst_208 {dimension_numbers = #tpu.dot_dimension_numbers<[1], [0], [0], [1], [0, 0, 1, 1], [], []>} : vector<8x32xf32>, vector<32x2xf32>, vector<8x2xf32> -> vector<8x2xf32>
    %597 = vector.extract_strided_slice %596 {offsets = [0, 0], sizes = [8, 1], strides = [1, 1]} : vector<8x2xf32> to vector<8x1xf32>
    %598 = vector.extract_strided_slice %596 {offsets = [0, 1], sizes = [8, 1], strides = [1, 1]} : vector<8x2xf32> to vector<8x1xf32>
    %cst_209 = arith.constant dense<0.000000e+00> : vector<8x128xf32>
    %599 = tpu.matmul %595, %568, %cst_209 {dimension_numbers = #tpu.dot_dimension_numbers<[1], [0], [0], [1], [0, 0, 1, 1], [], []>} : vector<8x32xf32>, vector<32x128xf32>, vector<8x128xf32> -> vector<8x128xf32>
    %600 = vector.extract_strided_slice %564 {offsets = [8, 0], sizes = [8, 128], strides = [1, 1]} : vector<64x128xf32> to vector<8x128xf32>
    %601 = vector.extract_strided_slice %564 {offsets = [48, 0], sizes = [8, 128], strides = [1, 1]} : vector<64x128xf32> to vector<8x128xf32>
    %602 = vector.shape_cast %567 : vector<1x128xi1> to vector<1x128xi1>
    %603 = vector.broadcast %602 : vector<1x128xi1> to vector<8x128xi1>
    %604 = arith.select %603, %600, %601 : vector<8x128xi1>, vector<8x128xf32>
    %605 = arith.addf %599, %604 : vector<8x128xf32>
    %606 = arith.negf %605 : vector<8x128xf32>
    %607 = math.exp %606 : vector<8x128xf32>
    %cst_210 = arith.constant 1.000000e+00 : f32
    %608 = vector.broadcast %cst_210 : f32 to vector<8x128xf32>
    %609 = arith.addf %608, %607 : vector<8x128xf32>
    %610 = arith.divf %608, %609 : vector<8x128xf32>
    %611 = math.tanh %605 : vector<8x128xf32>
    %612 = vector.extract_strided_slice %610 {offsets = [0, 0], sizes = [8, 32], strides = [1, 1]} : vector<8x128xf32> to vector<8x32xf32>
    %613 = vector.extract_strided_slice %610 {offsets = [0, 32], sizes = [8, 32], strides = [1, 1]} : vector<8x128xf32> to vector<8x32xf32>
    %614 = vector.extract_strided_slice %611 {offsets = [0, 64], sizes = [8, 32], strides = [1, 1]} : vector<8x128xf32> to vector<8x32xf32>
    %615 = vector.extract_strided_slice %610 {offsets = [0, 96], sizes = [8, 32], strides = [1, 1]} : vector<8x128xf32> to vector<8x32xf32>
    %616 = arith.mulf %613, %593 : vector<8x32xf32>
    %617 = arith.mulf %612, %614 : vector<8x32xf32>
    %618 = arith.addf %616, %617 : vector<8x32xf32>
    %619 = math.tanh %618 : vector<8x32xf32>
    %620 = arith.mulf %615, %619 : vector<8x32xf32>
    %cst_211 = arith.constant dense<0.000000e+00> : vector<8x2xf32>
    %621 = tpu.matmul %620, %569, %cst_211 {dimension_numbers = #tpu.dot_dimension_numbers<[1], [0], [0], [1], [0, 0, 1, 1], [], []>} : vector<8x32xf32>, vector<32x2xf32>, vector<8x2xf32> -> vector<8x2xf32>
    %622 = vector.extract_strided_slice %621 {offsets = [0, 0], sizes = [8, 1], strides = [1, 1]} : vector<8x2xf32> to vector<8x1xf32>
    %623 = vector.extract_strided_slice %621 {offsets = [0, 1], sizes = [8, 1], strides = [1, 1]} : vector<8x2xf32> to vector<8x1xf32>
    %cst_212 = arith.constant dense<0.000000e+00> : vector<8x128xf32>
    %624 = tpu.matmul %620, %568, %cst_212 {dimension_numbers = #tpu.dot_dimension_numbers<[1], [0], [0], [1], [0, 0, 1, 1], [], []>} : vector<8x32xf32>, vector<32x128xf32>, vector<8x128xf32> -> vector<8x128xf32>
    %625 = vector.extract_strided_slice %564 {offsets = [16, 0], sizes = [8, 128], strides = [1, 1]} : vector<64x128xf32> to vector<8x128xf32>
    %626 = vector.extract_strided_slice %564 {offsets = [40, 0], sizes = [8, 128], strides = [1, 1]} : vector<64x128xf32> to vector<8x128xf32>
    %627 = vector.shape_cast %567 : vector<1x128xi1> to vector<1x128xi1>
    %628 = vector.broadcast %627 : vector<1x128xi1> to vector<8x128xi1>
    %629 = arith.select %628, %625, %626 : vector<8x128xi1>, vector<8x128xf32>
    %630 = arith.addf %624, %629 : vector<8x128xf32>
    %631 = arith.negf %630 : vector<8x128xf32>
    %632 = math.exp %631 : vector<8x128xf32>
    %cst_213 = arith.constant 1.000000e+00 : f32
    %633 = vector.broadcast %cst_213 : f32 to vector<8x128xf32>
    %634 = arith.addf %633, %632 : vector<8x128xf32>
    %635 = arith.divf %633, %634 : vector<8x128xf32>
    %636 = math.tanh %630 : vector<8x128xf32>
    %637 = vector.extract_strided_slice %635 {offsets = [0, 0], sizes = [8, 32], strides = [1, 1]} : vector<8x128xf32> to vector<8x32xf32>
    %638 = vector.extract_strided_slice %635 {offsets = [0, 32], sizes = [8, 32], strides = [1, 1]} : vector<8x128xf32> to vector<8x32xf32>
    %639 = vector.extract_strided_slice %636 {offsets = [0, 64], sizes = [8, 32], strides = [1, 1]} : vector<8x128xf32> to vector<8x32xf32>
    %640 = vector.extract_strided_slice %635 {offsets = [0, 96], sizes = [8, 32], strides = [1, 1]} : vector<8x128xf32> to vector<8x32xf32>
    %641 = arith.mulf %638, %618 : vector<8x32xf32>
    %642 = arith.mulf %637, %639 : vector<8x32xf32>
    %643 = arith.addf %641, %642 : vector<8x32xf32>
    %644 = math.tanh %643 : vector<8x32xf32>
    %645 = arith.mulf %640, %644 : vector<8x32xf32>
    %cst_214 = arith.constant dense<0.000000e+00> : vector<8x2xf32>
    %646 = tpu.matmul %645, %569, %cst_214 {dimension_numbers = #tpu.dot_dimension_numbers<[1], [0], [0], [1], [0, 0, 1, 1], [], []>} : vector<8x32xf32>, vector<32x2xf32>, vector<8x2xf32> -> vector<8x2xf32>
    %647 = vector.extract_strided_slice %646 {offsets = [0, 0], sizes = [8, 1], strides = [1, 1]} : vector<8x2xf32> to vector<8x1xf32>
    %648 = vector.extract_strided_slice %646 {offsets = [0, 1], sizes = [8, 1], strides = [1, 1]} : vector<8x2xf32> to vector<8x1xf32>
    %cst_215 = arith.constant dense<0.000000e+00> : vector<8x128xf32>
    %649 = tpu.matmul %645, %568, %cst_215 {dimension_numbers = #tpu.dot_dimension_numbers<[1], [0], [0], [1], [0, 0, 1, 1], [], []>} : vector<8x32xf32>, vector<32x128xf32>, vector<8x128xf32> -> vector<8x128xf32>
    %650 = vector.extract_strided_slice %564 {offsets = [24, 0], sizes = [8, 128], strides = [1, 1]} : vector<64x128xf32> to vector<8x128xf32>
    %651 = vector.extract_strided_slice %564 {offsets = [32, 0], sizes = [8, 128], strides = [1, 1]} : vector<64x128xf32> to vector<8x128xf32>
    %652 = vector.shape_cast %567 : vector<1x128xi1> to vector<1x128xi1>
    %653 = vector.broadcast %652 : vector<1x128xi1> to vector<8x128xi1>
    %654 = arith.select %653, %650, %651 : vector<8x128xi1>, vector<8x128xf32>
    %655 = arith.addf %649, %654 : vector<8x128xf32>
    %656 = arith.negf %655 : vector<8x128xf32>
    %657 = math.exp %656 : vector<8x128xf32>
    %cst_216 = arith.constant 1.000000e+00 : f32
    %658 = vector.broadcast %cst_216 : f32 to vector<8x128xf32>
    %659 = arith.addf %658, %657 : vector<8x128xf32>
    %660 = arith.divf %658, %659 : vector<8x128xf32>
    %661 = math.tanh %655 : vector<8x128xf32>
    %662 = vector.extract_strided_slice %660 {offsets = [0, 0], sizes = [8, 32], strides = [1, 1]} : vector<8x128xf32> to vector<8x32xf32>
    %663 = vector.extract_strided_slice %660 {offsets = [0, 32], sizes = [8, 32], strides = [1, 1]} : vector<8x128xf32> to vector<8x32xf32>
    %664 = vector.extract_strided_slice %661 {offsets = [0, 64], sizes = [8, 32], strides = [1, 1]} : vector<8x128xf32> to vector<8x32xf32>
    %665 = vector.extract_strided_slice %660 {offsets = [0, 96], sizes = [8, 32], strides = [1, 1]} : vector<8x128xf32> to vector<8x32xf32>
    %666 = arith.mulf %663, %643 : vector<8x32xf32>
    %667 = arith.mulf %662, %664 : vector<8x32xf32>
    %668 = arith.addf %666, %667 : vector<8x32xf32>
    %669 = math.tanh %668 : vector<8x32xf32>
    %670 = arith.mulf %665, %669 : vector<8x32xf32>
    %cst_217 = arith.constant dense<0.000000e+00> : vector<8x2xf32>
    %671 = tpu.matmul %670, %569, %cst_217 {dimension_numbers = #tpu.dot_dimension_numbers<[1], [0], [0], [1], [0, 0, 1, 1], [], []>} : vector<8x32xf32>, vector<32x2xf32>, vector<8x2xf32> -> vector<8x2xf32>
    %672 = vector.extract_strided_slice %671 {offsets = [0, 0], sizes = [8, 1], strides = [1, 1]} : vector<8x2xf32> to vector<8x1xf32>
    %673 = vector.extract_strided_slice %671 {offsets = [0, 1], sizes = [8, 1], strides = [1, 1]} : vector<8x2xf32> to vector<8x1xf32>
    %cst_218 = arith.constant dense<0.000000e+00> : vector<8x128xf32>
    %674 = tpu.matmul %670, %568, %cst_218 {dimension_numbers = #tpu.dot_dimension_numbers<[1], [0], [0], [1], [0, 0, 1, 1], [], []>} : vector<8x32xf32>, vector<32x128xf32>, vector<8x128xf32> -> vector<8x128xf32>
    %675 = vector.extract_strided_slice %564 {offsets = [32, 0], sizes = [8, 128], strides = [1, 1]} : vector<64x128xf32> to vector<8x128xf32>
    %676 = vector.extract_strided_slice %564 {offsets = [24, 0], sizes = [8, 128], strides = [1, 1]} : vector<64x128xf32> to vector<8x128xf32>
    %677 = vector.shape_cast %567 : vector<1x128xi1> to vector<1x128xi1>
    %678 = vector.broadcast %677 : vector<1x128xi1> to vector<8x128xi1>
    %679 = arith.select %678, %675, %676 : vector<8x128xi1>, vector<8x128xf32>
    %680 = arith.addf %674, %679 : vector<8x128xf32>
    %681 = arith.negf %680 : vector<8x128xf32>
    %682 = math.exp %681 : vector<8x128xf32>
    %cst_219 = arith.constant 1.000000e+00 : f32
    %683 = vector.broadcast %cst_219 : f32 to vector<8x128xf32>
    %684 = arith.addf %683, %682 : vector<8x128xf32>
    %685 = arith.divf %683, %684 : vector<8x128xf32>
    %686 = math.tanh %680 : vector<8x128xf32>
    %687 = vector.extract_strided_slice %685 {offsets = [0, 0], sizes = [8, 32], strides = [1, 1]} : vector<8x128xf32> to vector<8x32xf32>
    %688 = vector.extract_strided_slice %685 {offsets = [0, 32], sizes = [8, 32], strides = [1, 1]} : vector<8x128xf32> to vector<8x32xf32>
    %689 = vector.extract_strided_slice %686 {offsets = [0, 64], sizes = [8, 32], strides = [1, 1]} : vector<8x128xf32> to vector<8x32xf32>
    %690 = vector.extract_strided_slice %685 {offsets = [0, 96], sizes = [8, 32], strides = [1, 1]} : vector<8x128xf32> to vector<8x32xf32>
    %691 = arith.mulf %688, %668 : vector<8x32xf32>
    %692 = arith.mulf %687, %689 : vector<8x32xf32>
    %693 = arith.addf %691, %692 : vector<8x32xf32>
    %694 = math.tanh %693 : vector<8x32xf32>
    %695 = arith.mulf %690, %694 : vector<8x32xf32>
    %cst_220 = arith.constant dense<0.000000e+00> : vector<8x2xf32>
    %696 = tpu.matmul %695, %569, %cst_220 {dimension_numbers = #tpu.dot_dimension_numbers<[1], [0], [0], [1], [0, 0, 1, 1], [], []>} : vector<8x32xf32>, vector<32x2xf32>, vector<8x2xf32> -> vector<8x2xf32>
    %697 = vector.extract_strided_slice %696 {offsets = [0, 0], sizes = [8, 1], strides = [1, 1]} : vector<8x2xf32> to vector<8x1xf32>
    %698 = vector.extract_strided_slice %696 {offsets = [0, 1], sizes = [8, 1], strides = [1, 1]} : vector<8x2xf32> to vector<8x1xf32>
    %cst_221 = arith.constant dense<0.000000e+00> : vector<8x128xf32>
    %699 = tpu.matmul %695, %568, %cst_221 {dimension_numbers = #tpu.dot_dimension_numbers<[1], [0], [0], [1], [0, 0, 1, 1], [], []>} : vector<8x32xf32>, vector<32x128xf32>, vector<8x128xf32> -> vector<8x128xf32>
    %700 = vector.extract_strided_slice %564 {offsets = [40, 0], sizes = [8, 128], strides = [1, 1]} : vector<64x128xf32> to vector<8x128xf32>
    %701 = vector.extract_strided_slice %564 {offsets = [16, 0], sizes = [8, 128], strides = [1, 1]} : vector<64x128xf32> to vector<8x128xf32>
    %702 = vector.shape_cast %567 : vector<1x128xi1> to vector<1x128xi1>
    %703 = vector.broadcast %702 : vector<1x128xi1> to vector<8x128xi1>
    %704 = arith.select %703, %700, %701 : vector<8x128xi1>, vector<8x128xf32>
    %705 = arith.addf %699, %704 : vector<8x128xf32>
    %706 = arith.negf %705 : vector<8x128xf32>
    %707 = math.exp %706 : vector<8x128xf32>
    %cst_222 = arith.constant 1.000000e+00 : f32
    %708 = vector.broadcast %cst_222 : f32 to vector<8x128xf32>
    %709 = arith.addf %708, %707 : vector<8x128xf32>
    %710 = arith.divf %708, %709 : vector<8x128xf32>
    %711 = math.tanh %705 : vector<8x128xf32>
    %712 = vector.extract_strided_slice %710 {offsets = [0, 0], sizes = [8, 32], strides = [1, 1]} : vector<8x128xf32> to vector<8x32xf32>
    %713 = vector.extract_strided_slice %710 {offsets = [0, 32], sizes = [8, 32], strides = [1, 1]} : vector<8x128xf32> to vector<8x32xf32>
    %714 = vector.extract_strided_slice %711 {offsets = [0, 64], sizes = [8, 32], strides = [1, 1]} : vector<8x128xf32> to vector<8x32xf32>
    %715 = vector.extract_strided_slice %710 {offsets = [0, 96], sizes = [8, 32], strides = [1, 1]} : vector<8x128xf32> to vector<8x32xf32>
    %716 = arith.mulf %713, %693 : vector<8x32xf32>
    %717 = arith.mulf %712, %714 : vector<8x32xf32>
    %718 = arith.addf %716, %717 : vector<8x32xf32>
    %719 = math.tanh %718 : vector<8x32xf32>
    %720 = arith.mulf %715, %719 : vector<8x32xf32>
    %cst_223 = arith.constant dense<0.000000e+00> : vector<8x2xf32>
    %721 = tpu.matmul %720, %569, %cst_223 {dimension_numbers = #tpu.dot_dimension_numbers<[1], [0], [0], [1], [0, 0, 1, 1], [], []>} : vector<8x32xf32>, vector<32x2xf32>, vector<8x2xf32> -> vector<8x2xf32>
    %722 = vector.extract_strided_slice %721 {offsets = [0, 0], sizes = [8, 1], strides = [1, 1]} : vector<8x2xf32> to vector<8x1xf32>
    %723 = vector.extract_strided_slice %721 {offsets = [0, 1], sizes = [8, 1], strides = [1, 1]} : vector<8x2xf32> to vector<8x1xf32>
    %cst_224 = arith.constant dense<0.000000e+00> : vector<8x128xf32>
    %724 = tpu.matmul %720, %568, %cst_224 {dimension_numbers = #tpu.dot_dimension_numbers<[1], [0], [0], [1], [0, 0, 1, 1], [], []>} : vector<8x32xf32>, vector<32x128xf32>, vector<8x128xf32> -> vector<8x128xf32>
    %725 = vector.extract_strided_slice %564 {offsets = [48, 0], sizes = [8, 128], strides = [1, 1]} : vector<64x128xf32> to vector<8x128xf32>
    %726 = vector.extract_strided_slice %564 {offsets = [8, 0], sizes = [8, 128], strides = [1, 1]} : vector<64x128xf32> to vector<8x128xf32>
    %727 = vector.shape_cast %567 : vector<1x128xi1> to vector<1x128xi1>
    %728 = vector.broadcast %727 : vector<1x128xi1> to vector<8x128xi1>
    %729 = arith.select %728, %725, %726 : vector<8x128xi1>, vector<8x128xf32>
    %730 = arith.addf %724, %729 : vector<8x128xf32>
    %731 = arith.negf %730 : vector<8x128xf32>
    %732 = math.exp %731 : vector<8x128xf32>
    %cst_225 = arith.constant 1.000000e+00 : f32
    %733 = vector.broadcast %cst_225 : f32 to vector<8x128xf32>
    %734 = arith.addf %733, %732 : vector<8x128xf32>
    %735 = arith.divf %733, %734 : vector<8x128xf32>
    %736 = math.tanh %730 : vector<8x128xf32>
    %737 = vector.extract_strided_slice %735 {offsets = [0, 0], sizes = [8, 32], strides = [1, 1]} : vector<8x128xf32> to vector<8x32xf32>
    %738 = vector.extract_strided_slice %735 {offsets = [0, 32], sizes = [8, 32], strides = [1, 1]} : vector<8x128xf32> to vector<8x32xf32>
    %739 = vector.extract_strided_slice %736 {offsets = [0, 64], sizes = [8, 32], strides = [1, 1]} : vector<8x128xf32> to vector<8x32xf32>
    %740 = vector.extract_strided_slice %735 {offsets = [0, 96], sizes = [8, 32], strides = [1, 1]} : vector<8x128xf32> to vector<8x32xf32>
    %741 = arith.mulf %738, %718 : vector<8x32xf32>
    %742 = arith.mulf %737, %739 : vector<8x32xf32>
    %743 = arith.addf %741, %742 : vector<8x32xf32>
    %744 = math.tanh %743 : vector<8x32xf32>
    %745 = arith.mulf %740, %744 : vector<8x32xf32>
    %cst_226 = arith.constant dense<0.000000e+00> : vector<8x2xf32>
    %746 = tpu.matmul %745, %569, %cst_226 {dimension_numbers = #tpu.dot_dimension_numbers<[1], [0], [0], [1], [0, 0, 1, 1], [], []>} : vector<8x32xf32>, vector<32x2xf32>, vector<8x2xf32> -> vector<8x2xf32>
    %747 = vector.extract_strided_slice %746 {offsets = [0, 0], sizes = [8, 1], strides = [1, 1]} : vector<8x2xf32> to vector<8x1xf32>
    %748 = vector.extract_strided_slice %746 {offsets = [0, 1], sizes = [8, 1], strides = [1, 1]} : vector<8x2xf32> to vector<8x1xf32>
    %cst_227 = arith.constant dense<0.000000e+00> : vector<8x128xf32>
    %749 = tpu.matmul %745, %568, %cst_227 {dimension_numbers = #tpu.dot_dimension_numbers<[1], [0], [0], [1], [0, 0, 1, 1], [], []>} : vector<8x32xf32>, vector<32x128xf32>, vector<8x128xf32> -> vector<8x128xf32>
    %750 = vector.extract_strided_slice %564 {offsets = [56, 0], sizes = [8, 128], strides = [1, 1]} : vector<64x128xf32> to vector<8x128xf32>
    %751 = vector.extract_strided_slice %564 {offsets = [0, 0], sizes = [8, 128], strides = [1, 1]} : vector<64x128xf32> to vector<8x128xf32>
    %752 = vector.shape_cast %567 : vector<1x128xi1> to vector<1x128xi1>
    %753 = vector.broadcast %752 : vector<1x128xi1> to vector<8x128xi1>
    %754 = arith.select %753, %750, %751 : vector<8x128xi1>, vector<8x128xf32>
    %755 = arith.addf %749, %754 : vector<8x128xf32>
    %756 = arith.negf %755 : vector<8x128xf32>
    %757 = math.exp %756 : vector<8x128xf32>
    %cst_228 = arith.constant 1.000000e+00 : f32
    %758 = vector.broadcast %cst_228 : f32 to vector<8x128xf32>
    %759 = arith.addf %758, %757 : vector<8x128xf32>
    %760 = arith.divf %758, %759 : vector<8x128xf32>
    %761 = math.tanh %755 : vector<8x128xf32>
    %762 = vector.extract_strided_slice %760 {offsets = [0, 0], sizes = [8, 32], strides = [1, 1]} : vector<8x128xf32> to vector<8x32xf32>
    %763 = vector.extract_strided_slice %760 {offsets = [0, 32], sizes = [8, 32], strides = [1, 1]} : vector<8x128xf32> to vector<8x32xf32>
    %764 = vector.extract_strided_slice %761 {offsets = [0, 64], sizes = [8, 32], strides = [1, 1]} : vector<8x128xf32> to vector<8x32xf32>
    %765 = vector.extract_strided_slice %760 {offsets = [0, 96], sizes = [8, 32], strides = [1, 1]} : vector<8x128xf32> to vector<8x32xf32>
    %766 = arith.mulf %763, %743 : vector<8x32xf32>
    %767 = arith.mulf %762, %764 : vector<8x32xf32>
    %768 = arith.addf %766, %767 : vector<8x32xf32>
    %769 = math.tanh %768 : vector<8x32xf32>
    %770 = arith.mulf %765, %769 : vector<8x32xf32>
    %cst_229 = arith.constant dense<0.000000e+00> : vector<8x2xf32>
    %771 = tpu.matmul %770, %569, %cst_229 {dimension_numbers = #tpu.dot_dimension_numbers<[1], [0], [0], [1], [0, 0, 1, 1], [], []>} : vector<8x32xf32>, vector<32x2xf32>, vector<8x2xf32> -> vector<8x2xf32>
    %772 = vector.extract_strided_slice %771 {offsets = [0, 0], sizes = [8, 1], strides = [1, 1]} : vector<8x2xf32> to vector<8x1xf32>
    %773 = vector.extract_strided_slice %771 {offsets = [0, 1], sizes = [8, 1], strides = [1, 1]} : vector<8x2xf32> to vector<8x1xf32>
    %774 = arith.addf %597, %773 : vector<8x1xf32>
    %775 = arith.addf %622, %748 : vector<8x1xf32>
    %776 = arith.addf %647, %723 : vector<8x1xf32>
    %777 = arith.addf %672, %698 : vector<8x1xf32>
    %778 = arith.addf %697, %673 : vector<8x1xf32>
    %779 = arith.addf %722, %648 : vector<8x1xf32>
    %780 = arith.addf %747, %623 : vector<8x1xf32>
    %781 = arith.addf %772, %598 : vector<8x1xf32>
    %782 = arith.maximumf %774, %775 : vector<8x1xf32>
    %783 = arith.maximumf %782, %776 : vector<8x1xf32>
    %784 = arith.maximumf %783, %777 : vector<8x1xf32>
    %785 = arith.maximumf %784, %778 : vector<8x1xf32>
    %786 = arith.maximumf %785, %779 : vector<8x1xf32>
    %787 = arith.maximumf %786, %780 : vector<8x1xf32>
    %788 = arith.maximumf %787, %781 : vector<8x1xf32>
    %789 = arith.subf %774, %788 : vector<8x1xf32>
    %790 = math.exp %789 : vector<8x1xf32>
    %791 = arith.subf %775, %788 : vector<8x1xf32>
    %792 = math.exp %791 : vector<8x1xf32>
    %793 = arith.subf %776, %788 : vector<8x1xf32>
    %794 = math.exp %793 : vector<8x1xf32>
    %795 = arith.subf %777, %788 : vector<8x1xf32>
    %796 = math.exp %795 : vector<8x1xf32>
    %797 = arith.subf %778, %788 : vector<8x1xf32>
    %798 = math.exp %797 : vector<8x1xf32>
    %799 = arith.subf %779, %788 : vector<8x1xf32>
    %800 = math.exp %799 : vector<8x1xf32>
    %801 = arith.subf %780, %788 : vector<8x1xf32>
    %802 = math.exp %801 : vector<8x1xf32>
    %803 = arith.subf %781, %788 : vector<8x1xf32>
    %804 = math.exp %803 : vector<8x1xf32>
    %805 = arith.addf %790, %792 : vector<8x1xf32>
    %806 = arith.addf %805, %794 : vector<8x1xf32>
    %807 = arith.addf %806, %796 : vector<8x1xf32>
    %808 = arith.addf %807, %798 : vector<8x1xf32>
    %809 = arith.addf %808, %800 : vector<8x1xf32>
    %810 = arith.addf %809, %802 : vector<8x1xf32>
    %811 = arith.addf %810, %804 : vector<8x1xf32>
    %812 = tpu.reciprocal %811 {approx = true} : vector<8x1xf32> -> vector<8x1xf32>
    %813 = arith.mulf %790, %812 : vector<8x1xf32>
    %c0_230 = arith.constant 0 : index
    %c0_231 = arith.constant 0 : index
    %814 = vector.load %arg28[%c0_230, %c0_231] : memref<64x128xf32, #tpu.memory_space<vmem>>, vector<8x128xf32>
    %815 = vector.broadcast %813 : vector<8x1xf32> to vector<8x128xf32>
    %816 = arith.mulf %815, %814 : vector<8x128xf32>
    %817 = arith.mulf %792, %812 : vector<8x1xf32>
    %c8_232 = arith.constant 8 : index
    %c0_233 = arith.constant 0 : index
    %818 = vector.load %arg28[%c8_232, %c0_233] : memref<64x128xf32, #tpu.memory_space<vmem>>, vector<8x128xf32>
    %819 = vector.broadcast %817 : vector<8x1xf32> to vector<8x128xf32>
    %820 = arith.mulf %819, %818 : vector<8x128xf32>
    %821 = arith.addf %816, %820 : vector<8x128xf32>
    %822 = arith.mulf %794, %812 : vector<8x1xf32>
    %c16_234 = arith.constant 16 : index
    %c0_235 = arith.constant 0 : index
    %823 = vector.load %arg28[%c16_234, %c0_235] : memref<64x128xf32, #tpu.memory_space<vmem>>, vector<8x128xf32>
    %824 = vector.broadcast %822 : vector<8x1xf32> to vector<8x128xf32>
    %825 = arith.mulf %824, %823 : vector<8x128xf32>
    %826 = arith.addf %821, %825 : vector<8x128xf32>
    %827 = arith.mulf %796, %812 : vector<8x1xf32>
    %c24_236 = arith.constant 24 : index
    %c0_237 = arith.constant 0 : index
    %828 = vector.load %arg28[%c24_236, %c0_237] : memref<64x128xf32, #tpu.memory_space<vmem>>, vector<8x128xf32>
    %829 = vector.broadcast %827 : vector<8x1xf32> to vector<8x128xf32>
    %830 = arith.mulf %829, %828 : vector<8x128xf32>
    %831 = arith.addf %826, %830 : vector<8x128xf32>
    %832 = arith.mulf %798, %812 : vector<8x1xf32>
    %c32_238 = arith.constant 32 : index
    %c0_239 = arith.constant 0 : index
    %833 = vector.load %arg28[%c32_238, %c0_239] : memref<64x128xf32, #tpu.memory_space<vmem>>, vector<8x128xf32>
    %834 = vector.broadcast %832 : vector<8x1xf32> to vector<8x128xf32>
    %835 = arith.mulf %834, %833 : vector<8x128xf32>
    %836 = arith.addf %831, %835 : vector<8x128xf32>
    %837 = arith.mulf %800, %812 : vector<8x1xf32>
    %c40_240 = arith.constant 40 : index
    %c0_241 = arith.constant 0 : index
    %838 = vector.load %arg28[%c40_240, %c0_241] : memref<64x128xf32, #tpu.memory_space<vmem>>, vector<8x128xf32>
    %839 = vector.broadcast %837 : vector<8x1xf32> to vector<8x128xf32>
    %840 = arith.mulf %839, %838 : vector<8x128xf32>
    %841 = arith.addf %836, %840 : vector<8x128xf32>
    %842 = arith.mulf %802, %812 : vector<8x1xf32>
    %c48_242 = arith.constant 48 : index
    %c0_243 = arith.constant 0 : index
    %843 = vector.load %arg28[%c48_242, %c0_243] : memref<64x128xf32, #tpu.memory_space<vmem>>, vector<8x128xf32>
    %844 = vector.broadcast %842 : vector<8x1xf32> to vector<8x128xf32>
    %845 = arith.mulf %844, %843 : vector<8x128xf32>
    %846 = arith.addf %841, %845 : vector<8x128xf32>
    %847 = arith.mulf %804, %812 : vector<8x1xf32>
    %c56_244 = arith.constant 56 : index
    %c0_245 = arith.constant 0 : index
    %848 = vector.load %arg28[%c56_244, %c0_245] : memref<64x128xf32, #tpu.memory_space<vmem>>, vector<8x128xf32>
    %849 = vector.broadcast %847 : vector<8x1xf32> to vector<8x128xf32>
    %850 = arith.mulf %849, %848 : vector<8x128xf32>
    %851 = arith.addf %846, %850 : vector<8x128xf32>
    %c0_246 = arith.constant 0 : index
    %c0_247 = arith.constant 0 : index
    %c0_248 = arith.constant 0 : index
    %852 = vector.load %arg27[%c0_246, %c0_247, %c0_248] : memref<1x8x128xf32, #tpu.memory_space<vmem>>, vector<1x8x128xf32>
    %853 = vector.shape_cast %852 : vector<1x8x128xf32> to vector<8x128xf32>
    %854 = vector.shape_cast %851 : vector<8x128xf32> to vector<1x8x128xf32>
    tpu.vector_store %arg27[%c0_246, %c0_247, %c0_248], %854 {strides = array<i32>} : memref<1x8x128xf32, #tpu.memory_space<vmem>>, vector<1x8x128xf32>,
    return
  }
  func.func @transform_0(%arg0: i32) -> (i32, i32, i32) {
    %c0_i32 = arith.constant 0 : i32
    %c0_i32_0 = arith.constant 0 : i32
    %c0_i32_1 = arith.constant 0 : i32
    return %arg0, %c0_i32, %c0_i32_0 : i32, i32, i32
  }
  func.func @transform_1(%arg0: i32) -> (i32, i32, i32) {
    %c0_i32 = arith.constant 0 : i32
    %c0_i32_0 = arith.constant 0 : i32
    %c0_i32_1 = arith.constant 0 : i32
    return %arg0, %c0_i32, %c0_i32_0 : i32, i32, i32
  }
  func.func @transform_2(%arg0: i32) -> (i32, i32, i32) {
    %c0_i32 = arith.constant 0 : i32
    %c0_i32_0 = arith.constant 0 : i32
    %c0_i32_1 = arith.constant 0 : i32
    return %arg0, %c0_i32, %c0_i32_0 : i32, i32, i32
  }
  func.func @transform_3(%arg0: i32) -> (i32, i32) {
    %c0_i32 = arith.constant 0 : i32
    %c0_i32_0 = arith.constant 0 : i32
    %c0_i32_1 = arith.constant 0 : i32
    return %c0_i32, %c0_i32_0 : i32, i32
  }
  func.func @transform_4(%arg0: i32) -> (i32, i32) {
    %c0_i32 = arith.constant 0 : i32
    %c0_i32_0 = arith.constant 0 : i32
    %c0_i32_1 = arith.constant 0 : i32
    return %c0_i32, %c0_i32_0 : i32, i32
  }
  func.func @transform_5(%arg0: i32) -> (i32, i32) {
    %c0_i32 = arith.constant 0 : i32
    %c0_i32_0 = arith.constant 0 : i32
    %c0_i32_1 = arith.constant 0 : i32
    return %c0_i32, %c0_i32_0 : i32, i32
  }
  func.func @transform_6(%arg0: i32) -> (i32, i32) {
    %c0_i32 = arith.constant 0 : i32
    %c0_i32_0 = arith.constant 0 : i32
    %c0_i32_1 = arith.constant 0 : i32
    return %c0_i32, %c0_i32_0 : i32, i32
  }
  func.func @transform_7(%arg0: i32) -> (i32, i32) {
    %c0_i32 = arith.constant 0 : i32
    %c0_i32_0 = arith.constant 0 : i32
    %c0_i32_1 = arith.constant 0 : i32
    return %c0_i32, %c0_i32_0 : i32, i32
  }
  func.func @transform_8(%arg0: i32) -> (i32, i32) {
    %c0_i32 = arith.constant 0 : i32
    %c0_i32_0 = arith.constant 0 : i32
    %c0_i32_1 = arith.constant 0 : i32
    return %c0_i32, %c0_i32_0 : i32, i32
  }
  func.func @transform_9(%arg0: i32) -> (i32, i32) {
    %c0_i32 = arith.constant 0 : i32
    %c0_i32_0 = arith.constant 0 : i32
    %c0_i32_1 = arith.constant 0 : i32
    return %c0_i32, %c0_i32_0 : i32, i32
  }
  func.func @transform_10(%arg0: i32) -> (i32, i32) {
    %c0_i32 = arith.constant 0 : i32
    %c0_i32_0 = arith.constant 0 : i32
    %c0_i32_1 = arith.constant 0 : i32
    return %c0_i32, %c0_i32_0 : i32, i32
  }
  func.func @transform_11(%arg0: i32) -> (i32, i32, i32) {
    %c0_i32 = arith.constant 0 : i32
    %c0_i32_0 = arith.constant 0 : i32
    %c0_i32_1 = arith.constant 0 : i32
    return %arg0, %c0_i32, %c0_i32_0 : i32, i32, i32
  }
  func.func @transform_12(%arg0: i32) -> (i32, i32, i32) {
    %c0_i32 = arith.constant 0 : i32
    %c0_i32_0 = arith.constant 0 : i32
    %c0_i32_1 = arith.constant 0 : i32
    return %arg0, %c0_i32, %c0_i32_0 : i32, i32, i32
  }
  func.func @transform_13(%arg0: i32) -> (i32, i32) {
    %c0_i32 = arith.constant 0 : i32
    %c0_i32_0 = arith.constant 0 : i32
    %c0_i32_1 = arith.constant 0 : i32
    return %c0_i32, %c0_i32_0 : i32, i32
  }
  func.func @transform_14(%arg0: i32) -> (i32, i32) {
    %c0_i32 = arith.constant 0 : i32
    %c0_i32_0 = arith.constant 0 : i32
    %c0_i32_1 = arith.constant 0 : i32
    return %c0_i32, %c0_i32_0 : i32, i32
  }
  func.func @transform_15(%arg0: i32) -> (i32, i32) {
    %c0_i32 = arith.constant 0 : i32
    %c0_i32_0 = arith.constant 0 : i32
    %c0_i32_1 = arith.constant 0 : i32
    return %c0_i32, %c0_i32_0 : i32, i32
  }
  func.func @transform_16(%arg0: i32) -> (i32, i32) {
    %c0_i32 = arith.constant 0 : i32
    %c0_i32_0 = arith.constant 0 : i32
    %c0_i32_1 = arith.constant 0 : i32
    return %c0_i32, %c0_i32_0 : i32, i32
  }
  func.func @transform_17(%arg0: i32) -> (i32, i32, i32) {
    %c0_i32 = arith.constant 0 : i32
    %c0_i32_0 = arith.constant 0 : i32
    %c0_i32_1 = arith.constant 0 : i32
    return %arg0, %c0_i32, %c0_i32_0 : i32, i32, i32
  }
  func.func @transform_18(%arg0: i32) -> (i32, i32, i32) {
    %c0_i32 = arith.constant 0 : i32
    %c0_i32_0 = arith.constant 0 : i32
    %c0_i32_1 = arith.constant 0 : i32
    return %arg0, %c0_i32, %c0_i32_0 : i32, i32, i32
  }
  func.func @transform_19(%arg0: i32) -> (i32, i32) {
    %c0_i32 = arith.constant 0 : i32
    %c0_i32_0 = arith.constant 0 : i32
    %c0_i32_1 = arith.constant 0 : i32
    return %c0_i32, %c0_i32_0 : i32, i32
  }
  func.func @transform_20(%arg0: i32) -> (i32, i32) {
    %c0_i32 = arith.constant 0 : i32
    %c0_i32_0 = arith.constant 0 : i32
    %c0_i32_1 = arith.constant 0 : i32
    return %c0_i32, %c0_i32_0 : i32, i32
  }
  func.func @transform_21(%arg0: i32) -> (i32, i32) {
    %c0_i32 = arith.constant 0 : i32
    %c0_i32_0 = arith.constant 0 : i32
    %c0_i32_1 = arith.constant 0 : i32
    return %c0_i32, %c0_i32_0 : i32, i32
  }
  func.func @transform_22(%arg0: i32) -> (i32, i32) {
    %c0_i32 = arith.constant 0 : i32
    %c0_i32_0 = arith.constant 0 : i32
    %c0_i32_1 = arith.constant 0 : i32
    return %c0_i32, %c0_i32_0 : i32, i32
  }
  func.func @transform_23(%arg0: i32) -> (i32, i32, i32) {
    %c0_i32 = arith.constant 0 : i32
    %c0_i32_0 = arith.constant 0 : i32
    %c0_i32_1 = arith.constant 0 : i32
    return %arg0, %c0_i32, %c0_i32_0 : i32, i32, i32
  }
  func.func @transform_24(%arg0: i32) -> (i32, i32, i32) {
    %c0_i32 = arith.constant 0 : i32
    %c0_i32_0 = arith.constant 0 : i32
    %c0_i32_1 = arith.constant 0 : i32
    return %arg0, %c0_i32, %c0_i32_0 : i32, i32, i32
  }
  func.func @transform_25(%arg0: i32) -> (i32, i32) {
    %c0_i32 = arith.constant 0 : i32
    %c0_i32_0 = arith.constant 0 : i32
    %c0_i32_1 = arith.constant 0 : i32
    return %c0_i32, %c0_i32_0 : i32, i32
  }
  func.func @transform_26(%arg0: i32) -> (i32, i32, i32) {
    %c0_i32 = arith.constant 0 : i32
    %c0_i32_0 = arith.constant 0 : i32
    %c0_i32_1 = arith.constant 0 : i32
    return %arg0, %c0_i32, %c0_i32_0 : i32, i32, i32
  }
}

</mosaic_0001>

<bundles_post_ra>
// kernel: bilstm_enc_ram_forward.1
= control target key start
LH: loop header
LB: loop body
LE: loop exit
PB: predicated region body
PF: predicated region fallthrough
CT: control target
= control target key end

     0   :  { %vm270_vm0 = vcmask 1043456   ;;  %vm257_vm1 = vcmask 64512   ;;  %vm135_vm2 = vcmask 130048   ;;  %v5301_v17 = vmov 0.0|0.0   ;;  %s6458_s5 = inlined_call_operand.vmem [shape: bf16[8,32], index: 5, kind: input, shape index: {}]   ;;  %s6459_s3 = inlined_call_operand.vmem [shape: bf16[16,64], index: 3, kind: input, shape index: {}]   ;;  %s6460_s1 = inlined_call_operand.vmem [shape: bf16[1,64,8], index: 1, kind: input, shape index: {}]   ;;  %s6461_s0 = inlined_call_operand.vmem [shape: bf16[1,64,16], index: 0, kind: input, shape index: {}]   ;;  %s6462_s7 = inlined_call_operand.vmem [shape: bf16[64,128], index: 7, kind: input, shape index: {}]   ;;  %s6463_s13 = inlined_call_operand.vmem [shape: bf16[32,64], index: 13, kind: input, shape index: {}]   ;;  %s6464_s12 = inlined_call_operand.vmem [shape: f32[1,8,32], index: 12, kind: input, shape index: {}]   ;;  %s6465_s18 = inlined_call_operand.vmem [shape: f32[1,8,16], index: 18, kind: input, shape index: {}]   ;;  %s6466_s6 = inlined_call_operand.vmem [shape: f32[1,32], index: 6, kind: input, shape index: {}]   ;;  %s6467_s4 = inlined_call_operand.vmem [shape: f32[1,64], index: 4, kind: input, shape index: {}]   ;;  %s6468_s14 = inlined_call_operand.vmem [shape: f32[16,64], index: 14, kind: input, shape index: {}]   ;;  %s6469_s8 = inlined_call_operand.vmem [shape: f32[32,128], index: 8, kind: input, shape index: {}]   ;;  %s6470_s17 = inlined_call_operand.vmem [shape: f32[1,8,16], index: 17, kind: input, shape index: {}]   ;;  %s6471_s11 = inlined_call_operand.vmem [shape: f32[1,8,32], index: 11, kind: input, shape index: {}]   ;;  %s6472_s16 = inlined_call_operand.vmem [shape: f32[1,64], index: 16, kind: input, shape index: {}]   ;;  %s6473_s10 = inlined_call_operand.vmem [shape: f32[1,128], index: 10, kind: input, shape index: {}, may-alias: {10,21}]   ;;  %s6474_s15 = inlined_call_operand.vmem [shape: f32[1,64], index: 15, kind: input, shape index: {}]   ;;  %s6475_s9 = inlined_call_operand.vmem [shape: f32[1,128], index: 9, kind: input, shape index: {}]   ;;  %s6476_s2 = inlined_call_operand.vmem [shape: f32[1,64,1], index: 2, kind: input, shape index: {}]   ;;  %s6477_s19 = inlined_call_operand.vmem [shape: bf16[128,128], index: 19, kind: input, shape index: {}]   ;;  %s6478_s22 = inlined_call_operand.vmem [shape: f32[32,128], index: 22, kind: input, shape index: {}]   ;;  %s6479_s23 = inlined_call_operand.vmem [shape: f32[1,8,32], index: 23, kind: input, shape index: {}]   ;;  %s6480_s24 = inlined_call_operand.vmem [shape: f32[1,8,32], index: 24, kind: input, shape index: {}]   ;;  %s6481_s20 = inlined_call_operand.vmem [shape: f32[1,128], index: 20, kind: input, shape index: {}]   ;;  %s6482_s21 = inlined_call_operand.vmem [shape: f32[1,128], index: 21, kind: input, shape index: {}, may-alias: {10,21}]   ;;  %s6483_s25 = inlined_call_operand.vmem [shape: f32[32,2], index: 25, kind: input, shape index: {}]   ;;  %s6484_s26 = inlined_call_operand.vmem [shape: f32[1,8,128], index: 26, kind: output, shape index: {}]  }
   0x1   :  { %6490 = sst [smem:[#allocation3_spill]] %s6458_s5  ;;  %v5302_v18 = vmov 0.0   ;;  %vm495_vm3 = vcmask 261120   ;;  %vm390_vm4 = vcmask 523264   ;;  %vm5305_vm5 = vmmov 0  }
   0x2   :  { %6491 = sst [smem:[#allocation4_spill]] %s6459_s3  ;;  %84 = vst [vmem:[#allocation2] sm:$0xff] %v5302_v18  ;;  %85 = vst [vmem:[#allocation2 + $0x8] sm:$0xff] %v5302_v18  ;;  %s5304_s3 = smov 16   ;;  %vm833_vm10 = vcmask 326912   ;;  %vm826_vm11 = vcmask 261248  }
   0x3   :  { %6492 = sst [smem:[#allocation5_spill]] %s6460_s1  ;;  %86 = vst [vmem:[#allocation2 + $0x10] sm:$0xff] %v5302_v18  ;;  %87 = vst [vmem:[#allocation2 + $0x18] sm:$0xff] %v5302_v18  ;;  %vm840_vm12 = vcmask 392512  }
   0x4   :  { %6493 = sst [smem:[#allocation6_spill]] %s6461_s0  ;;  %88 = vst [vmem:[#allocation2 + $0x20] sm:$0xff] %v5302_v18  ;;  %89 = vst [vmem:[#allocation2 + $0x28] sm:$0xff] %v5302_v18 }
   0x5   :  { %6494 = sst [smem:[#allocation7_spill]] %s6462_s7  ;;  %s6502_s7 = sld [smem:[#allocation4_spill]]  ;;  %90 = vst [vmem:[#allocation2 + $0x30] sm:$0xff] %v5302_v18  ;;  %91 = vst [vmem:[#allocation2 + $0x38] sm:$0xff] %v5302_v18 }
   0x6   :  { %6495 = sst [smem:[#allocation8_spill]] %s6463_s13 }
   0x7   :  { %6496 = sst [smem:[#allocation9_spill]] %s6464_s12  ;;  %s6504_s12 = sld [smem:[#allocation6_spill]] }
   0x8   :  { %6497 = sst [smem:[#allocation10_spill]] %s6465_s18  ;;  %s6501_s18 = sld [smem:[#allocation3_spill]] }
   0x9   :  { %6498 = sst [smem:[#allocation11_spill]] %s6466_s6  ;;  %s6507_s13 = sld [smem:[#allocation9_spill]] }
   0xa   :  { %6499 = sst [smem:[#allocation12_spill]] %s6467_s4  ;;  %s6503_s4 = sld [smem:[#allocation5_spill]] }
   0xb   :  { %6500 = sst [smem:[#allocation13_spill]] %s6468_s14  ;;  %v5035_v2 = vld [vmem:[%s6502_s7] sm:$0xff]   ;;  %s6505_s14 = sld [smem:[#allocation7_spill]] }
   0xc   :  { %4461 = vmatprep.subr.bf16.mxu0 %v5035_v2  ;;  %s6509_s28 = sld [smem:[#allocation11_spill]]  ;;  %s6510_s29 = sld [smem:[#allocation12_spill]] }
   0xd   :  { %4462 = vmatpush3.bf16.msra.mxu0 %v5035_v2  ;;  %v5038_v5 = vld [vmem:[%s6504_s12] sm:$0xff]   ;;  %v5039_v6 = vld [vmem:[%s6504_s12 + $0x8] sm:$0xff]   ;;  %v5042_v8 = vld [vmem:[%s6504_s12 + $0x10] sm:$0xff]   ;;  %s6511_s5 = sld [smem:[#allocation13_spill]] }
   0xe   :  { %v229_v0 = vld [vmem:[%s6501_s18] sm:$0xf]  ;;  %4463 = vmatprep.mubr.msk.bf16.mxu0 %vm135_vm2, %v5038_v5  ;;  %v5043_v10 = vld [vmem:[%s6504_s12 + $0x18] sm:$0xff]   ;;  %s6506_s18 = sld [smem:[#allocation8_spill]] }
   0xf   :  { %5021 = vmatprep.subr.msk.bf16.mxu1 %vm270_vm0, %v229_v0  ;;  %v272_v1 = vsel %vm270_vm0, %v229_v0, 0  ;;  %v584_v19 = vld [vmem:[%s6507_s13] sm:$0xff] }
  0x10   :  { %4472 = vmatpush3.bf16.msra.mxu1 %v272_v1  ;;  %v5036_v3 = vld [vmem:[%s6503_s4] sm:$0xff]   ;;  %v5037_v4 = vld [vmem:[%s6503_s4 + $0x8] sm:$0xff]   ;;  %v5040_v7 = vld [vmem:[%s6503_s4 + $0x10] sm:$0xff]   ;;  %4464 = vmatmul.mubr.msk.bf16.vlgmr.msra.gmra.mrb[0].mxu0 %vm135_vm2, %v5039_v6 }
  0x11   :  { %4473 = vmatprep.mubr.msk.bf16.mxu1 %vm257_vm1, %v5036_v3  ;;  %v5041_v9 = vld [vmem:[%s6503_s4 + $0x18] sm:$0xff]   ;;  %4467 = vmatprep.mubr.msk.bf16.mxu0 %vm135_vm2, %v5042_v8  ;;  %v5044_v11 = vld [vmem:[%s6505_s14] sm:$0xff]   ;;  %v5045_v12 = vld [vmem:[%s6505_s14 + $0x8] sm:$0xff]   ;;  %s6508_s4 = sld [smem:[#allocation10_spill]] }
  0x12   :  { %4481 = vmatprep.subr.bf16.mxu0 %v5044_v11  ;;  %v5047_v14 = vld [vmem:[%s6505_s14 + $0x10] sm:$0xff]   ;;  %v5049_v16 = vld [vmem:[%s6505_s14 + $0x18] sm:$0xff]   ;;  %s5303_s14 = smov 32   ;;  %v4191_v21 = vld [vmem:[%s6509_s28] ss:$0 sm:$0xff] }
  0x13   :  { %4474 = vmatmul.mubr.msk.bf16.vlgmr.msra.gmra.mrb[0].mxu1 %vm257_vm1, %v5037_v4  ;;  %4482 = vmatpush3.bf16.msra.mxu0 %v5044_v11  ;;  %v4181_v23 = vld [vmem:[%s6510_s29] ss:$0 sm:$0xff]  ;;  %v582_v60 = vld [vmem:[%s6511_s5 + $0x8] sm:$0xff]  ;;  %v579_v11 = vld [vmem:[%s6469_s8 + $0x10] sm:$0xff] }
  0x14   :  { %4477 = vmatprep.mubr.msk.bf16.mxu1 %vm257_vm1, %v5040_v7  ;;  %4483 = vmatprep.subr.bf16.mxu0 %v5045_v12  ;;  %v5046_v13 = vld [vmem:[%s6506_s18] sm:$0xff]   ;;  %v5048_v15 = vld [vmem:[%s6506_s18 + $0x8] sm:$0xff]  }
  0x15   :  { %4497 = vmatprep.subr.bf16.mxu1 %v5046_v13  ;;  %675 = vrot.lane.b32.xlu1 %v584_v19, %s5303_s14  ;;  %v581_v59 = vld [vmem:[%s6511_s5] sm:$0xff]  ;;  %v578_v1 = vld [vmem:[%s6469_s8 + $0x8] sm:$0xff] }
  0x16   :  { %4498 = vmatpush3.bf16.msra.mxu1 %v5046_v13  ;;  %v577_v0 = vld [vmem:[%s6469_s8] sm:$0xff]  ;;  %v5539_v4 = vpack.c.bf16 %v582_v60, %v581_v59 }
  0x17   :  { %4484 = vmatpush3.bf16.msra.mxu0 %v5045_v12  ;;  %4499 = vmatprep.subr.bf16.mxu1 %v5048_v15  ;;  %v586_v20 = vld [vmem:[%s6508_s4] sm:$0xff]  ;;  %v580_v12 = vld [vmem:[%s6469_s8 + $0x18] sm:$0xff] }
  0x18   :  { %4468 = vmatmul.mubr.msk.bf16.gmra.mrb[4].mxu0 %vm135_vm2, %v5043_v10  ;;  %4485 = vmatprep.subr.bf16.mxu0 %v5047_v14  ;;  %v5556_v19 = vpack.c.bf16 %v580_v12, %v579_v11 }
  0x19   :  { %783 = vrot.lane.b32.xlu1 %v586_v20, %s5304_s3 }
  0x1a   :  { %4500 = vmatpush3.bf16.msra.mxu1 %v5048_v15 }
  0x1b   :  { %4478 = vmatmul.mubr.msk.bf16.gmra.mrb[4].mxu1 %vm257_vm1, %v5041_v9  ;;  %4486 = vmatpush3.bf16.msra.mxu0 %v5047_v14  ;;  %v5542_v9 = vpack.c.bf16 %v578_v1, %v577_v0 }
  0x1c   :  { %4487 = vmatprep.subr.bf16.mxu0 %v5049_v16  ;;  %4859 = vmatprep.subr.bf16.mxu1 %v5301_v17 }
  0x1f   :  { %4488 = vmatpush3.bf16.msra.mxu0 %v5049_v16 }
  0x20   :  { %4853 = vmatprep.subr.bf16.mxu0 %v5301_v17 }
  0xe3   :  { %v4465_v27 = vpop.f32.mrb[0].mxu0 }
  0xe4   :  { %v191_v29 = vadd.f32 %v4465_v27, %v4181_v23  ;;  %v182_v31 = vpop.f32.mrb[1].mxu0  ;;  %v583_v27 = vld [vmem:[%s6471_s11] sm:$0xff] }
  0xe5   :  { %v183_v33 = vadd.f32 %v4181_v23, %v182_v31  ;;  %v4466_v35 = vpop.f32.mrb[2].mxu0 }
  0xe6   :  { %v4475_v22 = vpop.f32.mrb[0].mxu1  ;;  %v194_v36 = vadd.f32 %v4466_v35, %v4181_v23  ;;  %v185_v37 = vpop.f32.mrb[3].mxu0  ;;  %v4200_v35 = vld [vmem:[%s6475_s9] ss:$0 sm:$0xff]  ;;  %s5307_s9 = smov 64  }
  0xe7   :  { %v317_v24 = vadd.f32 %v4475_v22, %v4191_v21  ;;  %v308_v25 = vpop.f32.mrb[1].mxu1  ;;  %v186_v38 = vadd.f32 %v4181_v23, %v185_v37 }
  0xe8   :  { %v309_v26 = vadd.f32 %v4191_v21, %v308_v25  ;;  %v4476_v28 = vpop.f32.mrb[2].mxu1 }
  0xe9   :  { %5058 = vtanh.f32 %v317_v24  ;;  %v320_v30 = vadd.f32 %v4476_v28, %v4191_v21  ;;  %v311_v32 = vpop.f32.mrb[3].mxu1  ;;  %v5306_v28 = vmov 0  }
  0xea   :  { %5060 = vtanh.f32 %v309_v26  ;;  %v312_v34 = vadd.f32 %v4191_v21, %v311_v32  ;;  %v585_v26 = vld [vmem:[%s6470_s17] sm:$0xff]  ;;  %5033 = vset.pattern.permute.xlu0 %v5306_v28  ;;  %5034 = vset.pattern.permute.xlu1 %v5306_v28 }
  0xeb   :  { %5062 = vtanh.f32 %v191_v29  ;;  %v4469_v43 = vpop.f32.mrb[4].mxu0  ;;  %v588_v29 = vlaneseq  ;;  %v573_v32 = vld [vmem:[%s6473_s10] sm:$0x1]  ;;  %s5308_s10 = smov 96  }
  0xec   :  { %5064 = vtanh.f32 %v320_v30  ;;  %v207_v45 = vadd.f32 %v4469_v43, %v4181_v23  ;;  %v198_v47 = vpop.f32.mrb[5].mxu0  ;;  %v575_v30 = vld [vmem:[%s6472_s16] sm:$0x1]  ;;  %vm574_vm7 = vcmp.gt.f32.partialorder %v573_v32, 0.5 }
  0xed   :  { %5066 = vtanh.f32 %v183_v33  ;;  %v199_v49 = vadd.f32 %v4181_v23, %v198_v47  ;;  %v4470_v51 = vpop.f32.mrb[6].mxu0  ;;  %v589_v31 = vshrl.u32 %v588_v29, 7  ;;  %v4209_v33 = vld [vmem:[%s6474_s15] ss:$0 sm:$0xff]  ;;  %vm576_vm6 = vcmp.gt.f32.partialorder %v575_v30, 0.5  ;;  %s5309_s15 = smov 80  }
  0xee   :  { %5068 = vtanh.f32 %v312_v34  ;;  %v4479_v39 = vpop.f32.mrb[4].mxu1  ;;  %v210_v53 = vadd.f32 %v4470_v51, %v4181_v23  ;;  %v201_v54 = vpop.f32.mrb[7].mxu0 }
  0xef   :  { %5070 = vtanh.f32 %v194_v36  ;;  %v333_v40 = vadd.f32 %v4479_v39, %v4191_v21  ;;  %v324_v41 = vpop.f32.mrb[5].mxu1  ;;  %v202_v56 = vadd.f32 %v4181_v23, %v201_v54  ;;  %v5601_v36 = vsub.s32 0, %v589_v31 }
  0xf0   :  { %5072 = vtanh.f32 %v186_v38  ;;  %v325_v42 = vadd.f32 %v4191_v21, %v324_v41  ;;  %v4480_v44 = vpop.f32.mrb[6].mxu1  ;;  %v695_v39 = vsel %vm576_vm6, 1, %v5306_v28 }
  0xf1   :  { %5074 = vtanh.f32 %v333_v40  ;;  %v336_v46 = vadd.f32 %v4480_v44, %v4191_v21  ;;  %v327_v48 = vpop.f32.mrb[7].mxu1 }
  0xf2   :  { %5076 = vtanh.f32 %v325_v42  ;;  %v328_v50 = vadd.f32 %v4191_v21, %v327_v48 }
  0xf3   :  { %v5059_v52 = vpop.eup %5058  ;;  %5078 = vtanh.f32 %v207_v45 }
  0xf4   :  { %v5061_v55 = vpop.eup %5060  ;;  %5080 = vtanh.f32 %v336_v46  ;;  %v587_v46 = vsel %vm574_vm7, 1, %v5306_v28 }
  0xf5   :  { %v5063_v57 = vpop.eup %5062  ;;  %5082 = vtanh.f32 %v199_v49  ;;  %v699_v49 = vrot.slane %v695_v39, %v5601_v36 }
  0xf6   :  { %v5065_v58 = vpop.eup %5064  ;;  %5084 = vtanh.f32 %v328_v50 }
  0xf7   :  { %v5067_v61 = vpop.eup %5066  ;;  %v469_v62 = vpack.c.bf16 %v5065_v58, %v5059_v52  ;;  %5086 = vtanh.f32 %v210_v53  ;;  %v591_v53 = vrot.slane %v587_v46, %v5601_v36  ;;  %vm5619_vm8 = vcmp.eq.s32.totalorder %v699_v49, 1 }
  0xf8   :  { %v5069_v63 = vpop.eup %5068  ;;  %5088 = vtanh.f32 %v202_v56 }
  0xf9   :  { %v5071_v2 = vpop.eup %5070  ;;  %v468_v3 = vpack.c.bf16 %v5069_v63, %v5061_v55  ;;  %vm5631_vm9 = vcmp.eq.s32.totalorder %v591_v53, 1 }
  0xfa   :  { %v5073_v5 = vpop.eup %5072  ;;  %v348_v6 = vpack.c.bf16 %v5071_v2, %v5063_v57 }
  0xfb   :  { %v5075_v7 = vpop.eup %5074  ;;  %4501 = vmatprep.mubr.msk.bf16.mxu1 %vm495_vm3, %v468_v3  ;;  %v347_v8 = vpack.c.bf16 %v5073_v5, %v5067_v61 }
  0xfc   :  { %v5077_v10 = vpop.eup %5076  ;;  %4502 = vmatmul.mubr.msk.bf16.vlgmr.msra.gmra.mrb[8].mxu1 %vm495_vm3, %v469_v62 }
  0xfd   :  { %v5079_v13 = vpop.eup %5078  ;;  %4489 = vmatprep.mubr.msk.bf16.mxu0 %vm390_vm4, %v347_v8  ;;  %4861 = vmatpush3.bf16.msra.mxu1 %v5539_v4 }
  0xfe   :  { %v5081_v14 = vpop.eup %5080  ;;  %4490 = vmatmul.mubr.msk.bf16.vlgmr.msra.gmra.mrb[8].mxu0 %vm390_vm4, %v348_v6  ;;  %4868 = vmatprep.subr.bf16.mxu1 %v5301_v17 }
  0xff   :  { %v5083_v15 = vpop.eup %5082  ;;  %4855 = vmatpush3.bf16.msra.mxu0 %v5542_v9  ;;  %v471_v16 = vpack.c.bf16 %v5081_v14, %v5075_v7 }
 0x100   :  { %v5085_v20 = vpop.eup %5084  ;;  %4856 = vmatprep.subr.bf16.mxu0 %v5301_v17 }
 0x101   :  { %v5087_v21 = vpop.eup %5086  ;;  %v470_v22 = vpack.c.bf16 %v5085_v20, %v5077_v10 }
 0x102   :  { %v5089_v23 = vpop.eup %5088  ;;  %v350_v24 = vpack.c.bf16 %v5087_v21, %v5079_v13 }
 0x103   :  { %4505 = vmatprep.mubr.msk.bf16.mxu1 %vm495_vm3, %v470_v22  ;;  %v349_v25 = vpack.c.bf16 %v5089_v23, %v5083_v15  ;;  %4858 = vmatpush3.bf16.msra.mxu0 %v5556_v19 }
 0x104   :  { %4506 = vmatmul.mubr.msk.bf16.gmra.mrb[12].mxu1 %vm495_vm3, %v471_v16  ;;  %4862 = vmatprep.subr.bf16.mxu0 %v5301_v17 }
 0x105   :  { %4493 = vmatprep.mubr.msk.bf16.mxu0 %vm390_vm4, %v349_v25  ;;  %4524 = vmatprep.mubr.msk.f32.mxu1 %vm5305_vm5, %v5302_v18 }
 0x106   :  { %4494 = vmatmul.mubr.msk.bf16.gmra.mrb[12].mxu0 %vm390_vm4, %v350_v24 }
 0x107   :  { %4517 = vmatprep.mubr.msk.f32.mxu0 %vm5305_vm5, %v5302_v18 }
 0x10c   :  { %4525 = vmatmul.mubr.msk.f32.vlgmr.msra.gmra.mrb[16].mxu1 %vm135_vm2, %v585_v26 }
 0x10d   :  { %4870 = vmatpush3.bf16.msra.mxu1 %v5539_v4  ;;  %4542 = vmatprep.mubr.msk.f32.mxu1 %vm5305_vm5, %v5302_v18 }
 0x10e   :  { %4518 = vmatmul.mubr.msk.f32.vlgmr.msra.gmra.mrb[16].mxu0 %vm495_vm3, %v583_v27  ;;  %4871 = vmatprep.subr.bf16.mxu1 %v5301_v17 }
 0x10f   :  { %4864 = vmatpush3.bf16.msra.mxu0 %v5542_v9  ;;  %4535 = vmatprep.mubr.msk.f32.mxu0 %vm5305_vm5, %v5302_v18 }
 0x110   :  { %4865 = vmatprep.subr.bf16.mxu0 %v5301_v17 }
 0x113   :  { %4867 = vmatpush3.bf16.msra.mxu0 %v5556_v19 }
 0x114   :  { %4877 = vmatprep.subr.bf16.mxu0 %v5301_v17 }
 0x1cf   :  { %v4503_v34 = vpop.f32.mrb[8].mxu1 }
 0x1d0   :  { %v5603_v37 = vadd.f32 %v4503_v34, %v4209_v33  ;;  %v542_v38 = vpop.f32.mrb[9].mxu1 }
 0x1d1   :  { %v4491_v40 = vpop.f32.mrb[8].mxu0  ;;  %v4504_v41 = vpop.f32.mrb[10].mxu1  ;;  %v5625_v58 = vadd.f32 %v4209_v33, %v542_v38 }
 0x1d2   :  { %v5606_v42 = vadd.f32 %v4491_v40, %v4200_v35  ;;  %v5608_v43 = vadd.f32 %v4504_v41, %v4209_v33  ;;  %v437_v44 = vpop.f32.mrb[9].mxu0  ;;  %v545_v45 = vpop.f32.mrb[11].mxu1 }
 0x1d3   :  { %v5611_v47 = vadd.f32 %v4209_v33, %v545_v45  ;;  %v4492_v48 = vpop.f32.mrb[10].mxu0  ;;  %v5627_v59 = vadd.f32 %v4200_v35, %v437_v44 }
 0x1d4   :  { %v5614_v50 = vadd.f32 %v4492_v48, %v4200_v35  ;;  %v440_v51 = vpop.f32.mrb[11].mxu0 }
 0x1d5   :  { %v5616_v52 = vadd.f32 %v4200_v35, %v440_v51 }
 0x1d7   :  { %v4507_v54 = vpop.f32.mrb[12].mxu1 }
 0x1d8   :  { %v5623_v56 = vadd.f32 %v4507_v54, %v4209_v33  ;;  %v558_v57 = vpop.f32.mrb[13].mxu1 }
 0x1d9   :  { %v5629_v60 = vadd.f32 %v4209_v33, %v558_v57  ;;  %v4495_v61 = vpop.f32.mrb[12].mxu0  ;;  %v4508_v62 = vpop.f32.mrb[14].mxu1 }
 0x1da   :  { %v5635_v0 = vadd.f32 %v4495_v61, %v4200_v35  ;;  %v5637_v1 = vadd.f32 %v4508_v62, %v4209_v33  ;;  %v453_v2 = vpop.f32.mrb[13].mxu0  ;;  %v561_v3 = vpop.f32.mrb[15].mxu1  ;;  %v942_v5 = vsel %vm5619_vm8, %v5611_v47, %v5623_v56  ;;  %v2122_v6 = vsel %vm5619_vm8, %v5623_v56, %v5611_v47 }
 0x1db   :  { %v5647_v7 = vadd.f32 %v4200_v35, %v453_v2  ;;  %v5649_v8 = vadd.f32 %v4209_v33, %v561_v3  ;;  %v4496_v10 = vpop.f32.mrb[14].mxu0  ;;  %v1414_v11 = vsel %vm5619_vm8, %v5608_v43, %v5629_v60  ;;  %v1650_v12 = vsel %vm5619_vm8, %v5629_v60, %v5608_v43  ;;  %v676_v3 = vpop.permute.xlu1 %675 }
 0x1dc   :  { %v5659_v13 = vadd.f32 %v4496_v10, %v4200_v35  ;;  %v456_v14 = vpop.f32.mrb[15].mxu0  ;;  %v701_v15 = vsel %vm5619_vm8, %v5625_v58, %v5637_v1  ;;  %v842_v16 = vsel %vm5631_vm9, %v5616_v52, %v5635_v0  ;;  %v2022_v20 = vsel %vm5631_vm9, %v5635_v0, %v5616_v52 }
 0x1dd   :  { %v5673_v21 = vadd.f32 %v4200_v35, %v456_v14  ;;  %v1178_v22 = vsel %vm5619_vm8, %v5603_v37, %v5649_v8  ;;  %v1314_v23 = vsel %vm5631_vm9, %v5614_v50, %v5647_v7  ;;  %v1550_v24 = vsel %vm5631_vm9, %v5647_v7, %v5614_v50 }
 0x1de   :  { %v593_v25 = vsel %vm5631_vm9, %v5627_v59, %v5659_v13  ;;  %v1886_v26 = vsel %vm5619_vm8, %v5649_v8, %v5603_v37  ;;  %v2258_v27 = vsel %vm5631_vm9, %v5659_v13, %v5627_v59  ;;  %v2358_v29 = vsel %vm5619_vm8, %v5637_v1, %v5625_v58 }
 0x1df   :  { %v771_v30 = vpop.f32.mrb[16].mxu1  ;;  %v1078_v31 = vsel %vm5631_vm9, %v5606_v42, %v5673_v21  ;;  %v1786_v32 = vsel %vm5631_vm9, %v5673_v21, %v5606_v42  ;;  %v784_v14 = vpop.permute.xlu1 %783 }
 0x1e0   :  { %v772_v33 = vadd.f32 %v771_v30, %v701_v15  ;;  %v4526_v34 = vpop.f32.mrb[17].mxu1 }
 0x1e1   :  { %v663_v35 = vpop.f32.mrb[16].mxu0 }
 0x1e2   :  { %v664_v38 = vadd.f32 %v663_v35, %v593_v25  ;;  %v4519_v39 = vpop.f32.mrb[17].mxu0  ;;  %v4219_v45 = vmul.f32 -1.442695, %v772_v33 }
 0x1e4   :  { %5090 = vtanh.f32 %v664_v38  ;;  %v4217_v44 = vmul.f32 -1.442695, %v664_v38 }
 0x1e5   :  { %5092 = vtanh.f32 %v772_v33 }
 0x1e6   :  { %5094 = vpow2.f32 %v4217_v44 }
 0x1e7   :  { %5096 = vpow2.f32 %v4219_v45 }
 0x1ee   :  { %v5091_v40 = vpop.eup %5090 }
 0x1ef   :  { %680 = vrot.lane.b32.xlu0 %v5091_v40, %s5307_s9  ;;  %v5093_v41 = vpop.eup %5092 }
 0x1f0   :  { %v5095_v46 = vpop.eup %5094 }
 0x1f1   :  { %v670_v48 = vadd.f32 1.0, %v5095_v46  ;;  %v5097_v49 = vpop.eup %5096 }
 0x1f2   :  { %v778_v51 = vadd.f32 1.0, %v5097_v49 }
 0x1f3   :  { %788 = vrot.lane.b32.xlu0 %v5093_v41, %s5308_s10  ;;  %5098 = vrcp.f32 %v670_v48 }
 0x1f4   :  { %5100 = vrcp.f32 %v778_v51 }
 0x1fd   :  { %v5099_v53 = vpop.eup %5098 }
 0x1fe   :  { %v5101_v61 = vpop.eup %5100  ;;  %v678_v10 = vmul.f32 %v5099_v53, %v676_v3 }
 0x1ff   :  { %v786_v30 = vmul.f32 %v5101_v61, %v784_v14 }
 0x261   :  { %v681_v54 = vpop.permute.xlu0 %680 }
 0x262   :  { %v683_v57 = vmul.f32 %v5099_v53, %v681_v54 }
 0x264   :  { %685 = vrot.lane.b32.xlu0 %v683_v57, %s5303_s14 }
 0x265   :  { %v789_v62 = vpop.permute.xlu0 %788 }
 0x266   :  { %v791_v2 = vmul.f32 %v5101_v61, %v789_v62 }
 0x268   :  { %793 = vrot.lane.b32.xlu1 %v791_v2, %s5304_s3 }
 0x2d6   :  { %v686_v15 = vpop.permute.xlu0 %685 }
 0x2d7   :  { %v688_v25 = vadd.f32 %v686_v15, %v678_v10 }
 0x2d9   :  { %5102 = vtanh.f32 %v688_v25 }
 0x2da   :  { %v794_v33 = vpop.permute.xlu1 %793 }
 0x2db   :  { %v796_v34 = vadd.f32 %v794_v33, %v786_v30 }
 0x2dd   :  { %5104 = vtanh.f32 %v796_v34 }
 0x2e3   :  { %v5103_v35 = vpop.eup %5102 }
 0x2e4   :  { %691 = vrot.lane.b32.xlu0 %v5103_v35, %s5307_s9 }
 0x2e7   :  { %v5105_v38 = vpop.eup %5104 }
 0x2e8   :  { %799 = vrot.lane.b32.xlu1 %v5105_v38, %s5303_s14 }
 0x356   :  { %v692_v39 = vpop.permute.xlu0 %691 }
 0x357   :  { %v5717_v40 = vmul.f32 %v5099_v53, %v692_v39 }
 0x359   :  { %844 = vrot.lane.b32.xlu0 %v5717_v40, %s5303_s14 }
 0x35a   :  { %v800_v41 = vpop.permute.xlu1 %799 }
 0x35b   :  { %v5721_v44 = vmul.f32 %v5101_v61, %v800_v41 }
 0x35d   :  { %944 = vrot.lane.b32.xlu1 %v5721_v44, %s5309_s15 }
 0x3cb   :  { %v845_v45 = vpop.permute.xlu0 %844 }
 0x3cc   :  { %4536 = vmatmul.mubr.msk.f32.vlgmr.msra.gmra.mrb[18].mxu0 %vm495_vm3, %v845_v45 }
 0x3cd   :  { %4879 = vmatpush3.bf16.msra.mxu0 %v5539_v4  ;;  %4560 = vmatprep.mubr.msk.f32.mxu0 %vm5305_vm5, %v5302_v18 }
 0x3ce   :  { %4880 = vmatprep.subr.bf16.mxu0 %v5301_v17 }
 0x3cf   :  { %v945_v46 = vpop.permute.xlu1 %944 }
 0x3d0   :  { %4543 = vmatmul.mubr.msk.f32.vlgmr.msra.gmra.mrb[18].mxu1 %vm135_vm2, %v945_v46 }
 0x3d1   :  { %4873 = vmatpush3.bf16.msra.mxu1 %v5542_v9  ;;  %4553 = vmatprep.mubr.msk.f32.mxu1 %vm5305_vm5, %v5302_v18 }
 0x3d2   :  { %4874 = vmatprep.subr.bf16.mxu1 %v5301_v17 }
 0x3d5   :  { %4876 = vmatpush3.bf16.msra.mxu1 %v5556_v19 }
 0x3d6   :  { %4886 = vmatprep.subr.bf16.mxu1 %v5301_v17 }
 0x49f   :  { %v914_v48 = vpop.f32.mrb[18].mxu0 }
 0x4a0   :  { %v915_v49 = vadd.f32 %v914_v48, %v842_v16  ;;  %v4537_v51 = vpop.f32.mrb[19].mxu0 }
 0x4a2   :  { %5106 = vtanh.f32 %v915_v49  ;;  %v4221_v2 = vmul.f32 -1.442695, %v915_v49 }
 0x4a3   :  { %v1014_v53 = vpop.f32.mrb[18].mxu1 }
 0x4a4   :  { %v1015_v54 = vadd.f32 %v1014_v53, %v942_v5  ;;  %v4544_v57 = vpop.f32.mrb[19].mxu1 }
 0x4a6   :  { %5108 = vtanh.f32 %v1015_v54  ;;  %v4223_v16 = vmul.f32 -1.442695, %v1015_v54 }
 0x4a7   :  { %5110 = vpow2.f32 %v4221_v2 }
 0x4a8   :  { %5112 = vpow2.f32 %v4223_v16 }
 0x4ac   :  { %v5107_v61 = vpop.eup %5106 }
 0x4ad   :  { %927 = vrot.lane.b32.xlu0 %v5107_v61, %s5307_s9 }
 0x4b0   :  { %v5109_v62 = vpop.eup %5108 }
 0x4b1   :  { %1027 = vrot.lane.b32.xlu1 %v5109_v62, %s5308_s10  ;;  %v5111_v3 = vpop.eup %5110 }
 0x4b2   :  { %v921_v10 = vadd.f32 1.0, %v5111_v3  ;;  %v5113_v14 = vpop.eup %5112 }
 0x4b3   :  { %v1021_v15 = vadd.f32 1.0, %v5113_v14 }
 0x4b4   :  { %5114 = vrcp.f32 %v921_v10 }
 0x4b5   :  { %5116 = vrcp.f32 %v1021_v15 }
 0x4be   :  { %v5115_v30 = vpop.eup %5114 }
 0x4bf   :  { %v5117_v35 = vpop.eup %5116  ;;  %v925_v41 = vmul.f32 %v5115_v30, %v688_v25 }
 0x4c0   :  { %v1025_v48 = vmul.f32 %v5117_v35, %v796_v34 }
 0x51f   :  { %v928_v5 = vpop.permute.xlu0 %927 }
 0x520   :  { %v930_v33 = vmul.f32 %v5115_v30, %v928_v5 }
 0x522   :  { %932 = vrot.lane.b32.xlu0 %v930_v33, %s5303_s14 }
 0x523   :  { %v1028_v38 = vpop.permute.xlu1 %1027 }
 0x524   :  { %v1030_v39 = vmul.f32 %v5117_v35, %v1028_v38 }
 0x526   :  { %1032 = vrot.lane.b32.xlu1 %v1030_v39, %s5304_s3 }
 0x594   :  { %v933_v45 = vpop.permute.xlu0 %932 }
 0x595   :  { %v935_v46 = vadd.f32 %v933_v45, %v925_v41 }
 0x597   :  { %5118 = vtanh.f32 %v935_v46 }
 0x598   :  { %v1033_v49 = vpop.permute.xlu1 %1032 }
 0x599   :  { %v1035_v51 = vadd.f32 %v1033_v49, %v1025_v48 }
 0x59b   :  { %5120 = vtanh.f32 %v1035_v51 }
 0x5a1   :  { %v5119_v53 = vpop.eup %5118 }
 0x5a2   :  { %938 = vrot.lane.b32.xlu0 %v5119_v53, %s5307_s9 }
 0x5a5   :  { %v5121_v54 = vpop.eup %5120 }
 0x5a6   :  { %1038 = vrot.lane.b32.xlu1 %v5121_v54, %s5303_s14 }
 0x614   :  { %v939_v57 = vpop.permute.xlu0 %938 }
 0x615   :  { %v5753_v61 = vmul.f32 %v5115_v30, %v939_v57 }
 0x617   :  { %1080 = vrot.lane.b32.xlu0 %v5753_v61, %s5303_s14 }
 0x618   :  { %v1039_v25 = vpop.permute.xlu1 %1038 }
 0x619   :  { %v5757_v62 = vmul.f32 %v5117_v35, %v1039_v25 }
 0x61b   :  { %1180 = vrot.lane.b32.xlu1 %v5757_v62, %s5309_s15 }
 0x689   :  { %v1081_v34 = vpop.permute.xlu0 %1080 }
 0x68a   :  { %4554 = vmatmul.mubr.msk.f32.vlgmr.msra.gmra.mrb[20].mxu1 %vm495_vm3, %v1081_v34 }
 0x68b   :  { %4888 = vmatpush3.bf16.msra.mxu1 %v5539_v4  ;;  %4578 = vmatprep.mubr.msk.f32.mxu1 %vm5305_vm5, %v5302_v18 }
 0x68c   :  { %4889 = vmatprep.subr.bf16.mxu1 %v5301_v17 }
 0x68d   :  { %v1181_v2 = vpop.permute.xlu1 %1180 }
 0x68e   :  { %4561 = vmatmul.mubr.msk.f32.vlgmr.msra.gmra.mrb[20].mxu0 %vm135_vm2, %v1181_v2 }
 0x68f   :  { %4882 = vmatpush3.bf16.msra.mxu0 %v5542_v9  ;;  %4571 = vmatprep.mubr.msk.f32.mxu0 %vm5305_vm5, %v5302_v18 }
 0x690   :  { %4883 = vmatprep.subr.bf16.mxu0 %v5301_v17 }
 0x693   :  { %4885 = vmatpush3.bf16.msra.mxu0 %v5556_v19 }
 0x694   :  { %4895 = vmatprep.subr.bf16.mxu0 %v5301_v17 }
 0x75d   :  { %v1150_v16 = vpop.f32.mrb[20].mxu1 }
 0x75e   :  { %v1151_v3 = vadd.f32 %v1150_v16, %v1078_v31  ;;  %v4555_v10 = vpop.f32.mrb[21].mxu1 }
 0x760   :  { %5122 = vtanh.f32 %v1151_v3  ;;  %v4225_v35 = vmul.f32 -1.442695, %v1151_v3 }
 0x761   :  { %v1250_v14 = vpop.f32.mrb[20].mxu0 }
 0x762   :  { %v1251_v15 = vadd.f32 %v1250_v14, %v1178_v22  ;;  %v4562_v30 = vpop.f32.mrb[21].mxu0 }
 0x764   :  { %5124 = vtanh.f32 %v1251_v15  ;;  %v4227_v31 = vmul.f32 -1.442695, %v1251_v15 }
 0x765   :  { %5126 = vpow2.f32 %v4225_v35 }
 0x766   :  { %5128 = vpow2.f32 %v4227_v31 }
 0x76a   :  { %v5123_v5 = vpop.eup %5122 }
 0x76b   :  { %1163 = vrot.lane.b32.xlu0 %v5123_v5, %s5307_s9 }
 0x76e   :  { %v5125_v33 = vpop.eup %5124 }
 0x76f   :  { %1263 = vrot.lane.b32.xlu1 %v5125_v33, %s5308_s10  ;;  %v5127_v38 = vpop.eup %5126 }
 0x770   :  { %v1157_v39 = vadd.f32 1.0, %v5127_v38  ;;  %v5129_v41 = vpop.eup %5128 }
 0x771   :  { %v1257_v45 = vadd.f32 1.0, %v5129_v41 }
 0x772   :  { %5130 = vrcp.f32 %v1157_v39 }
 0x773   :  { %5132 = vrcp.f32 %v1257_v45 }
 0x77c   :  { %v5131_v48 = vpop.eup %5130 }
 0x77d   :  { %v5133_v53 = vpop.eup %5132  ;;  %v1161_v25 = vmul.f32 %v5131_v48, %v935_v46 }
 0x77e   :  { %v1261_v16 = vmul.f32 %v5133_v53, %v1035_v51 }
 0x7dd   :  { %v1164_v22 = vpop.permute.xlu0 %1163 }
 0x7de   :  { %v1166_v49 = vmul.f32 %v5131_v48, %v1164_v22 }
 0x7e0   :  { %1168 = vrot.lane.b32.xlu0 %v1166_v49, %s5303_s14 }
 0x7e1   :  { %v1264_v54 = vpop.permute.xlu1 %1263 }
 0x7e2   :  { %v1266_v57 = vmul.f32 %v5133_v53, %v1264_v54 }
 0x7e4   :  { %1268 = vrot.lane.b32.xlu1 %v1266_v57, %s5304_s3 }
 0x852   :  { %v1169_v34 = vpop.permute.xlu0 %1168 }
 0x853   :  { %v1171_v2 = vadd.f32 %v1169_v34, %v1161_v25 }
 0x855   :  { %5134 = vtanh.f32 %v1171_v2 }
 0x856   :  { %v1269_v3 = vpop.permute.xlu1 %1268 }
 0x857   :  { %v1271_v10 = vadd.f32 %v1269_v3, %v1261_v16 }
 0x859   :  { %5136 = vtanh.f32 %v1271_v10 }
 0x85f   :  { %v5135_v14 = vpop.eup %5134 }
 0x860   :  { %1174 = vrot.lane.b32.xlu0 %v5135_v14, %s5307_s9 }
 0x863   :  { %v5137_v15 = vpop.eup %5136 }
 0x864   :  { %1274 = vrot.lane.b32.xlu1 %v5137_v15, %s5303_s14 }
 0x8d2   :  { %v1175_v30 = vpop.permute.xlu0 %1174 }
 0x8d3   :  { %v5789_v5 = vmul.f32 %v5131_v48, %v1175_v30 }
 0x8d5   :  { %1316 = vrot.lane.b32.xlu0 %v5789_v5, %s5303_s14 }
 0x8d6   :  { %v1275_v46 = vpop.permute.xlu1 %1274 }
 0x8d7   :  { %v5793_v33 = vmul.f32 %v5133_v53, %v1275_v46 }
 0x8d9   :  { %1416 = vrot.lane.b32.xlu1 %v5793_v33, %s5309_s15 }
 0x947   :  { %v1317_v51 = vpop.permute.xlu0 %1316 }
 0x948   :  { %4572 = vmatmul.mubr.msk.f32.vlgmr.msra.gmra.mrb[22].mxu0 %vm495_vm3, %v1317_v51 }
 0x949   :  { %4897 = vmatpush3.bf16.msra.mxu0 %v5539_v4  ;;  %4596 = vmatprep.mubr.msk.f32.mxu0 %vm5305_vm5, %v5302_v18 }
 0x94a   :  { %4898 = vmatprep.subr.bf16.mxu0 %v5301_v17 }
 0x94b   :  { %v1417_v35 = vpop.permute.xlu1 %1416 }
 0x94c   :  { %4579 = vmatmul.mubr.msk.f32.vlgmr.msra.gmra.mrb[22].mxu1 %vm135_vm2, %v1417_v35 }
 0x94d   :  { %4891 = vmatpush3.bf16.msra.mxu1 %v5542_v9  ;;  %4589 = vmatprep.mubr.msk.f32.mxu1 %vm5305_vm5, %v5302_v18 }
 0x94e   :  { %4892 = vmatprep.subr.bf16.mxu1 %v5301_v17 }
 0x951   :  { %4894 = vmatpush3.bf16.msra.mxu1 %v5556_v19 }
 0x952   :  { %4904 = vmatprep.subr.bf16.mxu1 %v5301_v17 }
 0xa1b   :  { %v1386_v31 = vpop.f32.mrb[22].mxu0 }
 0xa1c   :  { %v1387_v38 = vadd.f32 %v1386_v31, %v1314_v23  ;;  %v4573_v39 = vpop.f32.mrb[23].mxu0 }
 0xa1e   :  { %5138 = vtanh.f32 %v1387_v38  ;;  %v4229_v53 = vmul.f32 -1.442695, %v1387_v38 }
 0xa1f   :  { %v1486_v41 = vpop.f32.mrb[22].mxu1 }
 0xa20   :  { %v1487_v45 = vadd.f32 %v1486_v41, %v1414_v11  ;;  %v4580_v48 = vpop.f32.mrb[23].mxu1 }
 0xa22   :  { %5140 = vtanh.f32 %v1487_v45  ;;  %v4231_v23 = vmul.f32 -1.442695, %v1487_v45 }
 0xa23   :  { %5142 = vpow2.f32 %v4229_v53 }
 0xa24   :  { %5144 = vpow2.f32 %v4231_v23 }
 0xa28   :  { %v5139_v22 = vpop.eup %5138 }
 0xa29   :  { %1399 = vrot.lane.b32.xlu0 %v5139_v22, %s5307_s9 }
 0xa2c   :  { %v5141_v49 = vpop.eup %5140 }
 0xa2d   :  { %1499 = vrot.lane.b32.xlu1 %v5141_v49, %s5308_s10  ;;  %v5143_v54 = vpop.eup %5142 }
 0xa2e   :  { %v1393_v57 = vadd.f32 1.0, %v5143_v54  ;;  %v5145_v25 = vpop.eup %5144 }
 0xa2f   :  { %v1493_v34 = vadd.f32 1.0, %v5145_v25 }
 0xa30   :  { %5146 = vrcp.f32 %v1393_v57 }
 0xa31   :  { %5148 = vrcp.f32 %v1493_v34 }
 0xa3a   :  { %v5147_v16 = vpop.eup %5146 }
 0xa3b   :  { %v5149_v14 = vpop.eup %5148  ;;  %v1397_v46 = vmul.f32 %v5147_v16, %v1171_v2 }
 0xa3c   :  { %v1497_v31 = vmul.f32 %v5149_v14, %v1271_v10 }
 0xa9b   :  { %v1400_v11 = vpop.permute.xlu0 %1399 }
 0xa9c   :  { %v1402_v3 = vmul.f32 %v5147_v16, %v1400_v11 }
 0xa9e   :  { %1404 = vrot.lane.b32.xlu0 %v1402_v3, %s5303_s14 }
 0xa9f   :  { %v1500_v15 = vpop.permute.xlu1 %1499 }
 0xaa0   :  { %v1502_v30 = vmul.f32 %v5149_v14, %v1500_v15 }
 0xaa2   :  { %1504 = vrot.lane.b32.xlu1 %v1502_v30, %s5304_s3 }
 0xb10   :  { %v1405_v51 = vpop.permute.xlu0 %1404 }
 0xb11   :  { %v1407_v35 = vadd.f32 %v1405_v51, %v1397_v46 }
 0xb13   :  { %5150 = vtanh.f32 %v1407_v35 }
 0xb14   :  { %v1505_v38 = vpop.permute.xlu1 %1504 }
 0xb15   :  { %v1507_v39 = vadd.f32 %v1505_v38, %v1497_v31 }
 0xb17   :  { %5152 = vtanh.f32 %v1507_v39 }
 0xb1d   :  { %v5151_v41 = vpop.eup %5150 }
 0xb1e   :  { %1410 = vrot.lane.b32.xlu0 %v5151_v41, %s5307_s9 }
 0xb21   :  { %v5153_v45 = vpop.eup %5152 }
 0xb22   :  { %1510 = vrot.lane.b32.xlu1 %v5153_v45, %s5303_s14 }
 0xb90   :  { %v1411_v48 = vpop.permute.xlu0 %1410 }
 0xb91   :  { %v5825_v22 = vmul.f32 %v5147_v16, %v1411_v48 }
 0xb93   :  { %1552 = vrot.lane.b32.xlu0 %v5825_v22, %s5303_s14 }
 0xb94   :  { %v1511_v2 = vpop.permute.xlu1 %1510 }
 0xb95   :  { %v5829_v49 = vmul.f32 %v5149_v14, %v1511_v2 }
 0xb97   :  { %1652 = vrot.lane.b32.xlu1 %v5829_v49, %s5309_s15 }
 0xc05   :  { %v1553_v10 = vpop.permute.xlu0 %1552 }
 0xc06   :  { %4590 = vmatmul.mubr.msk.f32.vlgmr.msra.gmra.mrb[24].mxu1 %vm495_vm3, %v1553_v10 }
 0xc07   :  { %4906 = vmatpush3.bf16.msra.mxu1 %v5539_v4  ;;  %4614 = vmatprep.mubr.msk.f32.mxu1 %vm5305_vm5, %v5302_v18 }
 0xc08   :  { %4907 = vmatprep.subr.bf16.mxu1 %v5301_v17 }
 0xc09   :  { %v1653_v53 = vpop.permute.xlu1 %1652 }
 0xc0a   :  { %4597 = vmatmul.mubr.msk.f32.vlgmr.msra.gmra.mrb[24].mxu0 %vm135_vm2, %v1653_v53 }
 0xc0b   :  { %4900 = vmatpush3.bf16.msra.mxu0 %v5542_v9  ;;  %4607 = vmatprep.mubr.msk.f32.mxu0 %vm5305_vm5, %v5302_v18 }
 0xc0c   :  { %4901 = vmatprep.subr.bf16.mxu0 %v5301_v17 }
 0xc0f   :  { %4903 = vmatpush3.bf16.msra.mxu0 %v5556_v19 }
 0xc10   :  { %4913 = vmatprep.subr.bf16.mxu0 %v5301_v17 }
 0xcd9   :  { %v1622_v23 = vpop.f32.mrb[24].mxu1 }
 0xcda   :  { %v1623_v54 = vadd.f32 %v1622_v23, %v1550_v24  ;;  %v4591_v57 = vpop.f32.mrb[25].mxu1 }
 0xcdc   :  { %5154 = vtanh.f32 %v1623_v54  ;;  %v4233_v14 = vmul.f32 -1.442695, %v1623_v54 }
 0xcdd   :  { %v1722_v25 = vpop.f32.mrb[24].mxu0 }
 0xcde   :  { %v1723_v34 = vadd.f32 %v1722_v25, %v1650_v12  ;;  %v4598_v16 = vpop.f32.mrb[25].mxu0 }
 0xce0   :  { %5156 = vtanh.f32 %v1723_v34  ;;  %v4235_v50 = vmul.f32 -1.442695, %v1723_v34 }
 0xce1   :  { %5158 = vpow2.f32 %v4233_v14 }
 0xce2   :  { %5160 = vpow2.f32 %v4235_v50 }
 0xce6   :  { %v5155_v11 = vpop.eup %5154 }
 0xce7   :  { %1635 = vrot.lane.b32.xlu0 %v5155_v11, %s5307_s9 }
 0xcea   :  { %v5157_v3 = vpop.eup %5156 }
 0xceb   :  { %1735 = vrot.lane.b32.xlu1 %v5157_v3, %s5308_s10  ;;  %v5159_v7 = vpop.eup %5158 }
 0xcec   :  { %v1629_v24 = vadd.f32 1.0, %v5159_v7  ;;  %v5161_v15 = vpop.eup %5160 }
 0xced   :  { %v1729_v30 = vadd.f32 1.0, %v5161_v15 }
 0xcee   :  { %5162 = vrcp.f32 %v1629_v24 }
 0xcef   :  { %5164 = vrcp.f32 %v1729_v30 }
 0xcf8   :  { %v5163_v43 = vpop.eup %5162 }
 0xcf9   :  { %v5165_v46 = vpop.eup %5164  ;;  %v1633_v38 = vmul.f32 %v5163_v43, %v1407_v35 }
 0xcfa   :  { %v1733_v48 = vmul.f32 %v5165_v46, %v1507_v39 }
 0xd59   :  { %v1636_v60 = vpop.permute.xlu0 %1635 }
 0xd5a   :  { %v1638_v12 = vmul.f32 %v5163_v43, %v1636_v60 }
 0xd5c   :  { %1640 = vrot.lane.b32.xlu0 %v1638_v12, %s5303_s14 }
 0xd5d   :  { %v1736_v51 = vpop.permute.xlu1 %1735 }
 0xd5e   :  { %v1738_v31 = vmul.f32 %v5165_v46, %v1736_v51 }
 0xd60   :  { %1740 = vrot.lane.b32.xlu1 %v1738_v31, %s5304_s3 }
 0xdce   :  { %v1641_v41 = vpop.permute.xlu0 %1640 }
 0xdcf   :  { %v1643_v45 = vadd.f32 %v1641_v41, %v1633_v38 }
 0xdd1   :  { %5166 = vtanh.f32 %v1643_v45 }
 0xdd2   :  { %v1741_v2 = vpop.permute.xlu1 %1740 }
 0xdd3   :  { %v1743_v10 = vadd.f32 %v1741_v2, %v1733_v48 }
 0xdd5   :  { %5168 = vtanh.f32 %v1743_v10 }
 0xddb   :  { %v5167_v53 = vpop.eup %5166 }
 0xddc   :  { %1646 = vrot.lane.b32.xlu0 %v5167_v53, %s5307_s9 }
 0xddf   :  { %v5169_v23 = vpop.eup %5168 }
 0xde0   :  { %1746 = vrot.lane.b32.xlu1 %v5169_v23, %s5303_s14 }
 0xe4e   :  { %v1647_v54 = vpop.permute.xlu0 %1646 }
 0xe4f   :  { %v5861_v57 = vmul.f32 %v5163_v43, %v1647_v54 }
 0xe51   :  { %1788 = vrot.lane.b32.xlu0 %v5861_v57, %s5303_s14 }
 0xe52   :  { %v1747_v35 = vpop.permute.xlu1 %1746 }
 0xe53   :  { %v5865_v25 = vmul.f32 %v5165_v46, %v1747_v35 }
 0xe55   :  { %1888 = vrot.lane.b32.xlu1 %v5865_v25, %s5309_s15 }
 0xec3   :  { %v1789_v39 = vpop.permute.xlu0 %1788 }
 0xec4   :  { %4608 = vmatmul.mubr.msk.f32.vlgmr.msra.gmra.mrb[26].mxu0 %vm495_vm3, %v1789_v39 }
 0xec5   :  { %4915 = vmatpush3.bf16.msra.mxu0 %v5539_v4  ;;  %4632 = vmatprep.mubr.msk.f32.mxu0 %vm5305_vm5, %v5302_v18 }
 0xec6   :  { %4916 = vmatprep.subr.bf16.mxu0 %v5301_v17 }
 0xec7   :  { %v1889_v34 = vpop.permute.xlu1 %1888 }
 0xec8   :  { %4615 = vmatmul.mubr.msk.f32.vlgmr.msra.gmra.mrb[26].mxu1 %vm135_vm2, %v1889_v34  ;;  %v5907_v34 = vld [vmem:[#allocation2] sm:$0xff] }
 0xec9   :  { %4909 = vmatpush3.bf16.msra.mxu1 %v5542_v9  ;;  %4625 = vmatprep.mubr.msk.f32.mxu1 %vm5305_vm5, %v5302_v18 }
 0xeca   :  { %4910 = vmatprep.subr.bf16.mxu1 %v5301_v17 }
 0xecd   :  { %4912 = vmatpush3.bf16.msra.mxu1 %v5556_v19 }
 0xece   :  { %4922 = vmatprep.subr.bf16.mxu1 %v5301_v17 }
 0xf97   :  { %v1858_v16 = vpop.f32.mrb[26].mxu0 }
 0xf98   :  { %v1859_v11 = vadd.f32 %v1858_v16, %v1786_v32  ;;  %v4609_v3 = vpop.f32.mrb[27].mxu0 }
 0xf9a   :  { %5170 = vtanh.f32 %v1859_v11  ;;  %v4237_v15 = vmul.f32 -1.442695, %v1859_v11 }
 0xf9b   :  { %v1958_v14 = vpop.f32.mrb[26].mxu1 }
 0xf9c   :  { %v1959_v18 = vadd.f32 %v1958_v14, %v1886_v26  ;;  %v4616_v50 = vpop.f32.mrb[27].mxu1 }
 0xf9e   :  { %5172 = vtanh.f32 %v1959_v18  ;;  %v4239_v42 = vmul.f32 -1.442695, %v1959_v18 }
 0xf9f   :  { %5174 = vpow2.f32 %v4237_v15 }
 0xfa0   :  { %5176 = vpow2.f32 %v4239_v42 }
 0xfa4   :  { %v5171_v7 = vpop.eup %5170 }
 0xfa5   :  { %1871 = vrot.lane.b32.xlu0 %v5171_v7, %s5307_s9 }
 0xfa8   :  { %v5173_v24 = vpop.eup %5172 }
 0xfa9   :  { %1971 = vrot.lane.b32.xlu1 %v5173_v24, %s5308_s10  ;;  %v5175_v21 = vpop.eup %5174 }
 0xfaa   :  { %v1865_v32 = vadd.f32 1.0, %v5175_v21  ;;  %v5177_v30 = vpop.eup %5176 }
 0xfab   :  { %v1965_v43 = vadd.f32 1.0, %v5177_v30 }
 0xfac   :  { %5178 = vrcp.f32 %v1865_v32 }
 0xfad   :  { %5180 = vrcp.f32 %v1965_v43 }
 0xfb6   :  { %v5179_v37 = vpop.eup %5178 }
 0xfb7   :  { %v5181_v60 = vpop.eup %5180  ;;  %v1869_v51 = vmul.f32 %v5179_v37, %v1643_v45 }
 0xfb8   :  { %v1969_v41 = vmul.f32 %v5181_v60, %v1743_v10 }
0x1017   :  { %v1872_v8 = vpop.permute.xlu0 %1871 }
0x1018   :  { %v1874_v26 = vmul.f32 %v5179_v37, %v1872_v8 }
0x101a   :  { %1876 = vrot.lane.b32.xlu0 %v1874_v26, %s5303_s14 }
0x101b   :  { %v1972_v12 = vpop.permute.xlu1 %1971 }
0x101c   :  { %v1974_v46 = vmul.f32 %v5181_v60, %v1972_v12 }
0x101e   :  { %1976 = vrot.lane.b32.xlu1 %v1974_v46, %s5304_s3 }
0x108c   :  { %v1877_v31 = vpop.permute.xlu0 %1876 }
0x108d   :  { %v1879_v38 = vadd.f32 %v1877_v31, %v1869_v51 }
0x108f   :  { %5182 = vtanh.f32 %v1879_v38 }
0x1090   :  { %v1977_v48 = vpop.permute.xlu1 %1976 }
0x1091   :  { %v1979_v2 = vadd.f32 %v1977_v48, %v1969_v41 }
0x1093   :  { %5184 = vtanh.f32 %v1979_v2 }
0x1099   :  { %v5183_v53 = vpop.eup %5182 }
0x109a   :  { %1882 = vrot.lane.b32.xlu0 %v5183_v53, %s5307_s9 }
0x109d   :  { %v5185_v23 = vpop.eup %5184 }
0x109e   :  { %1982 = vrot.lane.b32.xlu1 %v5185_v23, %s5303_s14 }
0x110c   :  { %v1883_v54 = vpop.permute.xlu0 %1882 }
0x110d   :  { %v5897_v35 = vmul.f32 %v5179_v37, %v1883_v54 }
0x110f   :  { %2024 = vrot.lane.b32.xlu0 %v5897_v35, %s5303_s14 }
0x1110   :  { %v1983_v45 = vpop.permute.xlu1 %1982 }
0x1111   :  { %v5901_v39 = vmul.f32 %v5181_v60, %v1983_v45 }
0x1113   :  { %2124 = vrot.lane.b32.xlu1 %v5901_v39, %s5309_s15 }
0x1181   :  { %v2025_v10 = vpop.permute.xlu0 %2024 }
0x1182   :  { %4626 = vmatmul.mubr.msk.f32.vlgmr.msra.gmra.mrb[28].mxu1 %vm495_vm3, %v2025_v10 }
0x1183   :  { %4924 = vmatpush3.bf16.msra.mxu1 %v5539_v4  ;;  %4650 = vmatprep.mubr.msk.f32.mxu1 %vm5305_vm5, %v5907_v34 }
0x1185   :  { %v2125_v16 = vpop.permute.xlu1 %2124 }
0x1186   :  { %4633 = vmatmul.mubr.msk.f32.vlgmr.msra.gmra.mrb[28].mxu0 %vm135_vm2, %v2125_v16 }
0x1187   :  { %4918 = vmatpush3.bf16.msra.mxu0 %v5542_v9  ;;  %4643 = vmatprep.mubr.msk.f32.mxu0 %vm5305_vm5, %v5907_v34 }
0x1188   :  { %4919 = vmatprep.subr.bf16.mxu0 %v5301_v17 }
0x118b   :  { %4921 = vmatpush3.bf16.msra.mxu0 %v5556_v19 }
0x118c   :  { %4925 = vmatprep.subr.bf16.mxu0 %v5301_v17 }
0x1255   :  { %v2094_v4 = vpop.f32.mrb[28].mxu1 }
0x1256   :  { %v2095_v11 = vadd.f32 %v2094_v4, %v2022_v20  ;;  %v4627_v3 = vpop.f32.mrb[29].mxu1 }
0x1258   :  { %5186 = vtanh.f32 %v2095_v11  ;;  %v4241_v7 = vmul.f32 -1.442695, %v2095_v11 }
0x1259   :  { %v2194_v14 = vpop.f32.mrb[28].mxu0 }
0x125a   :  { %v2195_v9 = vadd.f32 %v2194_v14, %v2122_v6  ;;  %v4634_v18 = vpop.f32.mrb[29].mxu0 }
0x125b   :  { %v803_v18 = vld [vmem:[%s6476_s2] sm:$0xff] }
0x125c   :  { %5188 = vtanh.f32 %v2195_v9  ;;  %v4243_v52 = vmul.f32 -1.442695, %v2195_v9 }
0x125d   :  { %5190 = vpow2.f32 %v4241_v7  ;;  %v1514_v7 = vld [vmem:[%s6476_s2 + $0x18] sm:$0xff] }
0x125e   :  { %5192 = vpow2.f32 %v4243_v52  ;;  %v1278_v52 = vld [vmem:[%s6476_s2 + $0x10] sm:$0xff] }
0x1262   :  { %v5187_v19 = vpop.eup %5186 }
0x1263   :  { %2107 = vrot.lane.b32.xlu0 %v5187_v19, %s5307_s9 }
0x1266   :  { %v5189_v50 = vpop.eup %5188 }
0x1267   :  { %2207 = vrot.lane.b32.xlu1 %v5189_v50, %s5308_s10  ;;  %v5191_v0 = vpop.eup %5190  ;;  %v1042_v50 = vld [vmem:[%s6476_s2 + $0x8] sm:$0xff] }
0x1268   :  { %v2101_v20 = vadd.f32 1.0, %v5191_v0  ;;  %v5193_v24 = vpop.eup %5192  ;;  %v1279_v0 = vld [vmem:[%s6476_s2 + $0x28] sm:$0xff] }
0x1269   :  { %v2201_v15 = vadd.f32 1.0, %v5193_v24  ;;  %v1043_v24 = vld [vmem:[%s6476_s2 + $0x30] sm:$0xff] }
0x126a   :  { %5194 = vrcp.f32 %v2101_v20  ;;  %v1515_v20 = vld [vmem:[%s6476_s2 + $0x20] sm:$0xff] }
0x126b   :  { %5196 = vrcp.f32 %v2201_v15  ;;  %v804_v15 = vld [vmem:[%s6476_s2 + $0x38] sm:$0xff]  ;;  %s5310_s2 = smov 112  }
0x1274   :  { %v5195_v47 = vpop.eup %5194 }
0x1275   :  { %v5197_v42 = vpop.eup %5196  ;;  %v2105_v30 = vmul.f32 %v5195_v47, %v1879_v38 }
0x1276   :  { %v2205_v8 = vmul.f32 %v5197_v42, %v1979_v2 }
0x12d5   :  { %v2108_v56 = vpop.permute.xlu0 %2107 }
0x12d6   :  { %v2110_v6 = vmul.f32 %v5195_v47, %v2108_v56 }
0x12d8   :  { %2112 = vrot.lane.b32.xlu0 %v2110_v6, %s5303_s14 }
0x12d9   :  { %v2208_v21 = vpop.permute.xlu1 %2207 }
0x12da   :  { %v2210_v32 = vmul.f32 %v5197_v42, %v2208_v21 }
0x12dc   :  { %2212 = vrot.lane.b32.xlu1 %v2210_v32, %s5304_s3 }
0x134a   :  { %v2113_v43 = vpop.permute.xlu0 %2112 }
0x134b   :  { %v5932_v37 = vadd.f32 %v2113_v43, %v2105_v30 }
0x134d   :  { %5198 = vtanh.f32 %v5932_v37 }
0x134e   :  { %v2213_v26 = vpop.permute.xlu1 %2212 }
0x134f   :  { %v5935_v60 = vadd.f32 %v2213_v26, %v2205_v8 }
0x1351   :  { %5200 = vtanh.f32 %v5935_v60 }
0x1357   :  { %v5199_v12 = vpop.eup %5198 }
0x1358   :  { %2118 = vrot.lane.b32.xlu0 %v5199_v12, %s5307_s9 }
0x135b   :  { %v5201_v46 = vpop.eup %5200 }
0x135c   :  { %2218 = vrot.lane.b32.xlu1 %v5201_v46, %s5303_s14 }
0x13ca   :  { %v2119_v51 = vpop.permute.xlu0 %2118 }
0x13cb   :  { %v5940_v31 = vmul.f32 %v5195_v47, %v2119_v51 }
0x13cd   :  { %2260 = vrot.lane.b32.xlu0 %v5940_v31, %s5303_s14 }
0x13ce   :  { %v2219_v38 = vpop.permute.xlu1 %2218 }
0x13cf   :  { %v5944_v41 = vmul.f32 %v5197_v42, %v2219_v38 }
0x13d1   :  { %2360 = vrot.lane.b32.xlu1 %v5944_v41, %s5309_s15 }
0x143f   :  { %v2261_v48 = vpop.permute.xlu0 %2260 }
0x1440   :  { %4644 = vmatmul.mubr.msk.f32.vlgmr.msra.gmra.mrb[30].mxu0 %vm495_vm3, %v2261_v48 }
0x1441   :  { %4685 = vmatprep.mubr.msk.f32.mxu0 %vm5305_vm5, %v5907_v34 }
0x1443   :  { %v2361_v2 = vpop.permute.xlu1 %2360 }
0x1444   :  { %4651 = vmatmul.mubr.msk.f32.vlgmr.msra.gmra.mrb[30].mxu1 %vm135_vm2, %v2361_v2 }
0x1513   :  { %v2330_v53 = vpop.f32.mrb[30].mxu0 }
0x1514   :  { %v2331_v23 = vadd.f32 %v2330_v53, %v2258_v27  ;;  %v4645_v54 = vpop.f32.mrb[31].mxu0 }
0x1516   :  { %5202 = vtanh.f32 %v2331_v23  ;;  %v4245_v63 = vmul.f32 -1.442695, %v2331_v23 }
0x1517   :  { %v2430_v45 = vpop.f32.mrb[30].mxu1 }
0x1518   :  { %v2431_v10 = vadd.f32 %v2430_v45, %v2358_v29  ;;  %v4652_v16 = vpop.f32.mrb[31].mxu1 }
0x151a   :  { %5204 = vtanh.f32 %v2431_v10  ;;  %v4247_v59 = vmul.f32 -1.442695, %v2431_v10 }
0x151b   :  { %5206 = vpow2.f32 %v4245_v63 }
0x151c   :  { %5208 = vpow2.f32 %v4247_v59 }
0x1520   :  { %v5203_v4 = vpop.eup %5202 }
0x1521   :  { %2343 = vrot.lane.b32.xlu0 %v5203_v4, %s5307_s9 }
0x1524   :  { %v5205_v11 = vpop.eup %5204 }
0x1525   :  { %2443 = vrot.lane.b32.xlu1 %v5205_v11, %s5308_s10  ;;  %v5207_v13 = vpop.eup %5206 }
0x1526   :  { %v2337_v27 = vadd.f32 1.0, %v5207_v13  ;;  %v5209_v3 = vpop.eup %5208 }
0x1527   :  { %v2437_v55 = vadd.f32 1.0, %v5209_v3 }
0x1528   :  { %5210 = vrcp.f32 %v2337_v27 }
0x1529   :  { %5212 = vrcp.f32 %v2437_v55 }
0x1532   :  { %v5964_v58 = vpop.eup %5210 }
0x1533   :  { %v5968_v14 = vpop.eup %5212  ;;  %v2341_v47 = vmul.f32 %v5964_v58, %v5932_v37 }
0x1534   :  { %v2441_v42 = vmul.f32 %v5968_v14, %v5935_v60 }
0x1593   :  { %v2344_v1 = vpop.permute.xlu0 %2343 }
0x1594   :  { %v2346_v29 = vmul.f32 %v5964_v58, %v2344_v1 }
0x1596   :  { %2348 = vrot.lane.b32.xlu0 %v2346_v29, %s5303_s14 }
0x1597   :  { %v2444_v9 = vpop.permute.xlu1 %2443 }
0x1598   :  { %v2446_v19 = vmul.f32 %v5968_v14, %v2444_v9 }
0x159a   :  { %2448 = vrot.lane.b32.xlu1 %v2446_v19, %s5304_s3  ;;  %807 = vperm.xlu0 %5033, %v803_v18  }
0x159e   :  { %1046 = vperm.xlu1 %5034, %v1042_v50   ;;  %1518 = vperm.xlu0 %5033, %v1514_v7  }
0x15a2   :  { %1282 = vperm.xlu1 %5034, %v1278_v52   ;;  %2473 = vperm.xlu0 %5033, %v803_v18  }
0x15a6   :  { %2237 = vperm.xlu1 %5034, %v1042_v50   ;;  %2001 = vperm.xlu0 %5033, %v1278_v52  }
0x15aa   :  { %1765 = vperm.xlu1 %5034, %v1514_v7   ;;  %1293 = vperm.xlu0 %5033, %v1279_v0  }
0x15ae   :  { %1529 = vperm.xlu1 %5034, %v1515_v20   ;;  %1057 = vperm.xlu0 %5033, %v1043_v24  }
0x15b2   :  { %818 = vperm.xlu1 %5034, %v804_v15   ;;  %1990 = vperm.xlu0 %5033, %v1279_v0  }
0x15b6   :  { %1754 = vperm.xlu1 %5034, %v1515_v20   ;;  %v5055_v20 = vld [vmem:[%s6477_s19 + $0x28] sm:$0xff]  }
0x1608   :  { %v2349_v56 = vpop.permute.xlu0 %2348 }
0x1609   :  { %v2351_v6 = vadd.f32 %v2349_v56, %v2341_v47 }
0x160b   :  { %5214 = vtanh.f32 %v2351_v6 }
0x160c   :  { %v2449_v21 = vpop.permute.xlu1 %2448 }
0x160d   :  { %v2451_v32 = vadd.f32 %v2449_v21, %v2441_v42  ;;  %v5057_v21 = vld [vmem:[%s6477_s19 + $0x38] sm:$0xff]  }
0x160f   :  { %5216 = vtanh.f32 %v2451_v32 }
0x1615   :  { %v5215_v30 = vpop.eup %5214 }
0x1616   :  { %2354 = vrot.lane.b32.xlu1 %v5215_v30, %s5307_s9  ;;  %v2645_v30 = vld [vmem:[%s6478_s22 + $0x8] sm:$0xff] }
0x1619   :  { %v5217_v43 = vpop.eup %5216  ;;  %v808_v8 = vpop.permute.xlu0 %807 }
0x161a   :  { %2454 = vrot.lane.b32.xlu0 %v5217_v43, %s5303_s14  ;;  %2226 = vperm.xlu1 %5034, %v1043_v24   ;;  %v810_v26 = vmul.f32 %v808_v8, %v5717_v40  ;;  %v828_v60 = vmul.f32 %v808_v8, %v5721_v44  ;;  %v5056_v24 = vld [vmem:[%s6477_s19 + $0x30] sm:$0xff]  }
0x161d   :  { %v1047_v37 = vpop.permute.xlu1 %1046  ;;  %v1519_v46 = vpop.permute.xlu0 %1518 }
0x161e   :  { %2462 = vperm.xlu0 %5033, %v804_v15   ;;  %812 = vrot.lane.b32.xlu1 %v810_v26, %s5303_s14  ;;  %v1049_v12 = vmul.f32 %v1047_v37, %v5753_v61  ;;  %v1066_v38 = vmul.f32 %v1047_v37, %v5757_v62  ;;  %v1521_v53 = vmul.f32 %v1519_v46, %v5825_v22 }
0x161f   :  { %v1538_v45 = vmul.f32 %v1519_v46, %v5829_v49  ;;  %v2647_v46 = vld [vmem:[%s6478_s22 + $0x18] sm:$0xff] }
0x1621   :  { %v1283_v51 = vpop.permute.xlu1 %1282  ;;  %v6011_v2 = vpop.permute.xlu0 %2473 }
0x1622   :  { %1051 = vrot.lane.b32.xlu0 %v1049_v12, %s5303_s14  ;;  %830 = vrot.lane.b32.xlu1 %v828_v60, %s5310_s2  ;;  %v1285_v48 = vmul.f32 %v1283_v51, %v5789_v5  ;;  %v1302_v54 = vmul.f32 %v1283_v51, %v5793_v33 }
0x1625   :  { %v2238_v23 = vpop.permute.xlu1 %2237  ;;  %v2002_v16 = vpop.permute.xlu0 %2001 }
0x1626   :  { %1068 = vrot.lane.b32.xlu0 %v1066_v38, %s5310_s2  ;;  %1287 = vrot.lane.b32.xlu1 %v1285_v48, %s5303_s14  ;;  %v2240_v10 = vmul.f32 %v2238_v23, %v5940_v31  ;;  %v2004_v11 = vmul.f32 %v2002_v16, %v5897_v35  ;;  %v2016_v13 = vmul.f32 %v2002_v16, %v5901_v39 }
0x1627   :  { %v2252_v27 = vmul.f32 %v2238_v23, %v5944_v41 }
0x1629   :  { %v1766_v4 = vpop.permute.xlu1 %1765  ;;  %v1294_v59 = vpop.permute.xlu0 %1293 }
0x162a   :  { %1523 = vrot.lane.b32.xlu0 %v1521_v53, %s5303_s14  ;;  %1304 = vrot.lane.b32.xlu1 %v1302_v54, %s5310_s2  ;;  %v1768_v63 = vmul.f32 %v1766_v4, %v5861_v57  ;;  %v1780_v1 = vmul.f32 %v1766_v4, %v5865_v25  ;;  %v1296_v18 = vmul.f32 %v1294_v59, %v5789_v5  ;;  %v2653_v54 = vld [vmem:[%s6480_s24] sm:$0xff] }
0x162b   :  { %v1308_v52 = vmul.f32 %v1294_v59, %v5793_v33  ;;  %v5050_v33 = vld [vmem:[%s6477_s19] sm:$0xff]  }
0x162c   :  { %4653 = vmatprep.subr.bf16.mxu1 %v5050_v33 }
0x162d   :  { %v1530_v3 = vpop.permute.xlu1 %1529  ;;  %v1058_v29 = vpop.permute.xlu0 %1057  ;;  %4654 = vmatpush3.bf16.msra.mxu1 %v5050_v33 }
0x162e   :  { %1540 = vrot.lane.b32.xlu0 %v1538_v45, %s5310_s2  ;;  %2242 = vrot.lane.b32.xlu1 %v2240_v10, %s5303_s14  ;;  %v1532_v55 = vmul.f32 %v1530_v3, %v5825_v22  ;;  %v1060_v9 = vmul.f32 %v1058_v29, %v5753_v61  ;;  %v1544_v50 = vmul.f32 %v1530_v3, %v5829_v49 }
0x162f   :  { %v1072_v7 = vmul.f32 %v1058_v29, %v5757_v62 }
0x1631   :  { %v819_v19 = vpop.permute.xlu1 %818  ;;  %v1991_v61 = vpop.permute.xlu0 %1990 }
0x1632   :  { %2006 = vrot.lane.b32.xlu0 %v2004_v11, %s5303_s14  ;;  %1770 = vrot.lane.b32.xlu1 %v1768_v63, %s5303_s14  ;;  %v821_v22 = vmul.f32 %v819_v19, %v5717_v40  ;;  %v1993_v5 = vmul.f32 %v1991_v61, %v5897_v35  ;;  %v835_v0 = vmul.f32 %v819_v19, %v5721_v44  ;;  %v5051_v44 = vld [vmem:[%s6477_s19 + $0x8] sm:$0xff]   ;;  %v5054_v35 = vld [vmem:[%s6477_s19 + $0x20] sm:$0xff]  }
0x1633   :  { %4655 = vmatprep.subr.bf16.mxu1 %v5051_v44 }
0x1634   :  { %4656 = vmatpush3.bf16.msra.mxu1 %v5051_v44 }
0x1635   :  { %v1755_v49 = vpop.permute.xlu1 %1754 }
0x1636   :  { %2018 = vrot.lane.b32.xlu0 %v2016_v13, %s5310_s2  ;;  %2254 = vrot.lane.b32.xlu1 %v2252_v27, %s5310_s2  ;;  %v1757_v40 = vmul.f32 %v1755_v49, %v5861_v57  ;;  %v1774_v62 = vmul.f32 %v1755_v49, %v5865_v25  ;;  %v5052_v57 = vld [vmem:[%s6477_s19 + $0x10] sm:$0xff]   ;;  %v5053_v25 = vld [vmem:[%s6477_s19 + $0x18] sm:$0xff]  }
0x1637   :  { %4657 = vmatprep.subr.bf16.mxu1 %v5052_v57 }
0x1638   :  { %4658 = vmatpush3.bf16.msra.mxu1 %v5052_v57 }
0x1639   :  { %4659 = vmatprep.subr.bf16.mxu1 %v5053_v25 }
0x163a   :  { %1534 = vrot.lane.b32.xlu0 %v1532_v55, %s5303_s14  ;;  %1782 = vrot.lane.b32.xlu1 %v1780_v1, %s5310_s2 }
0x163c   :  { %4660 = vmatpush3.bf16.msra.mxu1 %v5053_v25 }
0x163d   :  { %4661 = vmatprep.subr.bf16.mxu1 %v5054_v35 }
0x163e   :  { %1062 = vrot.lane.b32.xlu0 %v1060_v9, %s5303_s14  ;;  %1298 = vrot.lane.b32.xlu1 %v1296_v18, %s5303_s14 }
0x1640   :  { %4662 = vmatpush3.bf16.msra.mxu1 %v5054_v35 }
0x1641   :  { %4663 = vmatprep.subr.bf16.mxu1 %v5055_v20 }
0x1642   :  { %1546 = vrot.lane.b32.xlu0 %v1544_v50, %s5310_s2  ;;  %823 = vrot.lane.b32.xlu1 %v821_v22, %s5303_s14 }
0x1644   :  { %4664 = vmatpush3.bf16.msra.mxu1 %v5055_v20 }
0x1645   :  { %4665 = vmatprep.subr.bf16.mxu1 %v5056_v24 }
0x1646   :  { %1074 = vrot.lane.b32.xlu0 %v1072_v7, %s5310_s2  ;;  %1310 = vrot.lane.b32.xlu1 %v1308_v52, %s5310_s2 }
0x1648   :  { %4666 = vmatpush3.bf16.msra.mxu1 %v5056_v24 }
0x1649   :  { %4667 = vmatprep.subr.bf16.mxu1 %v5057_v21 }
0x164a   :  { %1995 = vrot.lane.b32.xlu0 %v1993_v5, %s5303_s14  ;;  %837 = vrot.lane.b32.xlu1 %v835_v0, %s5310_s2 }
0x164c   :  { %4668 = vmatpush3.bf16.msra.mxu1 %v5057_v21 }
0x164d   :  { %4955 = vmatprep.subr.bf16.mxu1 %v5301_v17 }
0x164e   :  { %1759 = vrot.lane.b32.xlu1 %v1757_v40, %s5303_s14 }
0x1652   :  { %1776 = vrot.lane.b32.xlu1 %v1774_v62, %s5310_s2 }
0x1688   :  { %v2355_v15 = vpop.permute.xlu1 %2354 }
0x1689   :  { %v2357_v6 = vmul.f32 %v5964_v58, %v2355_v15  ;;  %v2644_v58 = vld [vmem:[%s6478_s22] sm:$0xff] }
0x168a   :  { %v6093_v8 = vpack.c.bf16 %v2645_v30, %v2644_v58  ;;  %v4248_v58 = vld [vmem:[%s6481_s20] ss:$0 sm:$0xff] }
0x168b   :  { %v2476_v32 = vmul.f32 %v6011_v2, %v2357_v6 }
0x168c   :  { %v2455_v47 = vpop.permute.xlu0 %2454  ;;  %4927 = vmatpush3.bf16.msra.mxu0 %v6093_v8 }
0x168d   :  { %v2457_v56 = vmul.f32 %v5968_v14, %v2455_v47  ;;  %v2010_v14 = vmul.f32 %v1991_v61, %v5901_v39  ;;  %4928 = vmatprep.subr.bf16.mxu0 %v5301_v17 }
0x168f   :  { %v2488_v42 = vmul.f32 %v6011_v2, %v2457_v56  ;;  %v2652_v2 = vld [vmem:[%s6479_s23] sm:$0xff] }
0x1691   :  { %2490 = vrot.lane.b32.xlu0 %v2488_v42, %s5310_s2 }
0x1695   :  { %2478 = vrot.lane.b32.xlu0 %v2476_v32, %s5303_s14 }
0x1699   :  { %2012 = vrot.lane.b32.xlu0 %v2010_v14, %s5310_s2  ;;  %v2227_v43 = vpop.permute.xlu1 %2226 }
0x169a   :  { %v2229_v26 = vmul.f32 %v2227_v43, %v5940_v31  ;;  %v2246_v12 = vmul.f32 %v2227_v43, %v5944_v41  ;;  %v2646_v31 = vld [vmem:[%s6478_s22 + $0x10] sm:$0xff]  ;;  %v2642_v43 = vld [vmem:[%s6482_s21] sm:$0x1] }
0x169b   :  { %v6109_v48 = vpack.c.bf16 %v2647_v46, %v2646_v31  ;;  %vm2643_vm13 = vcmp.gt.f32.partialorder %v2642_v43, 0.5 }
0x169c   :  { %2231 = vrot.lane.b32.xlu1 %v2229_v26, %s5303_s14  ;;  %v2654_v46 = vsel %vm2643_vm13, 1, %v5306_v28 }
0x169d   :  { %v2463_v39 = vpop.permute.xlu0 %2462  ;;  %v813_v37 = vpop.permute.xlu1 %812  ;;  %4930 = vmatpush3.bf16.msra.mxu0 %v6109_v48 }
0x169e   :  { %v2465_v60 = vmul.f32 %v2463_v39, %v2357_v6  ;;  %815 = vst.msk [vmem:[#allocation2] sm:$0xff] %vm135_vm2, %v813_v37  ;;  %v2482_v41 = vmul.f32 %v2463_v39, %v2457_v56  ;;  %4931 = vmatprep.subr.bf16.mxu0 %v5301_v17 }
0x16a0   :  { %2467 = vrot.lane.b32.xlu0 %v2465_v60, %s5303_s14  ;;  %2248 = vrot.lane.b32.xlu1 %v2246_v12, %s5310_s2 }
0x16a1   :  { %v1052_v51 = vpop.permute.xlu0 %1051  ;;  %v831_v38 = vpop.permute.xlu1 %830  ;;  %4686 = vmatmul.mubr.msk.f32.vlgmr.msra.gmra.mrb[32].mxu0 %vm495_vm3, %v2652_v2 }
0x16a2   :  { %1054 = vst.msk [vmem:[#allocation2 + $0x8] sm:$0xff] %vm135_vm2, %v1052_v51  ;;  %4696 = vmatprep.mubr.msk.f32.mxu0 %vm5305_vm5, %v5907_v34  ;;  %v2658_v51 = vrot.slane %v2654_v46, %v5601_v36 }
0x16a3   :  { %834 = vst.msk [vmem:[#allocation2] sm:$0xff] %vm833_vm10, %v831_v38 }
0x16a4   :  { %2484 = vrot.lane.b32.xlu0 %v2482_v41, %s5310_s2  ;;  %vm6195_vm14 = vcmp.eq.s32.totalorder %v2658_v51, 1 }
0x16a5   :  { %v1069_v53 = vpop.permute.xlu0 %1068  ;;  %v1288_v23 = vpop.permute.xlu1 %1287 }
0x16a6   :  { %1071 = vst.msk [vmem:[#allocation2 + $0x8] sm:$0xff] %vm833_vm10, %v1069_v53 }
0x16a7   :  { %1290 = vst.msk [vmem:[#allocation2 + $0x10] sm:$0xff] %vm135_vm2, %v1288_v23 }
0x16a8   :  { %2742 = vrot.lane.b32.xlu0 %v2653_v54, %s5303_s14 }
0x16a9   :  { %v1524_v45 = vpop.permute.xlu0 %1523  ;;  %v1305_v10 = vpop.permute.xlu1 %1304 }
0x16aa   :  { %1526 = vst.msk [vmem:[#allocation2 + $0x18] sm:$0xff] %vm135_vm2, %v1524_v45 }
0x16ab   :  { %1307 = vst.msk [vmem:[#allocation2 + $0x10] sm:$0xff] %vm833_vm10, %v1305_v10 }
0x16ad   :  { %v1541_v16 = vpop.permute.xlu0 %1540  ;;  %v2243_v4 = vpop.permute.xlu1 %2242 }
0x16ae   :  { %1543 = vst.msk [vmem:[#allocation2 + $0x18] sm:$0xff] %vm833_vm10, %v1541_v16 }
0x16af   :  { %2245 = vst.msk [vmem:[#allocation2 + $0x8] sm:$0xff] %vm826_vm11, %v2243_v4 }
0x16b1   :  { %v2007_v11 = vpop.permute.xlu0 %2006  ;;  %v1771_v63 = vpop.permute.xlu1 %1770 }
0x16b2   :  { %2009 = vst.msk [vmem:[#allocation2 + $0x10] sm:$0xff] %vm826_vm11, %v2007_v11  ;;  %1773 = vst.msk [vmem:[#allocation2 + $0x18] sm:$0xff] %vm826_vm11, %v1771_v63 }
0x16b5   :  { %v2019_v59 = vpop.permute.xlu0 %2018  ;;  %v2255_v13 = vpop.permute.xlu1 %2254 }
0x16b6   :  { %2021 = vst.msk [vmem:[#allocation2 + $0x10] sm:$0xff] %vm840_vm12, %v2019_v59  ;;  %2257 = vst.msk [vmem:[#allocation2 + $0x8] sm:$0xff] %vm840_vm12, %v2255_v13 }
0x16b9   :  { %v1535_v27 = vpop.permute.xlu0 %1534  ;;  %v1783_v3 = vpop.permute.xlu1 %1782 }
0x16ba   :  { %1537 = vst.msk [vmem:[#allocation2 + $0x20] sm:$0xff] %vm826_vm11, %v1535_v27 }
0x16bb   :  { %1785 = vst.msk [vmem:[#allocation2 + $0x18] sm:$0xff] %vm840_vm12, %v1783_v3 }
0x16bd   :  { %v1063_v55 = vpop.permute.xlu0 %1062  ;;  %v1299_v1 = vpop.permute.xlu1 %1298  ;;  %v6156_v33 = vld [vmem:[#allocation2 + $0x8] sm:$0xff]  ;;  %v6160_v57 = vld [vmem:[#allocation2 + $0x10] sm:$0xff] }
0x16be   :  { %1065 = vst.msk [vmem:[#allocation2 + $0x30] sm:$0xff] %vm826_vm11, %v1063_v55  ;;  %1301 = vst.msk [vmem:[#allocation2 + $0x28] sm:$0xff] %vm826_vm11, %v1299_v1 }
0x16c1   :  { %v1547_v29 = vpop.permute.xlu0 %1546  ;;  %v824_v9 = vpop.permute.xlu1 %823 }
0x16c2   :  { %1549 = vst.msk [vmem:[#allocation2 + $0x20] sm:$0xff] %vm840_vm12, %v1547_v29  ;;  %v6152_v40 = vld [vmem:[#allocation2 + $0x18] sm:$0xff] }
0x16c3   :  { %827 = vst.msk [vmem:[#allocation2 + $0x38] sm:$0xff] %vm826_vm11, %v824_v9  ;;  %v2503_v20 = vpack.c.bf16 %v6152_v40, %v6160_v57 }
0x16c5   :  { %v1075_v18 = vpop.permute.xlu0 %1074  ;;  %v1311_v19 = vpop.permute.xlu1 %1310 }
0x16c6   :  { %1077 = vst.msk [vmem:[#allocation2 + $0x30] sm:$0xff] %vm840_vm12, %v1075_v18  ;;  %1313 = vst.msk [vmem:[#allocation2 + $0x28] sm:$0xff] %vm840_vm12, %v1311_v19 }
0x16c9   :  { %v1996_v50 = vpop.permute.xlu0 %1995  ;;  %v838_v22 = vpop.permute.xlu1 %837 }
0x16ca   :  { %1998 = vst.msk [vmem:[#allocation2 + $0x28] sm:$0xff] %vm135_vm2, %v1996_v50 }
0x16cb   :  { %841 = vst.msk [vmem:[#allocation2 + $0x38] sm:$0xff] %vm840_vm12, %v838_v22 }
0x16cd   :  { %v1760_v7 = vpop.permute.xlu1 %1759 }
0x16ce   :  { %1762 = vst.msk [vmem:[#allocation2 + $0x20] sm:$0xff] %vm135_vm2, %v1760_v7 }
0x16d1   :  { %v1777_v52 = vpop.permute.xlu1 %1776 }
0x16d2   :  { %1779 = vst.msk [vmem:[#allocation2 + $0x20] sm:$0xff] %vm833_vm10, %v1777_v52 }
0x16d9   :  { %v6166_v24 = vld [vmem:[#allocation2 + $0x20] sm:$0xff] }
0x1703   :  { %v2491_v61 = vpop.permute.xlu0 %2490 }
0x1707   :  { %v2479_v5 = vpop.permute.xlu0 %2478 }
0x1708   :  { %2481 = vst.msk [vmem:[#allocation2] sm:$0xff] %vm826_vm11, %v2479_v5 }
0x1709   :  { %2493 = vst.msk [vmem:[#allocation2] sm:$0xff] %vm840_vm12, %v2491_v61 }
0x170b   :  { %v2013_v0 = vpop.permute.xlu0 %2012 }
0x170c   :  { %2015 = vst.msk [vmem:[#allocation2 + $0x28] sm:$0xff] %vm833_vm10, %v2013_v0  ;;  %v2648_v0 = vld [vmem:[%s6483_s25] sm:$0xff] }
0x170e   :  { %v2232_v49 = vpop.permute.xlu1 %2231 }
0x170f   :  { %2234 = vst.msk [vmem:[#allocation2 + $0x30] sm:$0xff] %vm135_vm2, %v2232_v49  ;;  %v2649_v49 = vld [vmem:[%s6483_s25 + $0x8] sm:$0xff] }
0x1710   :  { %v6154_v62 = vld [vmem:[#allocation2] sm:$0xff] }
0x1711   :  { %v2502_v44 = vpack.c.bf16 %v6156_v33, %v6154_v62 }
0x1712   :  { %v2468_v25 = vpop.permute.xlu0 %2467  ;;  %v2249_v35 = vpop.permute.xlu1 %2248 }
0x1713   :  { %2470 = vst.msk [vmem:[#allocation2 + $0x38] sm:$0xff] %vm135_vm2, %v2468_v25  ;;  %4669 = vmatprep.mubr.bf16.mxu1 %v2502_v44  ;;  %v6168_v15 = vld [vmem:[#allocation2 + $0x28] sm:$0xff]  ;;  %v2650_v44 = vld [vmem:[%s6483_s25 + $0x10] sm:$0xff]  ;;  %v6252_v25 = vpack.c.bf16 %v2649_v49, %v2648_v0 }
0x1714   :  { %2251 = vst.msk [vmem:[#allocation2 + $0x30] sm:$0xff] %vm833_vm10, %v2249_v35  ;;  %4670 = vmatmul.mubr.bf16.vlgmr.msra.gmra.mrb[32].mxu1 %v2503_v20  ;;  %v2504_v47 = vpack.c.bf16 %v6168_v15, %v6166_v24  ;;  %v2651_v35 = vld [vmem:[%s6483_s25 + $0x18] sm:$0xff]  ;;  %s5311_s25 = smov 127  }
0x1715   :  { %4933 = vmatpush3.bf16.msra.mxu0 %v6252_v25  ;;  %v6258_v20 = vpack.c.bf16 %v2651_v35, %v2650_v44  ;;  %4957 = vmatpush3.bf16.msra.mxu1 %v6252_v25 }
0x1716   :  { %v2485_v56 = vpop.permute.xlu0 %2484  ;;  %4673 = vmatprep.mubr.bf16.mxu1 %v2504_v47  ;;  %4934 = vmatprep.subr.bf16.mxu0 %v5301_v17 }
0x1717   :  { %2487 = vst.msk [vmem:[#allocation2 + $0x38] sm:$0xff] %vm833_vm10, %v2485_v56  ;;  %4958 = vmatprep.subr.bf16.mxu1 %v5301_v17 }
0x1719   :  { %4936 = vmatpush3.bf16.msra.mxu0 %v6258_v20  ;;  %4960 = vmatpush3.bf16.msra.mxu1 %v6258_v20 }
0x171a   :  { %v2743_v7 = vpop.permute.xlu0 %2742  ;;  %4937 = vmatprep.subr.bf16.mxu0 %v5301_v17  ;;  %4967 = vmatprep.subr.bf16.mxu1 %v5301_v17 }
0x171b   :  { %v6173_v6 = vld [vmem:[#allocation2 + $0x30] sm:$0xff] }
0x171e   :  { %v6175_v42 = vld [vmem:[#allocation2 + $0x38] sm:$0xff] }
0x171f   :  { %v2505_v21 = vpack.c.bf16 %v6175_v42, %v6173_v6 }
0x1721   :  { %4674 = vmatmul.mubr.bf16.gmra.mrb[36].mxu1 %v2505_v21 }
0x1722   :  { %4740 = vmatprep.mubr.msk.f32.mxu1 %vm5305_vm5, %v5907_v34 }
0x1774   :  { %v2730_v32 = vpop.f32.mrb[32].mxu0 }
0x1775   :  { %v4687_v14 = vpop.f32.mrb[33].mxu0 }
0x17e7   :  { %v4671_v30 = vpop.f32.mrb[32].mxu1 }
0x17e8   :  { %v6187_v26 = vadd.f32 %v4671_v30, %v4248_v58  ;;  %v2611_v39 = vpop.f32.mrb[33].mxu1 }
0x17e9   :  { %v4672_v37 = vpop.f32.mrb[34].mxu1  ;;  %v6203_v45 = vadd.f32 %v4248_v58, %v2611_v39 }
0x17ea   :  { %v6189_v12 = vadd.f32 %v4672_v37, %v4248_v58  ;;  %v2614_v60 = vpop.f32.mrb[35].mxu1 }
0x17eb   :  { %v6191_v31 = vadd.f32 %v4248_v58, %v2614_v60 }
0x17f4   :  { %v4675_v38 = vpop.f32.mrb[36].mxu1 }
0x17f5   :  { %v6199_v2 = vadd.f32 %v4675_v38, %v4248_v58  ;;  %v2627_v53 = vpop.f32.mrb[37].mxu1 }
0x17f6   :  { %v6201_v23 = vadd.f32 %v4248_v58, %v2627_v53  ;;  %v4676_v54 = vpop.f32.mrb[38].mxu1 }
0x17f7   :  { %v6205_v10 = vadd.f32 %v4676_v54, %v4248_v58  ;;  %v2630_v16 = vpop.f32.mrb[39].mxu1  ;;  %v2837_v28 = vsel %vm6195_vm14, %v6191_v31, %v6199_v2  ;;  %v3687_v36 = vsel %vm6195_vm14, %v6199_v2, %v6191_v31 }
0x17f8   :  { %v6215_v4 = vadd.f32 %v4248_v58, %v2630_v16  ;;  %v3177_v11 = vsel %vm6195_vm14, %v6189_v12, %v6201_v23  ;;  %v3347_v63 = vsel %vm6195_vm14, %v6201_v23, %v6189_v12 }
0x17f9   :  { %v2660_v59 = vsel %vm6195_vm14, %v6203_v45, %v6205_v10  ;;  %v3857_v13 = vsel %vm6195_vm14, %v6205_v10, %v6203_v45 }
0x17fa   :  { %v2731_v27 = vadd.f32 %v2730_v32, %v2660_v59  ;;  %v3007_v3 = vsel %vm6195_vm14, %v6187_v26, %v6215_v4  ;;  %v3517_v55 = vsel %vm6195_vm14, %v6215_v4, %v6187_v26 }
0x17fc   :  { %5218 = vtanh.f32 %v2731_v27  ;;  %v4258_v29 = vmul.f32 -1.442695, %v2731_v27 }
0x17fe   :  { %5220 = vpow2.f32 %v4258_v29 }
0x1806   :  { %v5219_v1 = vpop.eup %5218 }
0x1807   :  { %2747 = vrot.lane.b32.xlu1 %v5219_v1, %s5307_s9 }
0x1808   :  { %v5221_v9 = vpop.eup %5220 }
0x1809   :  { %v2737_v18 = vadd.f32 1.0, %v5221_v9 }
0x180b   :  { %5222 = vrcp.f32 %v2737_v18 }
0x1815   :  { %v5223_v19 = vpop.eup %5222 }
0x1816   :  { %v2745_v52 = vmul.f32 %v5223_v19, %v2743_v7 }
0x1879   :  { %v2748_v50 = vpop.permute.xlu1 %2747 }
0x187a   :  { %v2750_v22 = vmul.f32 %v5223_v19, %v2748_v50 }
0x187c   :  { %2752 = vrot.lane.b32.xlu1 %v2750_v22, %s5303_s14 }
0x18ee   :  { %v2753_v61 = vpop.permute.xlu1 %2752 }
0x18ef   :  { %v2755_v5 = vadd.f32 %v2753_v61, %v2745_v52 }
0x18f1   :  { %5224 = vtanh.f32 %v2755_v5 }
0x18fb   :  { %v5225_v47 = vpop.eup %5224 }
0x18fc   :  { %2758 = vrot.lane.b32.xlu0 %v5225_v47, %s5307_s9 }
0x196e   :  { %v2759_v56 = vpop.permute.xlu0 %2758 }
0x196f   :  { %v2761_v21 = vmul.f32 %v5223_v19, %v2759_v56 }
0x1971   :  { %2763 = vrot.lane.b32.xlu1 %v2761_v21, %s5303_s14 }
0x19e3   :  { %v2764_v32 = vpop.permute.xlu1 %2763 }
0x19e4   :  { %4697 = vmatmul.mubr.msk.f32.vlgmr.msra.gmra.mrb[34].mxu0 %vm495_vm3, %v2764_v32 }
0x19e5   :  { %4939 = vmatpush3.bf16.msra.mxu0 %v6093_v8  ;;  %4707 = vmatprep.mubr.msk.f32.mxu0 %vm5305_vm5, %v5907_v34 }
0x19e6   :  { %4940 = vmatprep.subr.bf16.mxu0 %v5301_v17 }
0x19e9   :  { %4942 = vmatpush3.bf16.msra.mxu0 %v6109_v48 }
0x19ea   :  { %4943 = vmatprep.subr.bf16.mxu0 %v5301_v17 }
0x19ec   :  { %4708 = vmatmul.mubr.msk.f32.vlgmr.msra.gmra.mrb[36].mxu0 %vm495_vm3, %v2764_v32 }
0x19ed   :  { %4945 = vmatpush3.bf16.msra.mxu0 %v6252_v25  ;;  %4718 = vmatprep.mubr.msk.f32.mxu0 %vm5305_vm5, %v5907_v34 }
0x19ee   :  { %4946 = vmatprep.subr.bf16.mxu0 %v5301_v17 }
0x19f1   :  { %4948 = vmatpush3.bf16.msra.mxu0 %v6258_v20 }
0x19f2   :  { %4949 = vmatprep.subr.bf16.mxu0 %v5301_v17 }
0x1ab7   :  { %v6283_v14 = vpop.f32.mrb[34].mxu0 }
0x1ab8   :  { %v4698_v58 = vpop.f32.mrb[35].mxu0 }
0x1abf   :  { %v2904_v30 = vpop.f32.mrb[36].mxu0 }
0x1ac0   :  { %v2905_v43 = vadd.f32 %v2904_v30, %v2837_v28  ;;  %v4709_v39 = vpop.f32.mrb[37].mxu0 }
0x1ac2   :  { %5226 = vtanh.f32 %v2905_v43  ;;  %v4261_v60 = vmul.f32 -1.442695, %v2905_v43 }
0x1ac4   :  { %5228 = vpow2.f32 %v4261_v60 }
0x1acc   :  { %v5227_v37 = vpop.eup %5226 }
0x1acd   :  { %2917 = vrot.lane.b32.xlu0 %v5227_v37, %s5307_s9 }
0x1ace   :  { %v5229_v46 = vpop.eup %5228 }
0x1acf   :  { %v2911_v51 = vadd.f32 1.0, %v5229_v46 }
0x1ad1   :  { %5230 = vrcp.f32 %v2911_v51 }
0x1adb   :  { %v5231_v38 = vpop.eup %5230 }
0x1adc   :  { %v2915_v16 = vmul.f32 %v5231_v38, %v2755_v5 }
0x1b3f   :  { %v2918_v53 = vpop.permute.xlu0 %2917 }
0x1b40   :  { %v2920_v54 = vmul.f32 %v5231_v38, %v2918_v53 }
0x1b42   :  { %2922 = vrot.lane.b32.xlu1 %v2920_v54, %s5303_s14 }
0x1bb4   :  { %v2923_v59 = vpop.permute.xlu1 %2922 }
0x1bb5   :  { %v2925_v27 = vadd.f32 %v2923_v59, %v2915_v16 }
0x1bb7   :  { %5232 = vtanh.f32 %v2925_v27 }
0x1bc1   :  { %v5233_v28 = vpop.eup %5232 }
0x1bc2   :  { %2928 = vrot.lane.b32.xlu0 %v5233_v28, %s5307_s9 }
0x1c34   :  { %v2929_v1 = vpop.permute.xlu0 %2928 }
0x1c35   :  { %v2931_v29 = vmul.f32 %v5231_v38, %v2929_v1 }
0x1c37   :  { %2933 = vrot.lane.b32.xlu1 %v2931_v29, %s5303_s14 }
0x1ca9   :  { %v2934_v9 = vpop.permute.xlu1 %2933 }
0x1caa   :  { %4719 = vmatmul.mubr.msk.f32.vlgmr.msra.gmra.mrb[38].mxu0 %vm495_vm3, %v2934_v9 }
0x1cab   :  { %4951 = vmatpush3.bf16.msra.mxu0 %v6093_v8  ;;  %4729 = vmatprep.mubr.msk.f32.mxu0 %vm5305_vm5, %v5907_v34 }
0x1cac   :  { %4952 = vmatprep.subr.bf16.mxu0 %v5301_v17 }
0x1caf   :  { %4954 = vmatpush3.bf16.msra.mxu0 %v6109_v48 }
0x1cb0   :  { %4961 = vmatprep.subr.bf16.mxu0 %v5301_v17 }
0x1cb2   :  { %4730 = vmatmul.mubr.msk.f32.vlgmr.msra.gmra.mrb[40].mxu0 %vm495_vm3, %v2934_v9 }
0x1cb3   :  { %4963 = vmatpush3.bf16.msra.mxu0 %v6093_v8  ;;  %4751 = vmatprep.mubr.msk.f32.mxu0 %vm5305_vm5, %v5907_v34 }
0x1cb4   :  { %4964 = vmatprep.subr.bf16.mxu0 %v5301_v17 }
0x1cb7   :  { %4966 = vmatpush3.bf16.msra.mxu0 %v6109_v48 }
0x1cb8   :  { %4973 = vmatprep.subr.bf16.mxu0 %v5301_v17 }
0x1d7d   :  { %v6308_v18 = vpop.f32.mrb[38].mxu0 }
0x1d7e   :  { %v4720_v19 = vpop.f32.mrb[39].mxu0 }
0x1d85   :  { %v3074_v50 = vpop.f32.mrb[40].mxu0 }
0x1d86   :  { %v3075_v22 = vadd.f32 %v3074_v50, %v3007_v3  ;;  %v4731_v7 = vpop.f32.mrb[41].mxu0 }
0x1d88   :  { %5234 = vtanh.f32 %v3075_v22  ;;  %v4264_v61 = vmul.f32 -1.442695, %v3075_v22 }
0x1d8a   :  { %5236 = vpow2.f32 %v4264_v61 }
0x1d92   :  { %v5235_v52 = vpop.eup %5234 }
0x1d93   :  { %3087 = vrot.lane.b32.xlu0 %v5235_v52, %s5307_s9 }
0x1d94   :  { %v5237_v5 = vpop.eup %5236 }
0x1d95   :  { %v3081_v0 = vadd.f32 1.0, %v5237_v5 }
0x1d97   :  { %5238 = vrcp.f32 %v3081_v0 }
0x1da1   :  { %v5239_v49 = vpop.eup %5238 }
0x1da2   :  { %v3085_v47 = vmul.f32 %v5239_v49, %v2925_v27 }
0x1e05   :  { %v3088_v44 = vpop.permute.xlu0 %3087 }
0x1e06   :  { %v3090_v35 = vmul.f32 %v5239_v49, %v3088_v44 }
0x1e08   :  { %3092 = vrot.lane.b32.xlu1 %v3090_v35, %s5303_s14 }
0x1e7a   :  { %v3093_v56 = vpop.permute.xlu1 %3092 }
0x1e7b   :  { %v3095_v21 = vadd.f32 %v3093_v56, %v3085_v47 }
0x1e7d   :  { %5240 = vtanh.f32 %v3095_v21 }
0x1e87   :  { %v5241_v3 = vpop.eup %5240 }
0x1e88   :  { %3098 = vrot.lane.b32.xlu0 %v5241_v3, %s5307_s9 }
0x1efa   :  { %v3099_v32 = vpop.permute.xlu0 %3098 }
0x1efb   :  { %v3101_v58 = vmul.f32 %v5239_v49, %v3099_v32 }
0x1efd   :  { %3103 = vrot.lane.b32.xlu1 %v3101_v58, %s5303_s14 }
0x1f6f   :  { %v3104_v30 = vpop.permute.xlu1 %3103 }
0x1f70   :  { %4741 = vmatmul.mubr.msk.f32.vlgmr.msra.gmra.mrb[40].mxu1 %vm495_vm3, %v3104_v30  ;;  %4752 = vmatmul.mubr.msk.f32.vlgmr.msra.gmra.mrb[42].mxu0 %vm495_vm3, %v3104_v30 }
0x1f71   :  { %4969 = vmatpush3.bf16.msra.mxu1 %v6252_v25  ;;  %4975 = vmatpush3.bf16.msra.mxu0 %v6093_v8 }
0x1f72   :  { %4970 = vmatprep.subr.bf16.mxu1 %v5301_v17  ;;  %4976 = vmatprep.subr.bf16.mxu0 %v5301_v17 }
0x1f73   :  { %4762 = vmatprep.mubr.msk.f32.mxu1 %vm5305_vm5, %v5907_v34  ;;  %4773 = vmatprep.mubr.msk.f32.mxu0 %vm5305_vm5, %v5907_v34 }
0x1f75   :  { %4972 = vmatpush3.bf16.msra.mxu1 %v6258_v20  ;;  %4978 = vmatpush3.bf16.msra.mxu0 %v6109_v48 }
0x1f76   :  { %4979 = vmatprep.subr.bf16.mxu1 %v5301_v17  ;;  %4985 = vmatprep.subr.bf16.mxu0 %v5301_v17 }
0x2043   :  { %v6333_v43 = vpop.f32.mrb[40].mxu1  ;;  %v3244_v39 = vpop.f32.mrb[42].mxu0 }
0x2044   :  { %v3245_v37 = vadd.f32 %v3244_v39, %v3177_v11  ;;  %v4742_v60 = vpop.f32.mrb[41].mxu1  ;;  %v4753_v46 = vpop.f32.mrb[43].mxu0 }
0x2046   :  { %5242 = vtanh.f32 %v3245_v37  ;;  %v4267_v38 = vmul.f32 -1.442695, %v3245_v37 }
0x2048   :  { %5244 = vpow2.f32 %v4267_v38 }
0x2050   :  { %v5243_v51 = vpop.eup %5242 }
0x2051   :  { %3257 = vrot.lane.b32.xlu0 %v5243_v51, %s5307_s9 }
0x2052   :  { %v5245_v53 = vpop.eup %5244 }
0x2053   :  { %v3251_v54 = vadd.f32 1.0, %v5245_v53 }
0x2055   :  { %5246 = vrcp.f32 %v3251_v54 }
0x205f   :  { %v5247_v16 = vpop.eup %5246 }
0x2060   :  { %v3255_v28 = vmul.f32 %v5247_v16, %v3095_v21 }
0x20c3   :  { %v3258_v59 = vpop.permute.xlu0 %3257 }
0x20c4   :  { %v3260_v27 = vmul.f32 %v5247_v16, %v3258_v59 }
0x20c6   :  { %3262 = vrot.lane.b32.xlu1 %v3260_v27, %s5303_s14 }
0x2138   :  { %v3263_v1 = vpop.permute.xlu1 %3262 }
0x2139   :  { %v3265_v29 = vadd.f32 %v3263_v1, %v3255_v28 }
0x213b   :  { %5248 = vtanh.f32 %v3265_v29 }
0x2145   :  { %v5249_v11 = vpop.eup %5248 }
0x2146   :  { %3268 = vrot.lane.b32.xlu0 %v5249_v11, %s5307_s9 }
0x21b8   :  { %v3269_v9 = vpop.permute.xlu0 %3268 }
0x21b9   :  { %v3271_v19 = vmul.f32 %v5247_v16, %v3269_v9 }
0x21bb   :  { %3273 = vrot.lane.b32.xlu1 %v3271_v19, %s5303_s14 }
0x222d   :  { %v3274_v50 = vpop.permute.xlu1 %3273 }
0x222e   :  { %4763 = vmatmul.mubr.msk.f32.vlgmr.msra.gmra.mrb[42].mxu1 %vm495_vm3, %v3274_v50  ;;  %4774 = vmatmul.mubr.msk.f32.vlgmr.msra.gmra.mrb[44].mxu0 %vm495_vm3, %v3274_v50 }
0x222f   :  { %4981 = vmatpush3.bf16.msra.mxu1 %v6252_v25  ;;  %4987 = vmatpush3.bf16.msra.mxu0 %v6093_v8 }
0x2230   :  { %4982 = vmatprep.subr.bf16.mxu1 %v5301_v17  ;;  %4988 = vmatprep.subr.bf16.mxu0 %v5301_v17 }
0x2231   :  { %4784 = vmatprep.mubr.msk.f32.mxu1 %vm5305_vm5, %v5907_v34  ;;  %4795 = vmatprep.mubr.msk.f32.mxu0 %vm5305_vm5, %v5907_v34 }
0x2233   :  { %4984 = vmatpush3.bf16.msra.mxu1 %v6258_v20  ;;  %4990 = vmatpush3.bf16.msra.mxu0 %v6109_v48 }
0x2234   :  { %4991 = vmatprep.subr.bf16.mxu1 %v5301_v17  ;;  %4997 = vmatprep.subr.bf16.mxu0 %v5301_v17 }
0x2301   :  { %v6358_v22 = vpop.f32.mrb[42].mxu1  ;;  %v3414_v7 = vpop.f32.mrb[44].mxu0 }
0x2302   :  { %v3415_v52 = vadd.f32 %v3414_v7, %v3347_v63  ;;  %v4764_v61 = vpop.f32.mrb[43].mxu1  ;;  %v4775_v5 = vpop.f32.mrb[45].mxu0 }
0x2304   :  { %5250 = vtanh.f32 %v3415_v52  ;;  %v4270_v49 = vmul.f32 -1.442695, %v3415_v52 }
0x2306   :  { %5252 = vpow2.f32 %v4270_v49 }
0x230e   :  { %v5251_v0 = vpop.eup %5250 }
0x230f   :  { %3427 = vrot.lane.b32.xlu0 %v5251_v0, %s5307_s9 }
0x2310   :  { %v5253_v44 = vpop.eup %5252 }
0x2311   :  { %v3421_v35 = vadd.f32 1.0, %v5253_v44 }
0x2313   :  { %5254 = vrcp.f32 %v3421_v35 }
0x231d   :  { %v5255_v47 = vpop.eup %5254 }
0x231e   :  { %v3425_v3 = vmul.f32 %v5255_v47, %v3265_v29 }
0x2381   :  { %v3428_v56 = vpop.permute.xlu0 %3427 }
0x2382   :  { %v3430_v21 = vmul.f32 %v5255_v47, %v3428_v56 }
0x2384   :  { %3432 = vrot.lane.b32.xlu1 %v3430_v21, %s5303_s14 }
0x23f6   :  { %v3433_v32 = vpop.permute.xlu1 %3432 }
0x23f7   :  { %v3435_v12 = vadd.f32 %v3433_v32, %v3425_v3 }
0x23f9   :  { %5256 = vtanh.f32 %v3435_v12 }
0x2403   :  { %v5257_v23 = vpop.eup %5256 }
0x2404   :  { %3438 = vrot.lane.b32.xlu0 %v5257_v23, %s5307_s9 }
0x2476   :  { %v3439_v63 = vpop.permute.xlu0 %3438 }
0x2477   :  { %v3441_v58 = vmul.f32 %v5255_v47, %v3439_v63 }
0x2479   :  { %3443 = vrot.lane.b32.xlu1 %v3441_v58, %s5303_s14 }
0x24eb   :  { %v3444_v30 = vpop.permute.xlu1 %3443 }
0x24ec   :  { %4785 = vmatmul.mubr.msk.f32.vlgmr.msra.gmra.mrb[44].mxu1 %vm495_vm3, %v3444_v30  ;;  %4796 = vmatmul.mubr.msk.f32.vlgmr.msra.gmra.mrb[46].mxu0 %vm495_vm3, %v3444_v30 }
0x24ed   :  { %4993 = vmatpush3.bf16.msra.mxu1 %v6252_v25  ;;  %4999 = vmatpush3.bf16.msra.mxu0 %v6093_v8 }
0x24ee   :  { %4994 = vmatprep.subr.bf16.mxu1 %v5301_v17  ;;  %5000 = vmatprep.subr.bf16.mxu0 %v5301_v17 }
0x24ef   :  { %4806 = vmatprep.mubr.msk.f32.mxu1 %vm5305_vm5, %v5907_v34  ;;  %4817 = vmatprep.mubr.msk.f32.mxu0 %vm5305_vm5, %v5907_v34 }
0x24f1   :  { %4996 = vmatpush3.bf16.msra.mxu1 %v6258_v20  ;;  %5002 = vmatpush3.bf16.msra.mxu0 %v6109_v48 }
0x24f2   :  { %5003 = vmatprep.subr.bf16.mxu1 %v5301_v17  ;;  %5009 = vmatprep.subr.bf16.mxu0 %v5301_v17 }
0x25bf   :  { %v6383_v39 = vpop.f32.mrb[44].mxu1  ;;  %v3584_v37 = vpop.f32.mrb[46].mxu0 }
0x25c0   :  { %v3585_v60 = vadd.f32 %v3584_v37, %v3517_v55  ;;  %v4786_v46 = vpop.f32.mrb[45].mxu1  ;;  %v4797_v51 = vpop.f32.mrb[47].mxu0 }
0x25c2   :  { %5258 = vtanh.f32 %v3585_v60  ;;  %v4273_v53 = vmul.f32 -1.442695, %v3585_v60 }
0x25c4   :  { %5260 = vpow2.f32 %v4273_v53 }
0x25cc   :  { %v5259_v38 = vpop.eup %5258 }
0x25cd   :  { %3597 = vrot.lane.b32.xlu0 %v5259_v38, %s5307_s9 }
0x25ce   :  { %v5261_v54 = vpop.eup %5260 }
0x25cf   :  { %v3591_v16 = vadd.f32 1.0, %v5261_v54 }
0x25d1   :  { %5262 = vrcp.f32 %v3591_v16 }
0x25db   :  { %v5263_v59 = vpop.eup %5262 }
0x25dc   :  { %v3595_v1 = vmul.f32 %v5263_v59, %v3435_v12 }
0x263f   :  { %v3598_v27 = vpop.permute.xlu0 %3597 }
0x2640   :  { %v3600_v28 = vmul.f32 %v5263_v59, %v3598_v27 }
0x2642   :  { %3602 = vrot.lane.b32.xlu1 %v3600_v28, %s5303_s14 }
0x26b4   :  { %v3603_v29 = vpop.permute.xlu1 %3602 }
0x26b5   :  { %v3605_v26 = vadd.f32 %v3603_v29, %v3595_v1 }
0x26b7   :  { %5264 = vtanh.f32 %v3605_v26 }
0x26c1   :  { %v5265_v4 = vpop.eup %5264 }
0x26c2   :  { %3608 = vrot.lane.b32.xlu0 %v5265_v4, %s5307_s9 }
0x2734   :  { %v3609_v55 = vpop.permute.xlu0 %3608 }
0x2735   :  { %v3611_v11 = vmul.f32 %v5263_v59, %v3609_v55 }
0x2737   :  { %3613 = vrot.lane.b32.xlu1 %v3611_v11, %s5303_s14 }
0x27a9   :  { %v3614_v9 = vpop.permute.xlu1 %3613 }
0x27aa   :  { %4807 = vmatmul.mubr.msk.f32.vlgmr.msra.gmra.mrb[46].mxu1 %vm495_vm3, %v3614_v9  ;;  %4818 = vmatmul.mubr.msk.f32.vlgmr.msra.gmra.mrb[48].mxu0 %vm495_vm3, %v3614_v9 }
0x27ab   :  { %5005 = vmatpush3.bf16.msra.mxu1 %v6252_v25  ;;  %5011 = vmatpush3.bf16.msra.mxu0 %v6093_v8 }
0x27ac   :  { %5006 = vmatprep.subr.bf16.mxu1 %v5301_v17  ;;  %5012 = vmatprep.subr.bf16.mxu0 %v5301_v17 }
0x27ad   :  { %4828 = vmatprep.mubr.msk.f32.mxu1 %vm5305_vm5, %v5907_v34  ;;  %4839 = vmatprep.mubr.msk.f32.mxu0 %vm5305_vm5, %v5907_v34 }
0x27af   :  { %5008 = vmatpush3.bf16.msra.mxu1 %v6258_v20  ;;  %5014 = vmatpush3.bf16.msra.mxu0 %v6109_v48 }
0x27b0   :  { %5015 = vmatprep.subr.bf16.mxu1 %v5301_v17 }
0x287d   :  { %v6407_v19 = vpop.f32.mrb[46].mxu1  ;;  %v3754_v50 = vpop.f32.mrb[48].mxu0 }
0x287e   :  { %v3755_v8 = vadd.f32 %v3754_v50, %v3687_v36  ;;  %v4808_v7 = vpop.f32.mrb[47].mxu1  ;;  %v4819_v52 = vpop.f32.mrb[49].mxu0 }
0x2880   :  { %5266 = vtanh.f32 %v3755_v8  ;;  %v4276_v5 = vmul.f32 -1.442695, %v3755_v8 }
0x2882   :  { %5268 = vpow2.f32 %v4276_v5 }
0x288a   :  { %v5267_v61 = vpop.eup %5266 }
0x288b   :  { %3767 = vrot.lane.b32.xlu0 %v5267_v61, %s5307_s9 }
0x288c   :  { %v5269_v48 = vpop.eup %5268 }
0x288d   :  { %v3761_v0 = vadd.f32 1.0, %v5269_v48 }
0x288f   :  { %5270 = vrcp.f32 %v3761_v0 }
0x2899   :  { %v5271_v49 = vpop.eup %5270 }
0x289a   :  { %v3765_v47 = vmul.f32 %v5271_v49, %v3605_v26 }
0x28fd   :  { %v3768_v44 = vpop.permute.xlu0 %3767 }
0x28fe   :  { %v3770_v35 = vmul.f32 %v5271_v49, %v3768_v44 }
0x2900   :  { %3772 = vrot.lane.b32.xlu1 %v3770_v35, %s5303_s14 }
0x2972   :  { %v3773_v56 = vpop.permute.xlu1 %3772 }
0x2973   :  { %v3775_v31 = vadd.f32 %v3773_v56, %v3765_v47 }
0x2975   :  { %5272 = vtanh.f32 %v3775_v31 }
0x297f   :  { %v5273_v2 = vpop.eup %5272 }
0x2980   :  { %3778 = vrot.lane.b32.xlu0 %v5273_v2, %s5307_s9 }
0x29f2   :  { %v3779_v36 = vpop.permute.xlu0 %3778 }
0x29f3   :  { %v3781_v21 = vmul.f32 %v5271_v49, %v3779_v36 }
0x29f5   :  { %3783 = vrot.lane.b32.xlu1 %v3781_v21, %s5303_s14 }
0x2a67   :  { %v3784_v3 = vpop.permute.xlu1 %3783 }
0x2a68   :  { %4829 = vmatmul.mubr.msk.f32.vlgmr.msra.gmra.mrb[48].mxu1 %vm495_vm3, %v3784_v3  ;;  %4840 = vmatmul.mubr.msk.f32.vlgmr.msra.gmra.mrb[50].mxu0 %vm495_vm3, %v3784_v3 }
0x2a69   :  { %5017 = vmatpush3.bf16.msra.mxu1 %v6252_v25  ;;  %4850 = vmatprep.mubr.msk.f32.mxu1 %vm5305_vm5, %v5907_v34 }
0x2a6a   :  { %5018 = vmatprep.subr.bf16.mxu1 %v5301_v17 }
0x2a6d   :  { %5020 = vmatpush3.bf16.msra.mxu1 %v6258_v20 }
0x2b3b   :  { %v3853_v32 = vpop.f32.mrb[48].mxu1  ;;  %v3924_v12 = vpop.f32.mrb[50].mxu0 }
0x2b3c   :  { %v3925_v23 = vadd.f32 %v3924_v12, %v3857_v13  ;;  %v4830_v63 = vpop.f32.mrb[49].mxu1  ;;  %v4841_v58 = vpop.f32.mrb[51].mxu0 }
0x2b3e   :  { %5274 = vtanh.f32 %v3925_v23  ;;  %v4279_v25 = vmul.f32 -1.442695, %v3925_v23 }
0x2b40   :  { %5276 = vpow2.f32 %v4279_v25 }
0x2b48   :  { %v5275_v30 = vpop.eup %5274 }
0x2b49   :  { %3937 = vrot.lane.b32.xlu0 %v5275_v30, %s5307_s9 }
0x2b4a   :  { %v5277_v34 = vpop.eup %5276 }
0x2b4b   :  { %v3931_v17 = vadd.f32 1.0, %v5277_v34 }
0x2b4d   :  { %5278 = vrcp.f32 %v3931_v17 }
0x2b57   :  { %v5279_v20 = vpop.eup %5278 }
0x2b58   :  { %v3935_v41 = vmul.f32 %v5279_v20, %v3775_v31 }
0x2bbb   :  { %v3938_v37 = vpop.permute.xlu0 %3937 }
0x2bbc   :  { %v3940_v60 = vmul.f32 %v5279_v20, %v3938_v37 }
0x2bbe   :  { %3942 = vrot.lane.b32.xlu1 %v3940_v60, %s5303_s14 }
0x2c30   :  { %v3943_v46 = vpop.permute.xlu1 %3942 }
0x2c31   :  { %v3945_v45 = vadd.f32 %v3943_v46, %v3935_v41 }
0x2c33   :  { %5280 = vtanh.f32 %v3945_v45 }
0x2c3d   :  { %v5281_v10 = vpop.eup %5280 }
0x2c3e   :  { %3948 = vrot.lane.b32.xlu0 %v5281_v10, %s5307_s9 }
0x2cb0   :  { %v3949_v13 = vpop.permute.xlu0 %3948 }
0x2cb1   :  { %v3951_v51 = vmul.f32 %v5279_v20, %v3949_v13 }
0x2cb3   :  { %3953 = vrot.lane.b32.xlu1 %v3951_v51, %s5303_s14 }
0x2cb7   :  { %4033 = vrot.lane.b32.xlu1 %v3853_v32, %s5311_s25 }
0x2cbb   :  { %4043 = vrot.lane.b32.xlu1 %v6383_v39, %s5311_s25 }
0x2cbf   :  { %4053 = vrot.lane.b32.xlu1 %v6333_v43, %s5311_s25 }
0x2cc3   :  { %4063 = vrot.lane.b32.xlu1 %v6283_v14, %s5311_s25 }
0x2d25   :  { %v3954_v38 = vpop.permute.xlu1 %3953 }
0x2d26   :  { %4851 = vmatmul.mubr.msk.f32.vlgmr.msra.gmra.mrb[50].mxu1 %vm495_vm3, %v3954_v38 }
0x2d29   :  { %v4034_v16 = vpop.permute.xlu1 %4033 }
0x2d2a   :  { %v4036_v27 = vadd.f32 %v4034_v16, %v6308_v18 }
0x2d2d   :  { %v4044_v1 = vpop.permute.xlu1 %4043 }
0x2d2e   :  { %v4046_v55 = vadd.f32 %v4044_v1, %v6358_v22 }
0x2d31   :  { %v4054_v9 = vpop.permute.xlu1 %4053 }
0x2d32   :  { %v4056_v52 = vadd.f32 %v4054_v9, %v6407_v19 }
0x2df9   :  { %v4023_v53 = vpop.f32.mrb[50].mxu1 }
0x2dfa   :  { %4028 = vrot.lane.b32.xlu0 %v4023_v53, %s5311_s25  ;;  %v4852_v54 = vpop.f32.mrb[51].mxu1 }
0x2dfe   :  { %4038 = vrot.lane.b32.xlu0 %v6407_v19, %s5311_s25 }
0x2e02   :  { %4048 = vrot.lane.b32.xlu0 %v6358_v22, %s5311_s25 }
0x2e06   :  { %4058 = vrot.lane.b32.xlu0 %v6308_v18, %s5311_s25 }
0x2e6c   :  { %v4029_v59 = vpop.permute.xlu0 %4028 }
0x2e6d   :  { %v4031_v28 = vadd.f32 %v4029_v59, %v6283_v14  ;;  %v4064_v14 = vpop.permute.xlu1 %4063 }
0x2e6e   :  { %v4066_v0 = vadd.f32 %v4064_v14, %v4023_v53 }
0x2e6f   :  { %v4067_v29 = vmax.f32 %v4031_v28, %v4036_v27 }
0x2e70   :  { %v4039_v26 = vpop.permute.xlu0 %4038 }
0x2e71   :  { %v4041_v4 = vadd.f32 %v4039_v26, %v6333_v43 }
0x2e73   :  { %v4068_v11 = vmax.f32 %v4067_v29, %v4041_v4 }
0x2e74   :  { %v4049_v50 = vpop.permute.xlu0 %4048 }
0x2e75   :  { %v4051_v8 = vadd.f32 %v4049_v50, %v6383_v39  ;;  %v4069_v7 = vmax.f32 %v4068_v11, %v4046_v55 }
0x2e77   :  { %v4070_v61 = vmax.f32 %v4069_v7, %v4051_v8 }
0x2e78   :  { %v4059_v5 = vpop.permute.xlu0 %4058 }
0x2e79   :  { %v4061_v18 = vadd.f32 %v4059_v5, %v3853_v32  ;;  %v4071_v48 = vmax.f32 %v4070_v61, %v4056_v52 }
0x2e7b   :  { %v4072_v49 = vmax.f32 %v4071_v48, %v4061_v18 }
0x2e7d   :  { %v4073_v44 = vmax.f32 %v4072_v49, %v4066_v0 }
0x2e7f   :  { %v4074_v35 = vsub.f32 %v4031_v28, %v4073_v44  ;;  %v4077_v43 = vsub.f32 %v4036_v27, %v4073_v44  ;;  %v4080_v47 = vsub.f32 %v4041_v4, %v4073_v44  ;;  %v4083_v22 = vsub.f32 %v4046_v55, %v4073_v44 }
0x2e80   :  { %v4086_v56 = vsub.f32 %v4051_v8, %v4073_v44  ;;  %v4089_v31 = vsub.f32 %v4056_v52, %v4073_v44  ;;  %v4092_v2 = vsub.f32 %v4061_v18, %v4073_v44  ;;  %v4095_v36 = vsub.f32 %v4066_v0, %v4073_v44 }
0x2e81   :  { %v4075_v39 = vmul.f32 1.442695, %v4074_v35  ;;  %v4078_v21 = vmul.f32 1.442695, %v4077_v43  ;;  %v4081_v3 = vmul.f32 1.442695, %v4080_v47 }
0x2e82   :  { %v4084_v19 = vmul.f32 1.442695, %v4083_v22  ;;  %v4087_v32 = vmul.f32 1.442695, %v4086_v56  ;;  %v4090_v12 = vmul.f32 1.442695, %v4089_v31 }
0x2e83   :  { %5282 = vpow2.f32 %v4075_v39  ;;  %v4093_v23 = vmul.f32 1.442695, %v4092_v2  ;;  %v4096_v63 = vmul.f32 1.442695, %v4095_v36 }
0x2e84   :  { %5284 = vpow2.f32 %v4078_v21 }
0x2e85   :  { %5286 = vpow2.f32 %v4081_v3 }
0x2e86   :  { %5288 = vpow2.f32 %v4084_v19 }
0x2e87   :  { %5290 = vpow2.f32 %v4087_v32 }
0x2e88   :  { %5292 = vpow2.f32 %v4090_v12 }
0x2e89   :  { %5294 = vpow2.f32 %v4093_v23 }
0x2e8a   :  { %5296 = vpow2.f32 %v4096_v63 }
0x2e8d   :  { %v5283_v58 = vpop.eup %5282 }
0x2e8e   :  { %v5285_v30 = vpop.eup %5284 }
0x2e8f   :  { %v4098_v25 = vadd.f32 %v5285_v30, %v5283_v58  ;;  %v5287_v34 = vpop.eup %5286 }
0x2e90   :  { %v5289_v20 = vpop.eup %5288 }
0x2e91   :  { %v4099_v17 = vadd.f32 %v5287_v34, %v4098_v25  ;;  %v5291_v60 = vpop.eup %5290 }
0x2e92   :  { %v5293_v46 = vpop.eup %5292 }
0x2e93   :  { %v4100_v37 = vadd.f32 %v5289_v20, %v4099_v17  ;;  %v5295_v10 = vpop.eup %5294 }
0x2e94   :  { %v5297_v51 = vpop.eup %5296 }
0x2e95   :  { %v4101_v41 = vadd.f32 %v5291_v60, %v4100_v37 }
0x2e97   :  { %v4102_v45 = vadd.f32 %v5293_v46, %v4101_v41 }
0x2e99   :  { %v4103_v13 = vadd.f32 %v5295_v10, %v4102_v45 }
0x2e9b   :  { %v4104_v38 = vadd.f32 %v5297_v51, %v4103_v13 }
0x2e9d   :  { %5298 = vrcp.f32 %v4104_v38 }
0x2ea7   :  { %v5299_v53 = vpop.eup %5298 }
0x2ea8   :  { %v4114_v54 = vmul.f32 %v5299_v53, %v5285_v30  ;;  %v4106_v16 = vmul.f32 %v5299_v53, %v5283_v58  ;;  %v4132_v59 = vmul.f32 %v5299_v53, %v5289_v20  ;;  %v4123_v27 = vmul.f32 %v5299_v53, %v5287_v34 }
0x2ea9   :  { %v4150_v28 = vmul.f32 %v5299_v53, %v5293_v46  ;;  %v4141_v1 = vmul.f32 %v5299_v53, %v5291_v60  ;;  %v4168_v29 = vmul.f32 %v5299_v53, %v5297_v51  ;;  %v4159_v26 = vmul.f32 %v5299_v53, %v5295_v10 }
0x2eaa   :  { %4118 = vperm.xlu1 %5034, %v4114_v54   ;;  %4110 = vperm.xlu0 %5033, %v4106_v16  }
0x2eae   :  { %4136 = vperm.xlu1 %5034, %v4132_v59   ;;  %4127 = vperm.xlu0 %5033, %v4123_v27  }
0x2eb2   :  { %4154 = vperm.xlu1 %5034, %v4150_v28   ;;  %4145 = vperm.xlu0 %5033, %v4141_v1  }
0x2eb6   :  { %4171 = vperm.xlu1 %5034, %v4168_v29   ;;  %4163 = vperm.xlu0 %5033, %v4159_v26  }
0x2f29   :  { %v4119_v4 = vpop.permute.xlu1 %4118  ;;  %v4111_v55 = vpop.permute.xlu0 %4110 }
0x2f2a   :  { %v4121_v11 = vmul.f32 %v4119_v4, %v6156_v33  ;;  %v4113_v9 = vmul.f32 %v4111_v55, %v6154_v62 }
0x2f2c   :  { %v4122_v7 = vadd.f32 %v4121_v11, %v4113_v9 }
0x2f2d   :  { %v4137_v50 = vpop.permute.xlu1 %4136  ;;  %v4128_v8 = vpop.permute.xlu0 %4127 }
0x2f2e   :  { %v4130_v52 = vmul.f32 %v4128_v8, %v6160_v57  ;;  %v4139_v61 = vmul.f32 %v4137_v50, %v6152_v40 }
0x2f30   :  { %v4131_v5 = vadd.f32 %v4130_v52, %v4122_v7 }
0x2f31   :  { %v4155_v18 = vpop.permute.xlu1 %4154  ;;  %v4146_v48 = vpop.permute.xlu0 %4145 }
0x2f32   :  { %v4140_v14 = vadd.f32 %v4139_v61, %v4131_v5  ;;  %v4148_v0 = vmul.f32 %v4146_v48, %v6166_v24  ;;  %v4157_v49 = vmul.f32 %v4155_v18, %v6168_v15 }
0x2f34   :  { %v4149_v44 = vadd.f32 %v4148_v0, %v4140_v14 }
0x2f35   :  { %v4172_v35 = vpop.permute.xlu1 %4171  ;;  %v4164_v33 = vpop.permute.xlu0 %4163 }
0x2f36   :  { %v4158_v43 = vadd.f32 %v4157_v49, %v4149_v44  ;;  %v4166_v62 = vmul.f32 %v4164_v33, %v6173_v6  ;;  %v4174_v47 = vmul.f32 %v4172_v35, %v6175_v42 }
0x2f38   :  { %v4167_v22 = vadd.f32 %v4166_v62, %v4158_v43 }
0x2f3a   :  { %v4175_v57 = vadd.f32 %v4174_v47, %v4167_v22 }
0x2f3c   :  { %4176 = vst [vmem:[%s6484_s26] sm:$0xff] %v4175_v57 }

</bundles_post_ra>
